<compile_context>
chip_gen: v7x
topology: tpu7x:2x2x1
jax: 0.10.0
libtpu: 0.0.40
codegen_flags: <defaults>
</compile_context>

<pallas_src>
import functools

import jax
import jax.numpy as jnp
from jax.experimental import pallas as pl
from jax.experimental.pallas import tpu as pltpu

HIDDEN = 512       # fc1/fc2 width (multiple of 128 -> lane-aligned)
NP_OUT = 128       # fc3 output padded to one full lane tile (num_classes <= 128)


def _round_up(x, m):
    return (x + m - 1) // m * m


# ----------------------------------------------------------------------------
# Fused kernel: fc1(+BN1 folded)+ReLU -> fc2(+BN2 folded)+ReLU -> fc3
# One grid step handles a (tm, K) row-tile of the batch; all weights are
# VMEM-resident (constant index_map); intermediates stay in registers/VMEM.
# bf16 MXU operands, f32 accumulation, f32 bias+ReLU epilogue on the VPU.
# ----------------------------------------------------------------------------
def _predictor_fc_kernel(x_ref, w1_ref, b1_ref, w2_ref, b2_ref, w3_ref, b3_ref,
                         o_ref):
    # fc1 + folded BN1 + ReLU   (Dropout == identity in eval mode)
    h = jnp.dot(x_ref[...], w1_ref[...], preferred_element_type=jnp.float32)
    h = jnp.maximum(h + b1_ref[...], 0.0)
    # fc2 + folded BN2 + ReLU   (cast activation to bf16, accumulate in f32)
    h = jnp.dot(h.astype(jnp.bfloat16), w2_ref[...],
                preferred_element_type=jnp.float32)
    h = jnp.maximum(h + b2_ref[...], 0.0)
    # fc3 (output columns beyond num_classes hold zero weights -> sliced off)
    y = jnp.dot(h.astype(jnp.bfloat16), w3_ref[...],
                preferred_element_type=jnp.float32)
    o_ref[...] = (y + b3_ref[...]).astype(o_ref.dtype)


def _choose_tm(B):
    """Batch row-tile: 8-row floor, >=2 grid steps for B>=16 (v7x 2-TC
    sharding), up to 256/512 rows for large B (amortize per-step overhead)."""
    if B < 16:
        return _round_up(max(B, 1), 8)        # single tiny tile
    if B >= 2048:
        desired = 512
    elif B >= 512:
        desired = 256
    else:
        desired = 128
    return max(8, min(desired, _round_up(pl.cdiv(B, 2), 8)))


@functools.lru_cache(maxsize=None)
def _build_call(tm, K, num_blocks, single_buffer_weights):
    def const_spec(shape):
        if single_buffer_weights:
            # Constant index_map -> fetched once; double-buffering only wastes VMEM.
            return pl.BlockSpec(shape, lambda i: (0, 0),
                                pipeline_mode=pl.Buffered(buffer_count=1))
        return pl.BlockSpec(shape, lambda i: (0, 0))

    Mp = num_blocks * tm
    flops = 2 * Mp * (K * HIDDEN + HIDDEN * HIDDEN + HIDDEN * NP_OUT)
    bytes_accessed = (2 * (Mp * K + K * HIDDEN + HIDDEN * HIDDEN
                           + HIDDEN * NP_OUT)                     # bf16 x + weights
                      + 4 * (2 * HIDDEN + NP_OUT + Mp * NP_OUT))  # f32 biases + out

    return pl.pallas_call(
        _predictor_fc_kernel,
        out_shape=jax.ShapeDtypeStruct((Mp, NP_OUT), jnp.float32),
        grid_spec=pltpu.PrefetchScalarGridSpec(
            num_scalar_prefetch=0,
            grid=(num_blocks,),
            in_specs=[
                pl.BlockSpec((tm, K), lambda i: (i, 0)),   # x row tile (bf16)
                const_spec((K, HIDDEN)),                   # w1 (bf16, resident)
                const_spec((1, HIDDEN)),                   # b1 (f32)
                const_spec((HIDDEN, HIDDEN)),              # w2 (bf16)
                const_spec((1, HIDDEN)),                   # b2 (f32)
                const_spec((HIDDEN, NP_OUT)),              # w3 (bf16, 0-padded cols)
                const_spec((1, NP_OUT)),                   # b3 (f32, 0-padded)
            ],
            out_specs=pl.BlockSpec((tm, NP_OUT), lambda i: (i, 0)),
        ),
        compiler_params=pltpu.CompilerParams(
            dimension_semantics=("parallel",)),
        cost_estimate=pl.CostEstimate(
            flops=flops, transcendentals=0, bytes_accessed=bytes_accessed),
    )


_WEIGHT_PIPELINE_HINT_OK = True   # set False if Buffered(1) is rejected once


def predictor_fc_forward(params, x):
    """Forward pass of Predictor_fc (eval mode) as one fused Pallas call.

    params: dict from prepare_params() (BN folded, bf16 weights, fc3 padded).
    x: (B, ...) -- flattened to (B, in_channel) like x.view(x.size(0), -1).
    """
    global _WEIGHT_PIPELINE_HINT_OK

    B = x.shape[0]
    xf = x.reshape(B, -1).astype(jnp.bfloat16)     # bf16 operands, f32 MXU accum
    K = xf.shape[1]
    assert K % 128 == 0, "in_channel = 512*n (or 256*n) is always 128-aligned"

    w1, b1 = params["w1"], params["b1"]            # (K, 512) bf16, (1, 512) f32
    w2, b2 = params["w2"], params["b2"]            # (512, 512) bf16, (1, 512) f32
    w3, b3 = params["w3"], params["b3"]            # (512, 128) bf16, (1, 128) f32
    num_classes = params["num_classes"]

    tm = _choose_tm(B)
    num_blocks = pl.cdiv(B, tm)   # ragged last x-block reads OOB; rows sliced off
    args = (xf, w1, b1, w2, b2, w3, b3)

    out = None
    if _WEIGHT_PIPELINE_HINT_OK:
        try:
            out = _build_call(tm, K, num_blocks, True)(*args)
        except Exception:
            # Portability guard: JAX build without per-BlockSpec buffering hints.
            _WEIGHT_PIPELINE_HINT_OK = False
    if out is None:
        out = _build_call(tm, K, num_blocks, False)(*args)

    return out[:B, :num_classes]


# ----------------------------------------------------------------------------
# Parameter handling (synthetic, deterministic; no checkpoint loading).
# Linear weights are stored as (in_features, out_features).
# ----------------------------------------------------------------------------
def init_params(key, n, add_box=True, num_classes=3):
    in_ch = 512 * n if add_box else 256 * n
    ks = jax.random.split(key, 8)

    def lin(kw, kb, fi, fo, std=0.02):
        w = std * jax.random.normal(kw, (fi, fo), jnp.float32)
        b = 0.01 * jax.random.normal(kb, (fo,), jnp.float32)
        return w, b

    def bn_stats(k, feat):
        k1, k2, k3, k4 = jax.random.split(k, 4)
        gamma = 1.0 + 0.1 * jax.random.normal(k1, (feat,), jnp.float32)
        beta = 0.05 * jax.random.normal(k2, (feat,), jnp.float32)
        mean = 0.01 * jax.random.normal(k3, (feat,), jnp.float32)
        var = 1.0 + 0.1 * jnp.abs(jax.random.normal(k4, (feat,), jnp.float32))
        return gamma, beta, mean, var

    w1, b1 = lin(ks[0], ks[1], in_ch, HIDDEN)
    w2, b2 = lin(ks[2], ks[3], HIDDEN, HIDDEN)
    w3, b3 = lin(ks[4], ks[5], HIDDEN, num_classes)
    return dict(w1=w1, b1=b1, w2=w2, b2=b2, w3=w3, b3=b3,
                bn1=bn_stats(ks[6], HIDDEN), bn2=bn_stats(ks[7], HIDDEN),
                num_classes=num_classes)


def _fold_bn(w, b, gamma, beta, mean, var, eps=1e-5):
    scale = gamma / jnp.sqrt(var + eps)
    return w * scale[None, :], b * scale + (beta - mean * scale)


def prepare_params(raw):
    """One-time prep: fold eval-mode BN into fc1/fc2 (in f32), zero-pad fc3's
    output to 128 lanes, then store weights in bf16 (biases stay f32)."""
    w1, b1 = _fold_bn(raw["w1"], raw["b1"], *raw["bn1"])
    w2, b2 = _fold_bn(raw["w2"], raw["b2"], *raw["bn2"])
    nc = raw["num_classes"]
    w3 = jnp.pad(raw["w3"], ((0, 0), (0, NP_OUT - nc)))
    b3 = jnp.pad(raw["b3"], ((0, NP_OUT - nc),))
    return dict(
        w1=w1.astype(jnp.bfloat16), b1=b1.reshape(1, HIDDEN).astype(jnp.float32),
        w2=w2.astype(jnp.bfloat16), b2=b2.reshape(1, HIDDEN).astype(jnp.float32),
        w3=w3.astype(jnp.bfloat16), b3=b3.reshape(1, NP_OUT).astype(jnp.float32),
        num_classes=nc)


# Pure-JAX f32 reference mirroring the PyTorch module (eval mode).
def reference_forward(raw, x, eps=1e-5):
    B = x.shape[0]
    h = x.reshape(B, -1) @ raw["w1"] + raw["b1"]
    g, bt, m, v = raw["bn1"]
    h = jnp.maximum((h - m) / jnp.sqrt(v + eps) * g + bt, 0.0)
    h = h @ raw["w2"] + raw["b2"]
    g, bt, m, v = raw["bn2"]
    h = jnp.maximum((h - m) / jnp.sqrt(v + eps) * g + bt, 0.0)
    return h @ raw["w3"] + raw["b3"]


if __name__ == "__main__":
    # Predictor_fc(n=2, add_box=True, num_classes=3): in_channel = 512*2 = 1024.
    n = 2
    num_classes = 3
    B = 2

    key = jax.random.PRNGKey(0)
    k_params, k_x = jax.random.split(key)

    raw = init_params(k_params, n, add_box=True, num_classes=num_classes)
    params = prepare_params(raw)

    # Input is (B, n, 512); forward flattens to (B, 512*n) like x.view(B, -1).
    x = jax.random.normal(k_x, (B, n, 512), jnp.float32)

    pred = predictor_fc_forward(params, x)
    pred = jax.block_until_ready(pred)

    ref = reference_forward(raw, x)
    assert pred.shape == (B, num_classes), pred.shape
    assert jnp.all(jnp.isfinite(pred))
    assert jnp.allclose(pred, ref, atol=2e-2, rtol=2e-2), \
        float(jnp.max(jnp.abs(pred - ref)))
    print("KERNEL_OK")
</pallas_src>

<mosaic_0001>
module attributes {stable_mosaic.version = 11 : i64} {
  func.func @_predictor_fc_kernel(%arg0: i32, %arg1: memref<8x1024xbf16, #tpu.memory_space<vmem>>, %arg2: memref<1024x512xbf16, #tpu.memory_space<vmem>>, %arg3: memref<1x512xf32, #tpu.memory_space<vmem>>, %arg4: memref<512x512xbf16, #tpu.memory_space<vmem>>, %arg5: memref<1x512xf32, #tpu.memory_space<vmem>>, %arg6: memref<512x128xbf16, #tpu.memory_space<vmem>>, %arg7: memref<1x128xf32, #tpu.memory_space<vmem>>, %arg8: memref<8x128xf32, #tpu.memory_space<vmem>>) attributes {dimension_semantics = [#tpu.dimension_semantics<parallel>], iteration_bounds = array<i64: 1>, scalar_prefetch = 0 : i64, scratch_operands = 0 : i64, tpu.core_type = #tpu.core_type<tc>, window_params = [{transform_indices = @transform_0, window_bounds = array<i64: 8, 1024>}, {pipeline_mode = #tpu.pipeline_mode<synchronous>, transform_indices = @transform_1, window_bounds = array<i64: 1024, 512>}, {pipeline_mode = #tpu.pipeline_mode<synchronous>, transform_indices = @transform_2, window_bounds = array<i64: 1, 512>}, {pipeline_mode = #tpu.pipeline_mode<synchronous>, transform_indices = @transform_3, window_bounds = array<i64: 512, 512>}, {pipeline_mode = #tpu.pipeline_mode<synchronous>, transform_indices = @transform_4, window_bounds = array<i64: 1, 512>}, {pipeline_mode = #tpu.pipeline_mode<synchronous>, transform_indices = @transform_5, window_bounds = array<i64: 512, 128>}, {pipeline_mode = #tpu.pipeline_mode<synchronous>, transform_indices = @transform_6, window_bounds = array<i64: 1, 128>}, {transform_indices = @transform_7, window_bounds = array<i64: 8, 128>}]} {
    %c0 = arith.constant 0 : index
    %c0_0 = arith.constant 0 : index
    %0 = vector.load %arg1[%c0, %c0_0] : memref<8x1024xbf16, #tpu.memory_space<vmem>>, vector<8x1024xbf16>
    %c0_1 = arith.constant 0 : index
    %c0_2 = arith.constant 0 : index
    %1 = vector.load %arg2[%c0_1, %c0_2] : memref<1024x512xbf16, #tpu.memory_space<vmem>>, vector<1024x512xbf16>
    %cst = arith.constant dense<0.000000e+00> : vector<8x512xf32>
    %2 = tpu.matmul %0, %1, %cst {dimension_numbers = #tpu.dot_dimension_numbers<[1], [0], [0], [1], [0, 0, 1, 1], [], []>} : vector<8x1024xbf16>, vector<1024x512xbf16>, vector<8x512xf32> -> vector<8x512xf32>
    %c0_3 = arith.constant 0 : index
    %c0_4 = arith.constant 0 : index
    %3 = vector.load %arg3[%c0_3, %c0_4] : memref<1x512xf32, #tpu.memory_space<vmem>>, vector<1x512xf32>
    %4 = vector.broadcast %3 : vector<1x512xf32> to vector<8x512xf32>
    %5 = arith.addf %2, %4 : vector<8x512xf32>
    %cst_5 = arith.constant 0.000000e+00 : f32
    %6 = vector.broadcast %cst_5 : f32 to vector<8x512xf32>
    %7 = arith.maximumf %5, %6 : vector<8x512xf32>
    %8 = arith.truncf %7 : vector<8x512xf32> to vector<8x512xbf16>
    %c0_6 = arith.constant 0 : index
    %c0_7 = arith.constant 0 : index
    %9 = vector.load %arg4[%c0_6, %c0_7] : memref<512x512xbf16, #tpu.memory_space<vmem>>, vector<512x512xbf16>
    %cst_8 = arith.constant dense<0.000000e+00> : vector<8x512xf32>
    %10 = tpu.matmul %8, %9, %cst_8 {dimension_numbers = #tpu.dot_dimension_numbers<[1], [0], [0], [1], [0, 0, 1, 1], [], []>} : vector<8x512xbf16>, vector<512x512xbf16>, vector<8x512xf32> -> vector<8x512xf32>
    %c0_9 = arith.constant 0 : index
    %c0_10 = arith.constant 0 : index
    %11 = vector.load %arg5[%c0_9, %c0_10] : memref<1x512xf32, #tpu.memory_space<vmem>>, vector<1x512xf32>
    %12 = vector.broadcast %11 : vector<1x512xf32> to vector<8x512xf32>
    %13 = arith.addf %10, %12 : vector<8x512xf32>
    %cst_11 = arith.constant 0.000000e+00 : f32
    %14 = vector.broadcast %cst_11 : f32 to vector<8x512xf32>
    %15 = arith.maximumf %13, %14 : vector<8x512xf32>
    %16 = arith.truncf %15 : vector<8x512xf32> to vector<8x512xbf16>
    %c0_12 = arith.constant 0 : index
    %c0_13 = arith.constant 0 : index
    %17 = vector.load %arg6[%c0_12, %c0_13] : memref<512x128xbf16, #tpu.memory_space<vmem>>, vector<512x128xbf16>
    %cst_14 = arith.constant dense<0.000000e+00> : vector<8x128xf32>
    %18 = tpu.matmul %16, %17, %cst_14 {dimension_numbers = #tpu.dot_dimension_numbers<[1], [0], [0], [1], [0, 0, 1, 1], [], []>} : vector<8x512xbf16>, vector<512x128xbf16>, vector<8x128xf32> -> vector<8x128xf32>
    %c0_15 = arith.constant 0 : index
    %c0_16 = arith.constant 0 : index
    %19 = vector.load %arg7[%c0_15, %c0_16] : memref<1x128xf32, #tpu.memory_space<vmem>>, vector<1x128xf32>
    %20 = vector.broadcast %19 : vector<1x128xf32> to vector<8x128xf32>
    %21 = arith.addf %18, %20 : vector<8x128xf32>
    %c0_17 = arith.constant 0 : index
    %c0_18 = arith.constant 0 : index
    %22 = vector.load %arg8[%c0_17, %c0_18] : memref<8x128xf32, #tpu.memory_space<vmem>>, vector<8x128xf32>
    tpu.vector_store %arg8[%c0_17, %c0_18], %21 {strides = array<i32>} : memref<8x128xf32, #tpu.memory_space<vmem>>, vector<8x128xf32>,
    return
  }
  func.func @transform_0(%arg0: i32) -> (i32, i32) {
    %c0_i32 = arith.constant 0 : i32
    %c0_i32_0 = arith.constant 0 : i32
    return %arg0, %c0_i32 : i32, i32
  }
  func.func @transform_1(%arg0: i32) -> (i32, i32) {
    %c0_i32 = arith.constant 0 : i32
    %c0_i32_0 = arith.constant 0 : i32
    %c0_i32_1 = arith.constant 0 : i32
    return %c0_i32, %c0_i32_0 : i32, i32
  }
  func.func @transform_2(%arg0: i32) -> (i32, i32) {
    %c0_i32 = arith.constant 0 : i32
    %c0_i32_0 = arith.constant 0 : i32
    %c0_i32_1 = arith.constant 0 : i32
    return %c0_i32, %c0_i32_0 : i32, i32
  }
  func.func @transform_3(%arg0: i32) -> (i32, i32) {
    %c0_i32 = arith.constant 0 : i32
    %c0_i32_0 = arith.constant 0 : i32
    %c0_i32_1 = arith.constant 0 : i32
    return %c0_i32, %c0_i32_0 : i32, i32
  }
  func.func @transform_4(%arg0: i32) -> (i32, i32) {
    %c0_i32 = arith.constant 0 : i32
    %c0_i32_0 = arith.constant 0 : i32
    %c0_i32_1 = arith.constant 0 : i32
    return %c0_i32, %c0_i32_0 : i32, i32
  }
  func.func @transform_5(%arg0: i32) -> (i32, i32) {
    %c0_i32 = arith.constant 0 : i32
    %c0_i32_0 = arith.constant 0 : i32
    %c0_i32_1 = arith.constant 0 : i32
    return %c0_i32, %c0_i32_0 : i32, i32
  }
  func.func @transform_6(%arg0: i32) -> (i32, i32) {
    %c0_i32 = arith.constant 0 : i32
    %c0_i32_0 = arith.constant 0 : i32
    %c0_i32_1 = arith.constant 0 : i32
    return %c0_i32, %c0_i32_0 : i32, i32
  }
  func.func @transform_7(%arg0: i32) -> (i32, i32) {
    %c0_i32 = arith.constant 0 : i32
    %c0_i32_0 = arith.constant 0 : i32
    return %arg0, %c0_i32 : i32, i32
  }
}

module attributes {stable_mosaic.version = 11 : i64} {
  func.func @_predictor_fc_kernel(%arg0: i32, %arg1: memref<8x1024xbf16, #tpu.memory_space<vmem>>, %arg2: memref<1024x512xbf16, #tpu.memory_space<vmem>>, %arg3: memref<1x512xf32, #tpu.memory_space<vmem>>, %arg4: memref<512x512xbf16, #tpu.memory_space<vmem>>, %arg5: memref<1x512xf32, #tpu.memory_space<vmem>>, %arg6: memref<512x128xbf16, #tpu.memory_space<vmem>>, %arg7: memref<1x128xf32, #tpu.memory_space<vmem>>, %arg8: memref<8x128xf32, #tpu.memory_space<vmem>>) attributes {dimension_semantics = [#tpu.dimension_semantics<parallel>], iteration_bounds = array<i64: 1>, scalar_prefetch = 0 : i64, scratch_operands = 0 : i64, tpu.core_type = #tpu.core_type<tc>, window_params = [{transform_indices = @transform_0, window_bounds = array<i64: 8, 1024>}, {pipeline_mode = #tpu.pipeline_mode<synchronous>, transform_indices = @transform_1, window_bounds = array<i64: 1024, 512>}, {pipeline_mode = #tpu.pipeline_mode<synchronous>, transform_indices = @transform_2, window_bounds = array<i64: 1, 512>}, {pipeline_mode = #tpu.pipeline_mode<synchronous>, transform_indices = @transform_3, window_bounds = array<i64: 512, 512>}, {pipeline_mode = #tpu.pipeline_mode<synchronous>, transform_indices = @transform_4, window_bounds = array<i64: 1, 512>}, {pipeline_mode = #tpu.pipeline_mode<synchronous>, transform_indices = @transform_5, window_bounds = array<i64: 512, 128>}, {pipeline_mode = #tpu.pipeline_mode<synchronous>, transform_indices = @transform_6, window_bounds = array<i64: 1, 128>}, {transform_indices = @transform_7, window_bounds = array<i64: 8, 128>}]} {
    %c0 = arith.constant 0 : index
    %c0_0 = arith.constant 0 : index
    %0 = vector.load %arg1[%c0, %c0_0] : memref<8x1024xbf16, #tpu.memory_space<vmem>>, vector<8x1024xbf16>
    %c0_1 = arith.constant 0 : index
    %c0_2 = arith.constant 0 : index
    %1 = vector.load %arg2[%c0_1, %c0_2] : memref<1024x512xbf16, #tpu.memory_space<vmem>>, vector<1024x512xbf16>
    %cst = arith.constant dense<0.000000e+00> : vector<8x512xf32>
    %2 = tpu.matmul %0, %1, %cst {dimension_numbers = #tpu.dot_dimension_numbers<[1], [0], [0], [1], [0, 0, 1, 1], [], []>} : vector<8x1024xbf16>, vector<1024x512xbf16>, vector<8x512xf32> -> vector<8x512xf32>
    %c0_3 = arith.constant 0 : index
    %c0_4 = arith.constant 0 : index
    %3 = vector.load %arg3[%c0_3, %c0_4] : memref<1x512xf32, #tpu.memory_space<vmem>>, vector<1x512xf32>
    %4 = vector.broadcast %3 : vector<1x512xf32> to vector<8x512xf32>
    %5 = arith.addf %2, %4 : vector<8x512xf32>
    %cst_5 = arith.constant 0.000000e+00 : f32
    %6 = vector.broadcast %cst_5 : f32 to vector<8x512xf32>
    %7 = arith.maximumf %5, %6 : vector<8x512xf32>
    %8 = arith.truncf %7 : vector<8x512xf32> to vector<8x512xbf16>
    %c0_6 = arith.constant 0 : index
    %c0_7 = arith.constant 0 : index
    %9 = vector.load %arg4[%c0_6, %c0_7] : memref<512x512xbf16, #tpu.memory_space<vmem>>, vector<512x512xbf16>
    %cst_8 = arith.constant dense<0.000000e+00> : vector<8x512xf32>
    %10 = tpu.matmul %8, %9, %cst_8 {dimension_numbers = #tpu.dot_dimension_numbers<[1], [0], [0], [1], [0, 0, 1, 1], [], []>} : vector<8x512xbf16>, vector<512x512xbf16>, vector<8x512xf32> -> vector<8x512xf32>
    %c0_9 = arith.constant 0 : index
    %c0_10 = arith.constant 0 : index
    %11 = vector.load %arg5[%c0_9, %c0_10] : memref<1x512xf32, #tpu.memory_space<vmem>>, vector<1x512xf32>
    %12 = vector.broadcast %11 : vector<1x512xf32> to vector<8x512xf32>
    %13 = arith.addf %10, %12 : vector<8x512xf32>
    %cst_11 = arith.constant 0.000000e+00 : f32
    %14 = vector.broadcast %cst_11 : f32 to vector<8x512xf32>
    %15 = arith.maximumf %13, %14 : vector<8x512xf32>
    %16 = arith.truncf %15 : vector<8x512xf32> to vector<8x512xbf16>
    %c0_12 = arith.constant 0 : index
    %c0_13 = arith.constant 0 : index
    %17 = vector.load %arg6[%c0_12, %c0_13] : memref<512x128xbf16, #tpu.memory_space<vmem>>, vector<512x128xbf16>
    %cst_14 = arith.constant dense<0.000000e+00> : vector<8x128xf32>
    %18 = tpu.matmul %16, %17, %cst_14 {dimension_numbers = #tpu.dot_dimension_numbers<[1], [0], [0], [1], [0, 0, 1, 1], [], []>} : vector<8x512xbf16>, vector<512x128xbf16>, vector<8x128xf32> -> vector<8x128xf32>
    %c0_15 = arith.constant 0 : index
    %c0_16 = arith.constant 0 : index
    %19 = vector.load %arg7[%c0_15, %c0_16] : memref<1x128xf32, #tpu.memory_space<vmem>>, vector<1x128xf32>
    %20 = vector.broadcast %19 : vector<1x128xf32> to vector<8x128xf32>
    %21 = arith.addf %18, %20 : vector<8x128xf32>
    %c0_17 = arith.constant 0 : index
    %c0_18 = arith.constant 0 : index
    %22 = vector.load %arg8[%c0_17, %c0_18] : memref<8x128xf32, #tpu.memory_space<vmem>>, vector<8x128xf32>
    tpu.vector_store %arg8[%c0_17, %c0_18], %21 {strides = array<i32>} : memref<8x128xf32, #tpu.memory_space<vmem>>, vector<8x128xf32>,
    return
  }
  func.func @transform_0(%arg0: i32) -> (i32, i32) {
    %c0_i32 = arith.constant 0 : i32
    %c0_i32_0 = arith.constant 0 : i32
    return %arg0, %c0_i32 : i32, i32
  }
  func.func @transform_1(%arg0: i32) -> (i32, i32) {
    %c0_i32 = arith.constant 0 : i32
    %c0_i32_0 = arith.constant 0 : i32
    %c0_i32_1 = arith.constant 0 : i32
    return %c0_i32, %c0_i32_0 : i32, i32
  }
  func.func @transform_2(%arg0: i32) -> (i32, i32) {
    %c0_i32 = arith.constant 0 : i32
    %c0_i32_0 = arith.constant 0 : i32
    %c0_i32_1 = arith.constant 0 : i32
    return %c0_i32, %c0_i32_0 : i32, i32
  }
  func.func @transform_3(%arg0: i32) -> (i32, i32) {
    %c0_i32 = arith.constant 0 : i32
    %c0_i32_0 = arith.constant 0 : i32
    %c0_i32_1 = arith.constant 0 : i32
    return %c0_i32, %c0_i32_0 : i32, i32
  }
  func.func @transform_4(%arg0: i32) -> (i32, i32) {
    %c0_i32 = arith.constant 0 : i32
    %c0_i32_0 = arith.constant 0 : i32
    %c0_i32_1 = arith.constant 0 : i32
    return %c0_i32, %c0_i32_0 : i32, i32
  }
  func.func @transform_5(%arg0: i32) -> (i32, i32) {
    %c0_i32 = arith.constant 0 : i32
    %c0_i32_0 = arith.constant 0 : i32
    %c0_i32_1 = arith.constant 0 : i32
    return %c0_i32, %c0_i32_0 : i32, i32
  }
  func.func @transform_6(%arg0: i32) -> (i32, i32) {
    %c0_i32 = arith.constant 0 : i32
    %c0_i32_0 = arith.constant 0 : i32
    %c0_i32_1 = arith.constant 0 : i32
    return %c0_i32, %c0_i32_0 : i32, i32
  }
  func.func @transform_7(%arg0: i32) -> (i32, i32) {
    %c0_i32 = arith.constant 0 : i32
    %c0_i32_0 = arith.constant 0 : i32
    return %arg0, %c0_i32 : i32, i32
  }
}

</mosaic_0001>

<bundles_post_ra>
// kernel: tpu_custom_call.1
= control target key start
LH: loop header
LB: loop body
LE: loop exit
PB: predicated region body
PF: predicated region fallthrough
CT: control target
= control target key end

     0   :  { %12 = vsyncpa [#allocation3], 0  ;;  %s4831_s0 = inlined_call_operand.hbm [shape: bf16[2,1024], index: 0, kind: input, shape index: {}]   ;;  %s4832_s1 = inlined_call_operand.hbm [shape: bf16[1024,512], index: 1, kind: input, shape index: {}]   ;;  %s4833_s2 = inlined_call_operand.vmem [shape: f32[1,512], index: 2, kind: input, shape index: {}]   ;;  %s4834_s3 = inlined_call_operand.hbm [shape: bf16[512,512], index: 3, kind: input, shape index: {}]   ;;  %s4835_s4 = inlined_call_operand.vmem [shape: f32[1,512], index: 4, kind: input, shape index: {}]   ;;  %s4836_s5 = inlined_call_operand.hbm [shape: bf16[512,128], index: 5, kind: input, shape index: {}]   ;;  %s4837_s6 = inlined_call_operand.vmem [shape: f32[1,128], index: 6, kind: input, shape index: {}]   ;;  %s4838_s7 = inlined_call_operand.hbm [shape: f32[8,128], index: 7, kind: output, shape index: {}]  }
   0x1   :  { %13 = vsyncpa [#allocation6], 0 }
   0x2   :  { %14 = vsyncpa [#allocation9], 0 }
   0x3   :  { %15 = vsyncpa [#allocation4], 0 }
   0x4   :  { %20 = vsyncadd [#allocation3], 384  ;;  %s4629_s24 = smov [#allocation5]   ;;  %s4511_s28 = scalar_lea.hbm %s4832_s1, 32768 }
   0x5   :  { %s33_s25 = sshll.u32 %s4629_s24, 4  ;;  %p4512_p0 = scmp.ne.s32.totalorder %s4832_s1, %s4511_s28  ;;  %s34_s25 = int_to_ptr.vmem [resolvable:$true] %s33_s25 }
   0x6   :  { %p4515_p1 = scmp.lt.u32.totalorder %s4511_s28, %s4832_s1 }
   0x8   :  { %p4517_p2 = pnand %p4515_p1, %p4512_p0 }
   0xa   :  { %4520 = shalt.err (!%p4517_p2)
}
   0xb   :  { %s4521_s10 = scalar_lea.vmem %s34_s25, 32768  ;;  %p4526_p4 = scmp.lt.s32.totalorder %s34_s25, %s34_s25 }
   0xc   :  { %p4522_p3 = scmp.ne.s32.totalorder %s34_s25, %s4521_s10  ;;  %p4527_p5 = scmp.lt.s32.totalorder %s4521_s10, %s4521_s10 }
   0xe   :  { %p4528_p6 = por %p4527_p5, %p4526_p4 }
  0x10   :  { %p4529_p7 = pnand %p4528_p6, %p4522_p3 }
  0x12   :  { %4532 = shalt.err (!%p4529_p7)
}
  0x13   :  { %s4630_s11 = smov 256   ;;  %s4631_s12 = smov 16  }
  0x14   :  { %39 = dma.hbm_to_vmem [thread:$0]  %s4832_s1, 32768, %s34_s25, [#allocation6], %s4630_s11, %s4630_s11, %s4631_s12  }
  0x15   :  { %s4632_s15 = smov [#allocation2]   ;;  %s4533_s19 = scalar_lea.hbm %s4831_s0, 128 }
  0x16   :  { %s21_s16 = sshll.u32 %s4632_s15, 4  ;;  %p4534_p8 = scmp.ne.s32.totalorder %s4831_s0, %s4533_s19  ;;  %s22_s16 = int_to_ptr.vmem [resolvable:$true] %s21_s16 }
  0x17   :  { %p4537_p9 = scmp.lt.u32.totalorder %s4533_s19, %s4831_s0 }
  0x19   :  { %p4539_p10 = pnand %p4537_p9, %p4534_p8 }
  0x1b   :  { %4542 = shalt.err (!%p4539_p10)
}
  0x1c   :  { %s4543_s24 = scalar_lea.vmem %s22_s16, 128  ;;  %s4547_s1 = scalar_lea.vmem %s22_s16, 512 }
  0x1d   :  { %p4544_p11 = scmp.ne.s32.totalorder %s22_s16, %s4543_s24  ;;  %p4548_p12 = scmp.lt.s32.totalorder %s22_s16, %s22_s16 }
  0x1e   :  { %p4549_p13 = scmp.lt.s32.totalorder %s4547_s1, %s4543_s24 }
  0x20   :  { %p4550_p0 = por %p4549_p13, %p4548_p12 }
  0x22   :  { %p4551_p1 = pnand %p4550_p0, %p4544_p11 }
  0x24   :  { %4554 = shalt.err (!%p4551_p1)
}
  0x25   :  { %s4633_s25 = smov 128   ;;  %s4634_s26 = smov 8  }
  0x26   :  { %27 = dma.hbm_to_vmem [thread:$0]  %s4831_s0, 128, %s22_s16, [#allocation3], %s4633_s25, %s4633_s25, %s4634_s26  }
  0x27   :  { %s4635_s29 = smov [#allocation7]   ;;  %s4636_s8 = smov [#allocation8]  }
  0x28   :  { %s47_s30 = sshll.u32 %s4635_s29, 4  ;;  %s61_s9 = sshll.u32 %s4636_s8, 4  ;;  %s48_s30 = int_to_ptr.vmem [resolvable:$true] %s47_s30  ;;  %s4708_s9 = int_to_ptr.vmem [resolvable:$true] %s61_s9 }
  0x29   :  { %s4555_s14 = scalar_lea.hbm %s4834_s3, 16384 }
  0x2a   :  { %p4556_p2 = scmp.ne.s32.totalorder %s4834_s3, %s4555_s14  ;;  %p4559_p3 = scmp.lt.u32.totalorder %s4555_s14, %s4834_s3 }
  0x2c   :  { %p4561_p4 = pnand %p4559_p3, %p4556_p2 }
  0x2e   :  { %4564 = shalt.err (!%p4561_p4)
}
  0x2f   :  { %s4565_s0 = scalar_lea.vmem %s48_s30, 16384  ;;  %p4570_p6 = scmp.lt.s32.totalorder %s48_s30, %s48_s30 }
  0x30   :  { %p4566_p5 = scmp.ne.s32.totalorder %s48_s30, %s4565_s0  ;;  %p4571_p7 = scmp.lt.s32.totalorder %s4565_s0, %s4565_s0 }
  0x32   :  { %p4572_p8 = por %p4571_p7, %p4570_p6 }
  0x34   :  { %p4573_p9 = pnand %p4572_p8, %p4566_p5 }
  0x36   :  { %4576 = shalt.err (!%p4573_p9)
}
  0x37   :  { %53 = dma.hbm_to_vmem [thread:$0]  %s4834_s3, 16384, %s48_s30, [#allocation6], %s4630_s11, %s4630_s11, %s4631_s12  }
  0x38   :  { %s4577_s23 = scalar_lea.hbm %s4836_s5, 4096 }
  0x39   :  { %p4578_p10 = scmp.ne.s32.totalorder %s4836_s5, %s4577_s23  ;;  %p4581_p11 = scmp.lt.u32.totalorder %s4577_s23, %s4836_s5 }
  0x3b   :  { %p4583_p12 = pnand %p4581_p11, %p4578_p10 }
  0x3d   :  { %4586 = shalt.err (!%p4583_p12)
}
  0x3e   :  { %s4587_s27 = scalar_lea.vmem %s4708_s9, 4096  ;;  %p4592_p0 = scmp.lt.s32.totalorder %s4708_s9, %s4708_s9 }
  0x3f   :  { %p4588_p13 = scmp.ne.s32.totalorder %s4708_s9, %s4587_s27  ;;  %p4593_p1 = scmp.lt.s32.totalorder %s4587_s27, %s4587_s27 }
  0x41   :  { %p4594_p2 = por %p4593_p1, %p4592_p0 }
  0x43   :  { %p4595_p3 = pnand %p4594_p2, %p4588_p13 }
  0x45   :  { %4598 = shalt.err (!%p4595_p3)
}
  0x46   :  { %s4637_s3 = smov 64   ;;  %s4638_s11 = smov 4  }
  0x47   :  { %67 = dma.hbm_to_vmem [thread:$0]  %s4836_s5, 4096, %s4708_s9, [#allocation9], %s4637_s3, %s4637_s3, %s4638_s11  }
  0x48   :  { %4621 = dma.done.wait [#allocation3], 512  }
  0x49   :  { %4622 = vsyncadd [#allocation3], 4294966784 }
  0x4a   :  { %4623 = dma.done.wait [#allocation6], 49152  }
  0x4b   :  { %4624 = vsyncadd [#allocation6], 4294918144 }
  0x4c   :  { %4625 = dma.done.wait [#allocation9], 4096  }
  0x4d   :  { %4626 = vsyncadd [#allocation9], 4294963200  ;;  %v3897_v0 = vld [vmem:[#allocation5 + $0x4] ss:$16 sps:$4 sm:$0xff]   ;;  %v3899_v1 = vld [vmem:[#allocation5 + $0xc] ss:$16 sps:$4 sm:$0xff]   ;;  %v345_v38 = vlaneseq }
  0x4e   :  { %1725 = vmatprep.subr.bf16.mxu0 %v3897_v0  ;;  %v3901_v2 = vld [vmem:[#allocation5] ss:$16 sps:$4 sm:$0xff]   ;;  %v3902_v3 = vld [vmem:[#allocation5 + $0x8] ss:$16 sps:$4 sm:$0xff]   ;;  %1889 = vmatprep.subr.bf16.mxu1 %v3899_v1  ;;  %v3903_v4 = vld [vmem:[#allocation5 + $0x24] ss:$16 sps:$4 sm:$0xff]  }
  0x4f   :  { %1726 = vmatpush1.bf16.msra.mxu0 %v3901_v2  ;;  %1890 = vmatpush1.bf16.msra.mxu1 %v3902_v3  ;;  %v3905_v5 = vld [vmem:[#allocation5 + $0x2c] ss:$16 sps:$4 sm:$0xff]   ;;  %v3907_v6 = vld [vmem:[#allocation5 + $0x20] ss:$16 sps:$4 sm:$0xff]   ;;  %v3908_v7 = vld [vmem:[#allocation5 + $0x28] ss:$16 sps:$4 sm:$0xff]  }
  0x50   :  { %1727 = vmatprep.subr.bf16.mxu0 %v3903_v4  ;;  %1891 = vmatprep.subr.bf16.mxu1 %v3905_v5  ;;  %v3909_v8 = vld [vmem:[#allocation5 + $0x44] ss:$16 sps:$4 sm:$0xff]   ;;  %v3911_v9 = vld [vmem:[#allocation5 + $0x4c] ss:$16 sps:$4 sm:$0xff]   ;;  %v3913_v10 = vld [vmem:[#allocation5 + $0x40] ss:$16 sps:$4 sm:$0xff]  }
  0x51   :  { %v3914_v11 = vld [vmem:[#allocation5 + $0x48] ss:$16 sps:$4 sm:$0xff]   ;;  %v3915_v12 = vld [vmem:[#allocation5 + $0x64] ss:$16 sps:$4 sm:$0xff]   ;;  %v3917_v13 = vld [vmem:[#allocation5 + $0x6c] ss:$16 sps:$4 sm:$0xff]  }
  0x52   :  { %v3919_v14 = vld [vmem:[#allocation5 + $0x60] ss:$16 sps:$4 sm:$0xff]   ;;  %v3920_v15 = vld [vmem:[#allocation5 + $0x68] ss:$16 sps:$4 sm:$0xff]   ;;  %v3921_v16 = vld [vmem:[#allocation5 + $0x84] ss:$16 sps:$4 sm:$0xff]  }
  0x53   :  { %1728 = vmatpush1.bf16.msra.mxu0 %v3907_v6  ;;  %1892 = vmatpush1.bf16.msra.mxu1 %v3908_v7  ;;  %v3923_v17 = vld [vmem:[#allocation5 + $0x8c] ss:$16 sps:$4 sm:$0xff]   ;;  %v3925_v18 = vld [vmem:[#allocation5 + $0x80] ss:$16 sps:$4 sm:$0xff]   ;;  %v3926_v19 = vld [vmem:[#allocation5 + $0x88] ss:$16 sps:$4 sm:$0xff]  }
  0x54   :  { %1729 = vmatprep.subr.bf16.mxu0 %v3909_v8  ;;  %1893 = vmatprep.subr.bf16.mxu1 %v3911_v9  ;;  %v3927_v20 = vld [vmem:[#allocation5 + $0xa4] ss:$16 sps:$4 sm:$0xff]   ;;  %v3929_v21 = vld [vmem:[#allocation5 + $0xac] ss:$16 sps:$4 sm:$0xff]   ;;  %v3931_v22 = vld [vmem:[#allocation5 + $0xa0] ss:$16 sps:$4 sm:$0xff]  }
  0x55   :  { %v3932_v23 = vld [vmem:[#allocation5 + $0xa8] ss:$16 sps:$4 sm:$0xff]   ;;  %v3933_v24 = vld [vmem:[#allocation5 + $0xc4] ss:$16 sps:$4 sm:$0xff]   ;;  %v3935_v25 = vld [vmem:[#allocation5 + $0xcc] ss:$16 sps:$4 sm:$0xff]  }
  0x56   :  { %v3937_v26 = vld [vmem:[#allocation5 + $0xc0] ss:$16 sps:$4 sm:$0xff]   ;;  %v3938_v27 = vld [vmem:[#allocation5 + $0xc8] ss:$16 sps:$4 sm:$0xff]   ;;  %v3939_v28 = vld [vmem:[#allocation5 + $0xe4] ss:$16 sps:$4 sm:$0xff]  }
  0x57   :  { %1730 = vmatpush1.bf16.msra.mxu0 %v3913_v10  ;;  %1894 = vmatpush1.bf16.msra.mxu1 %v3914_v11  ;;  %v3941_v29 = vld [vmem:[#allocation5 + $0xec] ss:$16 sps:$4 sm:$0xff]   ;;  %v3943_v30 = vld [vmem:[#allocation5 + $0xe0] ss:$16 sps:$4 sm:$0xff]   ;;  %v3944_v31 = vld [vmem:[#allocation5 + $0xe8] ss:$16 sps:$4 sm:$0xff]  }
  0x58   :  { %1731 = vmatprep.subr.bf16.mxu0 %v3915_v12  ;;  %1895 = vmatprep.subr.bf16.mxu1 %v3917_v13  ;;  %v3945_v32 = vld [vmem:[#allocation5 + $0x104] ss:$16 sps:$4 sm:$0xff]   ;;  %v3947_v33 = vld [vmem:[#allocation5 + $0x10c] ss:$16 sps:$4 sm:$0xff]   ;;  %v3949_v34 = vld [vmem:[#allocation5 + $0x100] ss:$16 sps:$4 sm:$0xff]  }
  0x59   :  { %v3950_v35 = vld [vmem:[#allocation5 + $0x108] ss:$16 sps:$4 sm:$0xff]   ;;  %v3951_v36 = vld [vmem:[#allocation5 + $0x124] ss:$16 sps:$4 sm:$0xff]   ;;  %v3953_v37 = vld [vmem:[#allocation5 + $0x12c] ss:$16 sps:$4 sm:$0xff]  }
  0x5a   :  { %v4639_v39 = vmov 1966171168   ;;  %v3955_v41 = vld [vmem:[#allocation5 + $0x120] ss:$16 sps:$4 sm:$0xff]   ;;  %v3956_v42 = vld [vmem:[#allocation5 + $0x128] ss:$16 sps:$4 sm:$0xff]  }
  0x5b   :  { %1732 = vmatpush1.bf16.msra.mxu0 %v3919_v14  ;;  %1896 = vmatpush1.bf16.msra.mxu1 %v3920_v15  ;;  %v374_v40 = vunpack.c.l.s4 %v4639_v39  ;;  %v3957_v43 = vld [vmem:[#allocation5 + $0x144] ss:$16 sps:$4 sm:$0xff]   ;;  %v3959_v44 = vld [vmem:[#allocation5 + $0x14c] ss:$16 sps:$4 sm:$0xff]   ;;  %v4742_v45 = vshrl.u32 %v345_v38, 7  ;;  %s4640_s9 = smov [#allocation10]  }
  0x5c   :  { %1733 = vmatprep.subr.bf16.mxu0 %v3921_v16  ;;  %1897 = vmatprep.subr.bf16.mxu1 %v3923_v17  ;;  %v3961_v47 = vld [vmem:[#allocation5 + $0x140] ss:$16 sps:$4 sm:$0xff]   ;;  %v3962_v48 = vld [vmem:[#allocation5 + $0x148] ss:$16 sps:$4 sm:$0xff]   ;;  %v3963_v49 = vld [vmem:[#allocation5 + $0x164] ss:$16 sps:$4 sm:$0xff]  }
  0x5d   :  { %v375_v46 = vunpack.c.0.s8 %v374_v40  ;;  %v3965_v50 = vld [vmem:[#allocation5 + $0x16c] ss:$16 sps:$4 sm:$0xff]   ;;  %v3967_v51 = vld [vmem:[#allocation5 + $0x160] ss:$16 sps:$4 sm:$0xff]   ;;  %v3968_v52 = vld [vmem:[#allocation5 + $0x168] ss:$16 sps:$4 sm:$0xff]  }
  0x5e   :  { %v3993_v54 = vld [vmem:[#allocation2] ss:$8 sps:$4 sm:$0xff]   ;;  %v3995_v55 = vld [vmem:[#allocation2 + $0x10] ss:$8 sps:$4 sm:$0xff]   ;;  %v3969_v56 = vld [vmem:[#allocation5 + $0x184] ss:$16 sps:$4 sm:$0xff]  }
  0x5f   :  { %1734 = vmatpush1.bf16.msra.mxu0 %v3925_v18  ;;  %1898 = vmatpush1.bf16.msra.mxu1 %v3926_v19  ;;  %v4745_v53 = vsub.s32 %v375_v46, %v4742_v45  ;;  %v3971_v57 = vld [vmem:[#allocation5 + $0x18c] ss:$16 sps:$4 sm:$0xff]   ;;  %v3973_v60 = vld [vmem:[#allocation5 + $0x180] ss:$16 sps:$4 sm:$0xff]   ;;  %v3974_v61 = vld [vmem:[#allocation5 + $0x188] ss:$16 sps:$4 sm:$0xff]  }
  0x60   :  { %1735 = vmatprep.subr.bf16.mxu0 %v3927_v20  ;;  %1899 = vmatprep.subr.bf16.mxu1 %v3929_v21  ;;  %v3975_v63 = vld [vmem:[#allocation5 + $0x1a4] ss:$16 sps:$4 sm:$0xff]   ;;  %v3977_v0 = vld [vmem:[#allocation5 + $0x1ac] ss:$16 sps:$4 sm:$0xff]   ;;  %v3979_v2 = vld [vmem:[#allocation5 + $0x1a0] ss:$16 sps:$4 sm:$0xff]  }
  0x61   :  { %v379_v58 = vrot.slane %v3993_v54, %v4745_v53  ;;  %v393_v59 = vrot.slane %v3995_v55, %v4745_v53  ;;  %v3980_v3 = vld [vmem:[#allocation5 + $0x1a8] ss:$16 sps:$4 sm:$0xff]   ;;  %v3981_v4 = vld [vmem:[#allocation5 + $0x1c4] ss:$16 sps:$4 sm:$0xff]   ;;  %v3983_v5 = vld [vmem:[#allocation5 + $0x1cc] ss:$16 sps:$4 sm:$0xff]  }
  0x62   :  { %v3985_v6 = vld [vmem:[#allocation5 + $0x1c0] ss:$16 sps:$4 sm:$0xff]   ;;  %v3986_v7 = vld [vmem:[#allocation5 + $0x1c8] ss:$16 sps:$4 sm:$0xff]   ;;  %v3987_v8 = vld [vmem:[#allocation5 + $0x1e4] ss:$16 sps:$4 sm:$0xff]  }
  0x63   :  { %1736 = vmatpush1.bf16.msra.mxu0 %v3931_v22  ;;  %1900 = vmatpush1.bf16.msra.mxu1 %v3932_v23  ;;  %v402_v62 = vcombine.high %v379_v58, %v393_v59  ;;  %v3989_v9 = vld [vmem:[#allocation5 + $0x1ec] ss:$16 sps:$4 sm:$0xff]   ;;  %v401_v10 = vcombine.low %v379_v58, %v393_v59  ;;  %v3991_v11 = vld [vmem:[#allocation5 + $0x1e0] ss:$16 sps:$4 sm:$0xff]   ;;  %v3992_v12 = vld [vmem:[#allocation5 + $0x1e8] ss:$16 sps:$4 sm:$0xff]  }
  0x64   :  { %1737 = vmatprep.subr.bf16.mxu0 %v3933_v24  ;;  %1901 = vmatprep.subr.bf16.mxu1 %v3935_v25  ;;  %v3999_v13 = vld [vmem:[#allocation5 + $0x204] ss:$16 sps:$4 sm:$0xff]   ;;  %v4002_v14 = vld [vmem:[#allocation5 + $0x20c] ss:$16 sps:$4 sm:$0xff]   ;;  %v3997_v16 = vld [vmem:[#allocation5 + $0x200] ss:$16 sps:$4 sm:$0xff]  }
  0x65   :  { %v425_v1 = vrot.slane %v402_v62, %v4745_v53  ;;  %v4751_v15 = vrot.slane %v401_v10, %v4745_v53  ;;  %v4000_v17 = vld [vmem:[#allocation5 + $0x208] ss:$16 sps:$4 sm:$0xff]   ;;  %v4005_v18 = vld [vmem:[#allocation5 + $0x224] ss:$16 sps:$4 sm:$0xff]   ;;  %v4008_v19 = vld [vmem:[#allocation5 + $0x22c] ss:$16 sps:$4 sm:$0xff]  }
  0x66   :  { %v4003_v21 = vld [vmem:[#allocation5 + $0x220] ss:$16 sps:$4 sm:$0xff]   ;;  %v4006_v22 = vld [vmem:[#allocation5 + $0x228] ss:$16 sps:$4 sm:$0xff]   ;;  %v4011_v23 = vld [vmem:[#allocation5 + $0x244] ss:$16 sps:$4 sm:$0xff]  }
  0x67   :  { %1738 = vmatpush1.bf16.msra.mxu0 %v3937_v26  ;;  %1902 = vmatpush1.bf16.msra.mxu1 %v3938_v27  ;;  %v435_v20 = vcombine.high %v425_v1, %v425_v1  ;;  %v4014_v24 = vld [vmem:[#allocation5 + $0x24c] ss:$16 sps:$4 sm:$0xff]   ;;  %v4009_v25 = vld [vmem:[#allocation5 + $0x240] ss:$16 sps:$4 sm:$0xff]   ;;  %v4012_v26 = vld [vmem:[#allocation5 + $0x248] ss:$16 sps:$4 sm:$0xff]  }
  0x68   :  { %1739 = vmatprep.subr.bf16.mxu0 %v3939_v28  ;;  %1903 = vmatprep.subr.bf16.mxu1 %v3941_v29  ;;  %v4017_v27 = vld [vmem:[#allocation5 + $0x264] ss:$16 sps:$4 sm:$0xff]   ;;  %v4020_v28 = vld [vmem:[#allocation5 + $0x26c] ss:$16 sps:$4 sm:$0xff]   ;;  %v4015_v29 = vld [vmem:[#allocation5 + $0x260] ss:$16 sps:$4 sm:$0xff]  }
  0x69   :  { %1757 = vmatprep.mubr.bf16.mxu0 %v425_v1  ;;  %1921 = vmatprep.mubr.bf16.mxu1 %v425_v1  ;;  %v4030_v38 = vld [vmem:[#allocation5 + $0x2a8] ss:$16 sps:$4 sm:$0xff]   ;;  %v4035_v39 = vld [vmem:[#allocation5 + $0x2c4] ss:$16 sps:$4 sm:$0xff]   ;;  %v4038_v40 = vld [vmem:[#allocation5 + $0x2cc] ss:$16 sps:$4 sm:$0xff]  }
  0x6a   :  { %v4039_v46 = vld [vmem:[#allocation5 + $0x2e0] ss:$16 sps:$4 sm:$0xff]   ;;  %v4056_v54 = vld [vmem:[#allocation5 + $0x32c] ss:$16 sps:$4 sm:$0xff]   ;;  %v4071_v1 = vld [vmem:[#allocation5 + $0x384] ss:$16 sps:$4 sm:$0xff]  }
  0x6b   :  { %1740 = vmatpush1.bf16.msra.mxu0 %v3943_v30  ;;  %1904 = vmatpush1.bf16.msra.mxu1 %v3944_v31  ;;  %v4018_v30 = vld [vmem:[#allocation5 + $0x268] ss:$16 sps:$4 sm:$0xff]   ;;  %v4023_v31 = vld [vmem:[#allocation5 + $0x284] ss:$16 sps:$4 sm:$0xff]   ;;  %v4051_v55 = vld [vmem:[#allocation5 + $0x320] ss:$16 sps:$4 sm:$0xff]  }
  0x6c   :  { %1741 = vmatprep.subr.bf16.mxu0 %v3945_v32  ;;  %1905 = vmatprep.subr.bf16.mxu1 %v3947_v33  ;;  %v4026_v32 = vld [vmem:[#allocation5 + $0x28c] ss:$16 sps:$4 sm:$0xff]   ;;  %v4021_v33 = vld [vmem:[#allocation5 + $0x280] ss:$16 sps:$4 sm:$0xff]   ;;  %s3373_s10 = sshll.u32 %s4640_s9, 4  ;;  %s3374_s10 = int_to_ptr.vmem [resolvable:$true] %s3373_s10 }
  0x6d   :  { %v4062_v58 = vld [vmem:[#allocation5 + $0x34c] ss:$16 sps:$4 sm:$0xff]   ;;  %v4057_v59 = vld [vmem:[#allocation5 + $0x340] ss:$16 sps:$4 sm:$0xff]   ;;  %s4599_s13 = scalar_lea.vmem %s3374_s10, 128  ;;  %p4604_p5 = scmp.lt.s32.totalorder %s3374_s10, %s3374_s10 }
  0x6e   :  { %v4068_v62 = vld [vmem:[#allocation5 + $0x36c] ss:$16 sps:$4 sm:$0xff]   ;;  %p4600_p4 = scmp.ne.s32.totalorder %s3374_s10, %s4599_s13  ;;  %p4605_p6 = scmp.lt.s32.totalorder %s4599_s13, %s4599_s13 }
  0x6f   :  { %1742 = vmatpush1.bf16.msra.mxu0 %v3949_v34  ;;  %1906 = vmatpush1.bf16.msra.mxu1 %v3950_v35  ;;  %v4024_v34 = vld [vmem:[#allocation5 + $0x288] ss:$16 sps:$4 sm:$0xff]   ;;  %v4029_v35 = vld [vmem:[#allocation5 + $0x2a4] ss:$16 sps:$4 sm:$0xff]   ;;  %v4086_v10 = vld [vmem:[#allocation5 + $0x3cc] ss:$16 sps:$4 sm:$0xff]  }
  0x70   :  { %1743 = vmatprep.subr.bf16.mxu0 %v3951_v36  ;;  %1907 = vmatprep.subr.bf16.mxu1 %v3953_v37  ;;  %v4032_v36 = vld [vmem:[#allocation5 + $0x2ac] ss:$16 sps:$4 sm:$0xff]   ;;  %v4027_v37 = vld [vmem:[#allocation5 + $0x2a0] ss:$16 sps:$4 sm:$0xff]   ;;  %p4606_p7 = por %p4605_p6, %p4604_p5 }
  0x72   :  { %p4607_p8 = pnand %p4606_p7, %p4600_p4 }
  0x73   :  { %1744 = vmatpush1.bf16.msra.mxu0 %v3955_v41  ;;  %1908 = vmatpush1.bf16.msra.mxu1 %v3956_v42  ;;  %v4033_v41 = vld [vmem:[#allocation5 + $0x2c0] ss:$16 sps:$4 sm:$0xff]   ;;  %v4036_v42 = vld [vmem:[#allocation5 + $0x2c8] ss:$16 sps:$4 sm:$0xff]  }
  0x74   :  { %1745 = vmatprep.subr.bf16.mxu0 %v3957_v43  ;;  %1909 = vmatprep.subr.bf16.mxu1 %v3959_v44  ;;  %v4041_v43 = vld [vmem:[#allocation5 + $0x2e4] ss:$16 sps:$4 sm:$0xff]   ;;  %v4044_v44 = vld [vmem:[#allocation5 + $0x2ec] ss:$16 sps:$4 sm:$0xff]  }
  0x77   :  { %1746 = vmatpush1.bf16.msra.mxu0 %v3961_v47  ;;  %1910 = vmatpush1.bf16.msra.mxu1 %v3962_v48  ;;  %v4042_v47 = vld [vmem:[#allocation5 + $0x2e8] ss:$16 sps:$4 sm:$0xff]   ;;  %v4047_v48 = vld [vmem:[#allocation5 + $0x304] ss:$16 sps:$4 sm:$0xff]  }
  0x78   :  { %1747 = vmatprep.subr.bf16.mxu0 %v3963_v49  ;;  %1911 = vmatprep.subr.bf16.mxu1 %v3965_v50  ;;  %v4050_v49 = vld [vmem:[#allocation5 + $0x30c] ss:$16 sps:$4 sm:$0xff]   ;;  %v4045_v50 = vld [vmem:[#allocation5 + $0x300] ss:$16 sps:$4 sm:$0xff]  }
  0x7b   :  { %1748 = vmatpush1.bf16.msra.mxu0 %v3967_v51  ;;  %1912 = vmatpush1.bf16.msra.mxu1 %v3968_v52  ;;  %v4048_v51 = vld [vmem:[#allocation5 + $0x308] ss:$16 sps:$4 sm:$0xff]   ;;  %v4053_v52 = vld [vmem:[#allocation5 + $0x324] ss:$16 sps:$4 sm:$0xff]  }
  0x7c   :  { %1749 = vmatprep.subr.bf16.mxu0 %v3969_v56  ;;  %1913 = vmatprep.subr.bf16.mxu1 %v3971_v57  ;;  %v4054_v56 = vld [vmem:[#allocation5 + $0x328] ss:$16 sps:$4 sm:$0xff]   ;;  %v4059_v57 = vld [vmem:[#allocation5 + $0x344] ss:$16 sps:$4 sm:$0xff]  }
  0x7f   :  { %1750 = vmatpush1.bf16.msra.mxu0 %v3973_v60  ;;  %1914 = vmatpush1.bf16.msra.mxu1 %v3974_v61  ;;  %v4060_v60 = vld [vmem:[#allocation5 + $0x348] ss:$16 sps:$4 sm:$0xff]   ;;  %v4065_v61 = vld [vmem:[#allocation5 + $0x364] ss:$16 sps:$4 sm:$0xff]  }
  0x80   :  { %1751 = vmatprep.subr.bf16.mxu0 %v3975_v63  ;;  %1915 = vmatprep.subr.bf16.mxu1 %v3977_v0  ;;  %v4063_v63 = vld [vmem:[#allocation5 + $0x360] ss:$16 sps:$4 sm:$0xff]   ;;  %v4066_v0 = vld [vmem:[#allocation5 + $0x368] ss:$16 sps:$4 sm:$0xff]  }
  0x83   :  { %1752 = vmatpush1.bf16.msra.mxu0 %v3979_v2  ;;  %1916 = vmatpush1.bf16.msra.mxu1 %v3980_v3  ;;  %v4074_v2 = vld [vmem:[#allocation5 + $0x38c] ss:$16 sps:$4 sm:$0xff]   ;;  %v4069_v3 = vld [vmem:[#allocation5 + $0x380] ss:$16 sps:$4 sm:$0xff]  }
  0x84   :  { %1753 = vmatprep.subr.bf16.mxu0 %v3981_v4  ;;  %1917 = vmatprep.subr.bf16.mxu1 %v3983_v5  ;;  %v4072_v4 = vld [vmem:[#allocation5 + $0x388] ss:$16 sps:$4 sm:$0xff]   ;;  %v4077_v5 = vld [vmem:[#allocation5 + $0x3a4] ss:$16 sps:$4 sm:$0xff]  }
  0x87   :  { %1754 = vmatpush1.bf16.msra.mxu0 %v3985_v6  ;;  %1918 = vmatpush1.bf16.msra.mxu1 %v3986_v7  ;;  %v4080_v6 = vld [vmem:[#allocation5 + $0x3ac] ss:$16 sps:$4 sm:$0xff]   ;;  %v4075_v7 = vld [vmem:[#allocation5 + $0x3a0] ss:$16 sps:$4 sm:$0xff]  }
  0x88   :  { %1755 = vmatprep.subr.bf16.mxu0 %v3987_v8  ;;  %1919 = vmatprep.subr.bf16.mxu1 %v3989_v9  ;;  %v4078_v8 = vld [vmem:[#allocation5 + $0x3a8] ss:$16 sps:$4 sm:$0xff]   ;;  %v4083_v9 = vld [vmem:[#allocation5 + $0x3c4] ss:$16 sps:$4 sm:$0xff]  }
  0x8b   :  { %1756 = vmatpush1.bf16.msra.mxu0 %v3991_v11  ;;  %1920 = vmatpush1.bf16.msra.mxu1 %v3992_v12  ;;  %v4081_v11 = vld [vmem:[#allocation5 + $0x3c0] ss:$16 sps:$4 sm:$0xff]   ;;  %v4084_v12 = vld [vmem:[#allocation5 + $0x3c8] ss:$16 sps:$4 sm:$0xff]  }
  0x8c   :  { %1766 = vmatprep.subr.bf16.mxu0 %v3999_v13  ;;  %1930 = vmatprep.subr.bf16.mxu1 %v4002_v14  ;;  %v4089_v13 = vld [vmem:[#allocation5 + $0x3e4] ss:$16 sps:$4 sm:$0xff]   ;;  %v4092_v14 = vld [vmem:[#allocation5 + $0x3ec] ss:$16 sps:$4 sm:$0xff]  }
  0x8e   :  { %1758 = vmatmul.mubr.bf16.vlgmr.msra.gmra.mrb[0].mxu0 %v4751_v15  ;;  %1922 = vmatmul.mubr.bf16.vlgmr.msra.gmra.mrb[0].mxu1 %v4751_v15 }
  0x8f   :  { %1767 = vmatpush1.bf16.msra.mxu0 %v3997_v16  ;;  %1931 = vmatpush1.bf16.msra.mxu1 %v4000_v17  ;;  %v4087_v16 = vld [vmem:[#allocation5 + $0x3e0] ss:$16 sps:$4 sm:$0xff]   ;;  %v4090_v17 = vld [vmem:[#allocation5 + $0x3e8] ss:$16 sps:$4 sm:$0xff]  }
  0x90   :  { %1768 = vmatprep.subr.bf16.mxu0 %v4005_v18  ;;  %1932 = vmatprep.subr.bf16.mxu1 %v4008_v19  ;;  %v4095_v18 = vld [vmem:[#allocation5 + $0x404] ss:$16 sps:$4 sm:$0xff]   ;;  %v4098_v19 = vld [vmem:[#allocation5 + $0x40c] ss:$16 sps:$4 sm:$0xff]  }
  0x91   :  { %1798 = vmatprep.mubr.bf16.mxu0 %v435_v20  ;;  %1962 = vmatprep.mubr.bf16.mxu1 %v435_v20  ;;  %v433_v20 = vcombine.high %v4751_v15, %v4751_v15 }
  0x93   :  { %1769 = vmatpush1.bf16.msra.mxu0 %v4003_v21  ;;  %1933 = vmatpush1.bf16.msra.mxu1 %v4006_v22  ;;  %v4093_v21 = vld [vmem:[#allocation5 + $0x400] ss:$16 sps:$4 sm:$0xff]   ;;  %v4096_v22 = vld [vmem:[#allocation5 + $0x408] ss:$16 sps:$4 sm:$0xff]  }
  0x94   :  { %1770 = vmatprep.subr.bf16.mxu0 %v4011_v23  ;;  %1934 = vmatprep.subr.bf16.mxu1 %v4014_v24  ;;  %v4101_v23 = vld [vmem:[#allocation5 + $0x424] ss:$16 sps:$4 sm:$0xff]   ;;  %v4104_v24 = vld [vmem:[#allocation5 + $0x42c] ss:$16 sps:$4 sm:$0xff]  }
  0x97   :  { %1771 = vmatpush1.bf16.msra.mxu0 %v4009_v25  ;;  %1935 = vmatpush1.bf16.msra.mxu1 %v4012_v26  ;;  %v4189_v25 = vld [vmem:[#allocation2 + $0x4] ss:$8 sps:$4 sm:$0xff]   ;;  %v4190_v26 = vld [vmem:[#allocation2 + $0x14] ss:$8 sps:$4 sm:$0xff]  }
  0x98   :  { %1772 = vmatprep.subr.bf16.mxu0 %v4017_v27  ;;  %1936 = vmatprep.subr.bf16.mxu1 %v4020_v28  ;;  %v4099_v27 = vld [vmem:[#allocation5 + $0x420] ss:$16 sps:$4 sm:$0xff]   ;;  %v4102_v28 = vld [vmem:[#allocation5 + $0x428] ss:$16 sps:$4 sm:$0xff]   ;;  %v4761_v15 = vrot.slane %v4190_v26, %v4745_v53 }
  0x99   :  { %v4186_v26 = vld [vmem:[#allocation5 + $0x5e8] ss:$16 sps:$4 sm:$0xff]  }
  0x9b   :  { %1773 = vmatpush1.bf16.msra.mxu0 %v4015_v29  ;;  %1937 = vmatpush1.bf16.msra.mxu1 %v4018_v30  ;;  %v4107_v29 = vld [vmem:[#allocation5 + $0x444] ss:$16 sps:$4 sm:$0xff]   ;;  %v4758_v30 = vrot.slane %v4189_v25, %v4745_v53  ;;  %v4183_v25 = vld [vmem:[#allocation5 + $0x5e0] ss:$16 sps:$4 sm:$0xff]  }
  0x9c   :  { %1774 = vmatprep.subr.bf16.mxu0 %v4023_v31  ;;  %1938 = vmatprep.subr.bf16.mxu1 %v4026_v32  ;;  %v4110_v31 = vld [vmem:[#allocation5 + $0x44c] ss:$16 sps:$4 sm:$0xff]  }
  0x9d   :  { %v404_v32 = vcombine.high %v4758_v30, %v4761_v15 }
  0x9f   :  { %1775 = vmatpush1.bf16.msra.mxu0 %v4021_v33  ;;  %1939 = vmatpush1.bf16.msra.mxu1 %v4024_v34  ;;  %v4105_v33 = vld [vmem:[#allocation5 + $0x440] ss:$16 sps:$4 sm:$0xff]   ;;  %v4108_v34 = vld [vmem:[#allocation5 + $0x448] ss:$16 sps:$4 sm:$0xff]  }
  0xa0   :  { %1776 = vmatprep.subr.bf16.mxu0 %v4029_v35  ;;  %1940 = vmatprep.subr.bf16.mxu1 %v4032_v36  ;;  %v4113_v35 = vld [vmem:[#allocation5 + $0x464] ss:$16 sps:$4 sm:$0xff]   ;;  %v4766_v36 = vrot.slane %v404_v32, %v4745_v53  ;;  %v4194_v32 = vld [vmem:[#allocation5 + $0x608] ss:$16 sps:$4 sm:$0xff]  }
  0xa3   :  { %1777 = vmatpush1.bf16.msra.mxu0 %v4027_v37  ;;  %1941 = vmatpush1.bf16.msra.mxu1 %v4030_v38  ;;  %v4116_v37 = vld [vmem:[#allocation5 + $0x46c] ss:$16 sps:$4 sm:$0xff]   ;;  %v4111_v38 = vld [vmem:[#allocation5 + $0x460] ss:$16 sps:$4 sm:$0xff]  }
  0xa4   :  { %1778 = vmatprep.subr.bf16.mxu0 %v4035_v39  ;;  %1942 = vmatprep.subr.bf16.mxu1 %v4038_v40  ;;  %v4114_v39 = vld [vmem:[#allocation5 + $0x468] ss:$16 sps:$4 sm:$0xff]   ;;  %v4119_v40 = vld [vmem:[#allocation5 + $0x484] ss:$16 sps:$4 sm:$0xff]  }
  0xa7   :  { %1779 = vmatpush1.bf16.msra.mxu0 %v4033_v41  ;;  %1943 = vmatpush1.bf16.msra.mxu1 %v4036_v42  ;;  %v4122_v41 = vld [vmem:[#allocation5 + $0x48c] ss:$16 sps:$4 sm:$0xff]   ;;  %v4117_v42 = vld [vmem:[#allocation5 + $0x480] ss:$16 sps:$4 sm:$0xff]  }
  0xa8   :  { %1780 = vmatprep.subr.bf16.mxu0 %v4041_v43  ;;  %1944 = vmatprep.subr.bf16.mxu1 %v4044_v44  ;;  %v4120_v43 = vld [vmem:[#allocation5 + $0x488] ss:$16 sps:$4 sm:$0xff]   ;;  %v4125_v44 = vld [vmem:[#allocation5 + $0x4a4] ss:$16 sps:$4 sm:$0xff]  }
  0xab   :  { %1781 = vmatpush1.bf16.msra.mxu0 %v4039_v46  ;;  %1945 = vmatpush1.bf16.msra.mxu1 %v4042_v47  ;;  %v4128_v46 = vld [vmem:[#allocation5 + $0x4ac] ss:$16 sps:$4 sm:$0xff]   ;;  %v4123_v47 = vld [vmem:[#allocation5 + $0x4a0] ss:$16 sps:$4 sm:$0xff]  }
  0xac   :  { %1782 = vmatprep.subr.bf16.mxu0 %v4047_v48  ;;  %1946 = vmatprep.subr.bf16.mxu1 %v4050_v49  ;;  %v4126_v48 = vld [vmem:[#allocation5 + $0x4a8] ss:$16 sps:$4 sm:$0xff]   ;;  %v4131_v49 = vld [vmem:[#allocation5 + $0x4c4] ss:$16 sps:$4 sm:$0xff]  }
  0xaf   :  { %1783 = vmatpush1.bf16.msra.mxu0 %v4045_v50  ;;  %1947 = vmatpush1.bf16.msra.mxu1 %v4048_v51  ;;  %v4134_v50 = vld [vmem:[#allocation5 + $0x4cc] ss:$16 sps:$4 sm:$0xff]   ;;  %v4129_v51 = vld [vmem:[#allocation5 + $0x4c0] ss:$16 sps:$4 sm:$0xff]  }
  0xb0   :  { %1784 = vmatprep.subr.bf16.mxu0 %v4053_v52  ;;  %1948 = vmatprep.subr.bf16.mxu1 %v4056_v54  ;;  %v4132_v52 = vld [vmem:[#allocation5 + $0x4c8] ss:$16 sps:$4 sm:$0xff]   ;;  %v4137_v54 = vld [vmem:[#allocation5 + $0x4e4] ss:$16 sps:$4 sm:$0xff]  }
  0xb3   :  { %1785 = vmatpush1.bf16.msra.mxu0 %v4051_v55  ;;  %1949 = vmatpush1.bf16.msra.mxu1 %v4054_v56  ;;  %v4140_v55 = vld [vmem:[#allocation5 + $0x4ec] ss:$16 sps:$4 sm:$0xff]   ;;  %v4135_v56 = vld [vmem:[#allocation5 + $0x4e0] ss:$16 sps:$4 sm:$0xff]  }
  0xb4   :  { %1786 = vmatprep.subr.bf16.mxu0 %v4059_v57  ;;  %1950 = vmatprep.subr.bf16.mxu1 %v4062_v58  ;;  %v4138_v57 = vld [vmem:[#allocation5 + $0x4e8] ss:$16 sps:$4 sm:$0xff]   ;;  %v4143_v58 = vld [vmem:[#allocation5 + $0x504] ss:$16 sps:$4 sm:$0xff]  }
  0xb7   :  { %1787 = vmatpush1.bf16.msra.mxu0 %v4057_v59  ;;  %1951 = vmatpush1.bf16.msra.mxu1 %v4060_v60  ;;  %v4146_v59 = vld [vmem:[#allocation5 + $0x50c] ss:$16 sps:$4 sm:$0xff]   ;;  %v4141_v60 = vld [vmem:[#allocation5 + $0x500] ss:$16 sps:$4 sm:$0xff]  }
  0xb8   :  { %1788 = vmatprep.subr.bf16.mxu0 %v4065_v61  ;;  %1952 = vmatprep.subr.bf16.mxu1 %v4068_v62  ;;  %v4144_v61 = vld [vmem:[#allocation5 + $0x508] ss:$16 sps:$4 sm:$0xff]   ;;  %v4149_v62 = vld [vmem:[#allocation5 + $0x524] ss:$16 sps:$4 sm:$0xff]  }
  0xbb   :  { %1789 = vmatpush1.bf16.msra.mxu0 %v4063_v63  ;;  %1953 = vmatpush1.bf16.msra.mxu1 %v4066_v0  ;;  %v4152_v63 = vld [vmem:[#allocation5 + $0x52c] ss:$16 sps:$4 sm:$0xff]   ;;  %v4147_v0 = vld [vmem:[#allocation5 + $0x520] ss:$16 sps:$4 sm:$0xff]  }
  0xbc   :  { %1790 = vmatprep.subr.bf16.mxu0 %v4071_v1  ;;  %1954 = vmatprep.subr.bf16.mxu1 %v4074_v2  ;;  %v4150_v1 = vld [vmem:[#allocation5 + $0x528] ss:$16 sps:$4 sm:$0xff]   ;;  %v4155_v2 = vld [vmem:[#allocation5 + $0x544] ss:$16 sps:$4 sm:$0xff]  }
  0xbf   :  { %1791 = vmatpush1.bf16.msra.mxu0 %v4069_v3  ;;  %1955 = vmatpush1.bf16.msra.mxu1 %v4072_v4  ;;  %v4158_v3 = vld [vmem:[#allocation5 + $0x54c] ss:$16 sps:$4 sm:$0xff]   ;;  %v4153_v4 = vld [vmem:[#allocation5 + $0x540] ss:$16 sps:$4 sm:$0xff]  }
  0xc0   :  { %1792 = vmatprep.subr.bf16.mxu0 %v4077_v5  ;;  %1956 = vmatprep.subr.bf16.mxu1 %v4080_v6  ;;  %v4156_v5 = vld [vmem:[#allocation5 + $0x548] ss:$16 sps:$4 sm:$0xff]   ;;  %v4161_v6 = vld [vmem:[#allocation5 + $0x564] ss:$16 sps:$4 sm:$0xff]  }
  0xc3   :  { %1793 = vmatpush1.bf16.msra.mxu0 %v4075_v7  ;;  %1957 = vmatpush1.bf16.msra.mxu1 %v4078_v8  ;;  %v4164_v7 = vld [vmem:[#allocation5 + $0x56c] ss:$16 sps:$4 sm:$0xff]   ;;  %v4159_v8 = vld [vmem:[#allocation5 + $0x560] ss:$16 sps:$4 sm:$0xff]  }
  0xc4   :  { %1794 = vmatprep.subr.bf16.mxu0 %v4083_v9  ;;  %1958 = vmatprep.subr.bf16.mxu1 %v4086_v10  ;;  %v4162_v9 = vld [vmem:[#allocation5 + $0x568] ss:$16 sps:$4 sm:$0xff]   ;;  %v4167_v10 = vld [vmem:[#allocation5 + $0x584] ss:$16 sps:$4 sm:$0xff]  }
  0xc7   :  { %1795 = vmatpush1.bf16.msra.mxu0 %v4081_v11  ;;  %1959 = vmatpush1.bf16.msra.mxu1 %v4084_v12  ;;  %v4170_v11 = vld [vmem:[#allocation5 + $0x58c] ss:$16 sps:$4 sm:$0xff]   ;;  %v4165_v12 = vld [vmem:[#allocation5 + $0x580] ss:$16 sps:$4 sm:$0xff]  }
  0xc8   :  { %1796 = vmatprep.subr.bf16.mxu0 %v4089_v13  ;;  %1960 = vmatprep.subr.bf16.mxu1 %v4092_v14  ;;  %v4168_v13 = vld [vmem:[#allocation5 + $0x588] ss:$16 sps:$4 sm:$0xff]   ;;  %v4173_v14 = vld [vmem:[#allocation5 + $0x5a4] ss:$16 sps:$4 sm:$0xff]  }
  0xcb   :  { %1797 = vmatpush1.bf16.msra.mxu0 %v4087_v16  ;;  %1961 = vmatpush1.bf16.msra.mxu1 %v4090_v17  ;;  %v4176_v16 = vld [vmem:[#allocation5 + $0x5ac] ss:$16 sps:$4 sm:$0xff]   ;;  %v4171_v17 = vld [vmem:[#allocation5 + $0x5a0] ss:$16 sps:$4 sm:$0xff]  }
  0xcc   :  { %1807 = vmatprep.subr.bf16.mxu0 %v4095_v18  ;;  %1971 = vmatprep.subr.bf16.mxu1 %v4098_v19  ;;  %v4174_v18 = vld [vmem:[#allocation5 + $0x5a8] ss:$16 sps:$4 sm:$0xff]   ;;  %v4179_v19 = vld [vmem:[#allocation5 + $0x5c4] ss:$16 sps:$4 sm:$0xff]  }
  0xce   :  { %1799 = vmatmul.mubr.bf16.vlgmr.msra.gmra.mrb[0].mxu0 %v433_v20  ;;  %1963 = vmatmul.mubr.bf16.vlgmr.msra.gmra.mrb[0].mxu1 %v433_v20  ;;  %v4182_v20 = vld [vmem:[#allocation5 + $0x5cc] ss:$16 sps:$4 sm:$0xff]  }
  0xcf   :  { %1808 = vmatpush1.bf16.msra.mxu0 %v4093_v21  ;;  %1972 = vmatpush1.bf16.msra.mxu1 %v4096_v22  ;;  %v4177_v21 = vld [vmem:[#allocation5 + $0x5c0] ss:$16 sps:$4 sm:$0xff]   ;;  %v4180_v22 = vld [vmem:[#allocation5 + $0x5c8] ss:$16 sps:$4 sm:$0xff]  }
  0xd0   :  { %1809 = vmatprep.subr.bf16.mxu0 %v4101_v23  ;;  %1973 = vmatprep.subr.bf16.mxu1 %v4104_v24  ;;  %v4185_v23 = vld [vmem:[#allocation5 + $0x5e4] ss:$16 sps:$4 sm:$0xff]   ;;  %v4188_v24 = vld [vmem:[#allocation5 + $0x5ec] ss:$16 sps:$4 sm:$0xff]  }
  0xd1   :  { %1839 = vmatprep.mubr.bf16.mxu0 %v4766_v36  ;;  %2003 = vmatprep.mubr.bf16.mxu1 %v4766_v36 }
  0xd3   :  { %1810 = vmatpush1.bf16.msra.mxu0 %v4099_v27  ;;  %1974 = vmatpush1.bf16.msra.mxu1 %v4102_v28  ;;  %v403_v27 = vcombine.low %v4758_v30, %v4761_v15  ;;  %v4193_v28 = vld [vmem:[#allocation5 + $0x604] ss:$16 sps:$4 sm:$0xff]   ;;  %v436_v30 = vcombine.high %v4766_v36, %v4766_v36  ;;  %v4197_v15 = vld [vmem:[#allocation5 + $0x620] ss:$16 sps:$4 sm:$0xff]   ;;  %v4214_v36 = vld [vmem:[#allocation5 + $0x66c] ss:$16 sps:$4 sm:$0xff]  }
  0xd4   :  { %1811 = vmatprep.subr.bf16.mxu0 %v4107_v29  ;;  %1975 = vmatprep.subr.bf16.mxu1 %v4110_v31  ;;  %v4196_v29 = vld [vmem:[#allocation5 + $0x60c] ss:$16 sps:$4 sm:$0xff]   ;;  %v4191_v31 = vld [vmem:[#allocation5 + $0x600] ss:$16 sps:$4 sm:$0xff]  }
  0xd7   :  { %1812 = vmatpush1.bf16.msra.mxu0 %v4105_v33  ;;  %1976 = vmatpush1.bf16.msra.mxu1 %v4108_v34  ;;  %v4773_v33 = vrot.slane %v403_v27, %v4745_v53  ;;  %v4199_v34 = vld [vmem:[#allocation5 + $0x624] ss:$16 sps:$4 sm:$0xff]   ;;  %v4208_v53 = vld [vmem:[#allocation5 + $0x64c] ss:$16 sps:$4 sm:$0xff]  }
  0xd8   :  { %1813 = vmatprep.subr.bf16.mxu0 %v4113_v35  ;;  %1977 = vmatprep.subr.bf16.mxu1 %v4116_v37  ;;  %v4202_v35 = vld [vmem:[#allocation5 + $0x62c] ss:$16 sps:$4 sm:$0xff]   ;;  %v4200_v37 = vld [vmem:[#allocation5 + $0x628] ss:$16 sps:$4 sm:$0xff]   ;;  %v4283_v27 = vld [vmem:[#allocation5 + $0x7e4] ss:$16 sps:$4 sm:$0xff]  }
  0xdb   :  { %1814 = vmatpush1.bf16.msra.mxu0 %v4111_v38  ;;  %1978 = vmatpush1.bf16.msra.mxu1 %v4114_v39  ;;  %v4205_v38 = vld [vmem:[#allocation5 + $0x644] ss:$16 sps:$4 sm:$0xff]   ;;  %v4203_v39 = vld [vmem:[#allocation5 + $0x640] ss:$16 sps:$4 sm:$0xff]  }
  0xdc   :  { %1815 = vmatprep.subr.bf16.mxu0 %v4119_v40  ;;  %1979 = vmatprep.subr.bf16.mxu1 %v4122_v41  ;;  %v4206_v40 = vld [vmem:[#allocation5 + $0x648] ss:$16 sps:$4 sm:$0xff]   ;;  %v4211_v41 = vld [vmem:[#allocation5 + $0x664] ss:$16 sps:$4 sm:$0xff]  }
  0xdf   :  { %1816 = vmatpush1.bf16.msra.mxu0 %v4117_v42  ;;  %1980 = vmatpush1.bf16.msra.mxu1 %v4120_v43  ;;  %v4209_v42 = vld [vmem:[#allocation5 + $0x660] ss:$16 sps:$4 sm:$0xff]   ;;  %v4212_v43 = vld [vmem:[#allocation5 + $0x668] ss:$16 sps:$4 sm:$0xff]  }
  0xe0   :  { %1817 = vmatprep.subr.bf16.mxu0 %v4125_v44  ;;  %1981 = vmatprep.subr.bf16.mxu1 %v4128_v46  ;;  %v4217_v44 = vld [vmem:[#allocation5 + $0x684] ss:$16 sps:$4 sm:$0xff]   ;;  %v4220_v46 = vld [vmem:[#allocation5 + $0x68c] ss:$16 sps:$4 sm:$0xff]  }
  0xe3   :  { %1818 = vmatpush1.bf16.msra.mxu0 %v4123_v47  ;;  %1982 = vmatpush1.bf16.msra.mxu1 %v4126_v48  ;;  %v4215_v47 = vld [vmem:[#allocation5 + $0x680] ss:$16 sps:$4 sm:$0xff]   ;;  %v4218_v48 = vld [vmem:[#allocation5 + $0x688] ss:$16 sps:$4 sm:$0xff]  }
  0xe4   :  { %1819 = vmatprep.subr.bf16.mxu0 %v4131_v49  ;;  %1983 = vmatprep.subr.bf16.mxu1 %v4134_v50  ;;  %v4223_v49 = vld [vmem:[#allocation5 + $0x6a4] ss:$16 sps:$4 sm:$0xff]   ;;  %v4226_v50 = vld [vmem:[#allocation5 + $0x6ac] ss:$16 sps:$4 sm:$0xff]  }
  0xe7   :  { %1820 = vmatpush1.bf16.msra.mxu0 %v4129_v51  ;;  %1984 = vmatpush1.bf16.msra.mxu1 %v4132_v52  ;;  %v4221_v51 = vld [vmem:[#allocation5 + $0x6a0] ss:$16 sps:$4 sm:$0xff]   ;;  %v4224_v52 = vld [vmem:[#allocation5 + $0x6a8] ss:$16 sps:$4 sm:$0xff]  }
  0xe8   :  { %1821 = vmatprep.subr.bf16.mxu0 %v4137_v54  ;;  %1985 = vmatprep.subr.bf16.mxu1 %v4140_v55  ;;  %v4229_v54 = vld [vmem:[#allocation5 + $0x6c4] ss:$16 sps:$4 sm:$0xff]   ;;  %v4232_v55 = vld [vmem:[#allocation5 + $0x6cc] ss:$16 sps:$4 sm:$0xff]  }
  0xeb   :  { %1822 = vmatpush1.bf16.msra.mxu0 %v4135_v56  ;;  %1986 = vmatpush1.bf16.msra.mxu1 %v4138_v57  ;;  %v4227_v56 = vld [vmem:[#allocation5 + $0x6c0] ss:$16 sps:$4 sm:$0xff]   ;;  %v4230_v57 = vld [vmem:[#allocation5 + $0x6c8] ss:$16 sps:$4 sm:$0xff]  }
  0xec   :  { %1823 = vmatprep.subr.bf16.mxu0 %v4143_v58  ;;  %1987 = vmatprep.subr.bf16.mxu1 %v4146_v59  ;;  %v4235_v58 = vld [vmem:[#allocation5 + $0x6e4] ss:$16 sps:$4 sm:$0xff]   ;;  %v4238_v59 = vld [vmem:[#allocation5 + $0x6ec] ss:$16 sps:$4 sm:$0xff]  }
  0xef   :  { %1824 = vmatpush1.bf16.msra.mxu0 %v4141_v60  ;;  %1988 = vmatpush1.bf16.msra.mxu1 %v4144_v61  ;;  %v4233_v60 = vld [vmem:[#allocation5 + $0x6e0] ss:$16 sps:$4 sm:$0xff]   ;;  %v4236_v61 = vld [vmem:[#allocation5 + $0x6e8] ss:$16 sps:$4 sm:$0xff]  }
  0xf0   :  { %1825 = vmatprep.subr.bf16.mxu0 %v4149_v62  ;;  %1989 = vmatprep.subr.bf16.mxu1 %v4152_v63  ;;  %v4241_v62 = vld [vmem:[#allocation5 + $0x704] ss:$16 sps:$4 sm:$0xff]   ;;  %v4244_v63 = vld [vmem:[#allocation5 + $0x70c] ss:$16 sps:$4 sm:$0xff]  }
  0xf3   :  { %1826 = vmatpush1.bf16.msra.mxu0 %v4147_v0  ;;  %1990 = vmatpush1.bf16.msra.mxu1 %v4150_v1  ;;  %v4239_v0 = vld [vmem:[#allocation5 + $0x700] ss:$16 sps:$4 sm:$0xff]   ;;  %v4242_v1 = vld [vmem:[#allocation5 + $0x708] ss:$16 sps:$4 sm:$0xff]  }
  0xf4   :  { %1827 = vmatprep.subr.bf16.mxu0 %v4155_v2  ;;  %1991 = vmatprep.subr.bf16.mxu1 %v4158_v3  ;;  %v4247_v2 = vld [vmem:[#allocation5 + $0x724] ss:$16 sps:$4 sm:$0xff]   ;;  %v4250_v3 = vld [vmem:[#allocation5 + $0x72c] ss:$16 sps:$4 sm:$0xff]  }
  0xf7   :  { %1828 = vmatpush1.bf16.msra.mxu0 %v4153_v4  ;;  %1992 = vmatpush1.bf16.msra.mxu1 %v4156_v5  ;;  %v4245_v4 = vld [vmem:[#allocation5 + $0x720] ss:$16 sps:$4 sm:$0xff]   ;;  %v4248_v5 = vld [vmem:[#allocation5 + $0x728] ss:$16 sps:$4 sm:$0xff]  }
  0xf8   :  { %1829 = vmatprep.subr.bf16.mxu0 %v4161_v6  ;;  %1993 = vmatprep.subr.bf16.mxu1 %v4164_v7  ;;  %v4253_v6 = vld [vmem:[#allocation5 + $0x744] ss:$16 sps:$4 sm:$0xff]   ;;  %v4256_v7 = vld [vmem:[#allocation5 + $0x74c] ss:$16 sps:$4 sm:$0xff]  }
  0xfb   :  { %1830 = vmatpush1.bf16.msra.mxu0 %v4159_v8  ;;  %1994 = vmatpush1.bf16.msra.mxu1 %v4162_v9  ;;  %v4251_v8 = vld [vmem:[#allocation5 + $0x740] ss:$16 sps:$4 sm:$0xff]   ;;  %v4254_v9 = vld [vmem:[#allocation5 + $0x748] ss:$16 sps:$4 sm:$0xff]  }
  0xfc   :  { %1831 = vmatprep.subr.bf16.mxu0 %v4167_v10  ;;  %1995 = vmatprep.subr.bf16.mxu1 %v4170_v11  ;;  %v4259_v10 = vld [vmem:[#allocation5 + $0x764] ss:$16 sps:$4 sm:$0xff]   ;;  %v4262_v11 = vld [vmem:[#allocation5 + $0x76c] ss:$16 sps:$4 sm:$0xff]  }
  0xff   :  { %1832 = vmatpush1.bf16.msra.mxu0 %v4165_v12  ;;  %1996 = vmatpush1.bf16.msra.mxu1 %v4168_v13  ;;  %v4257_v12 = vld [vmem:[#allocation5 + $0x760] ss:$16 sps:$4 sm:$0xff]   ;;  %v4260_v13 = vld [vmem:[#allocation5 + $0x768] ss:$16 sps:$4 sm:$0xff]  }
 0x100   :  { %1833 = vmatprep.subr.bf16.mxu0 %v4173_v14  ;;  %1997 = vmatprep.subr.bf16.mxu1 %v4176_v16  ;;  %v4265_v14 = vld [vmem:[#allocation5 + $0x784] ss:$16 sps:$4 sm:$0xff]   ;;  %v4268_v16 = vld [vmem:[#allocation5 + $0x78c] ss:$16 sps:$4 sm:$0xff]  }
 0x103   :  { %1834 = vmatpush1.bf16.msra.mxu0 %v4171_v17  ;;  %1998 = vmatpush1.bf16.msra.mxu1 %v4174_v18  ;;  %v4263_v17 = vld [vmem:[#allocation5 + $0x780] ss:$16 sps:$4 sm:$0xff]   ;;  %v4266_v18 = vld [vmem:[#allocation5 + $0x788] ss:$16 sps:$4 sm:$0xff]  }
 0x104   :  { %1835 = vmatprep.subr.bf16.mxu0 %v4179_v19  ;;  %1999 = vmatprep.subr.bf16.mxu1 %v4182_v20  ;;  %v4271_v19 = vld [vmem:[#allocation5 + $0x7a4] ss:$16 sps:$4 sm:$0xff]   ;;  %v4274_v20 = vld [vmem:[#allocation5 + $0x7ac] ss:$16 sps:$4 sm:$0xff]  }
 0x107   :  { %1836 = vmatpush1.bf16.msra.mxu0 %v4177_v21  ;;  %2000 = vmatpush1.bf16.msra.mxu1 %v4180_v22  ;;  %v4269_v21 = vld [vmem:[#allocation5 + $0x7a0] ss:$16 sps:$4 sm:$0xff]   ;;  %v4272_v22 = vld [vmem:[#allocation5 + $0x7a8] ss:$16 sps:$4 sm:$0xff]  }
 0x108   :  { %1837 = vmatprep.subr.bf16.mxu0 %v4185_v23  ;;  %2001 = vmatprep.subr.bf16.mxu1 %v4188_v24  ;;  %v4277_v23 = vld [vmem:[#allocation5 + $0x7c4] ss:$16 sps:$4 sm:$0xff]   ;;  %v4280_v24 = vld [vmem:[#allocation5 + $0x7cc] ss:$16 sps:$4 sm:$0xff]  }
 0x10b   :  { %1838 = vmatpush1.bf16.msra.mxu0 %v4183_v25  ;;  %2002 = vmatpush1.bf16.msra.mxu1 %v4186_v26  ;;  %v4275_v25 = vld [vmem:[#allocation5 + $0x7c0] ss:$16 sps:$4 sm:$0xff]   ;;  %v4278_v26 = vld [vmem:[#allocation5 + $0x7c8] ss:$16 sps:$4 sm:$0xff]  }
 0x10c   :  { %1848 = vmatprep.subr.bf16.mxu0 %v4193_v28  ;;  %2012 = vmatprep.subr.bf16.mxu1 %v4196_v29  ;;  %v4286_v28 = vld [vmem:[#allocation5 + $0x7ec] ss:$16 sps:$4 sm:$0xff]   ;;  %v4281_v29 = vld [vmem:[#allocation5 + $0x7e0] ss:$16 sps:$4 sm:$0xff]  }
 0x10e   :  { %1840 = vmatmul.mubr.bf16.vlgmr.msra.gmra.mrb[0].mxu0 %v4773_v33  ;;  %2004 = vmatmul.mubr.bf16.vlgmr.msra.gmra.mrb[0].mxu1 %v4773_v33 }
 0x10f   :  { %1849 = vmatpush1.bf16.msra.mxu0 %v4191_v31  ;;  %2013 = vmatpush1.bf16.msra.mxu1 %v4194_v32  ;;  %v4284_v31 = vld [vmem:[#allocation5 + $0x7e8] ss:$16 sps:$4 sm:$0xff]   ;;  %v4289_v32 = vld [vmem:[#allocation7 + $0x4] ss:$16 sps:$4 sm:$0xff]  }
 0x110   :  { %1850 = vmatprep.subr.bf16.mxu0 %v4199_v34  ;;  %2014 = vmatprep.subr.bf16.mxu1 %v4202_v35  ;;  %v4292_v34 = vld [vmem:[#allocation7 + $0xc] ss:$16 sps:$4 sm:$0xff]   ;;  %v434_v35 = vcombine.high %v4773_v33, %v4773_v33  ;;  %v4299_v33 = vld [vmem:[#allocation7 + $0x40] ss:$16 sps:$4 sm:$0xff]  }
 0x111   :  { %1880 = vmatprep.mubr.bf16.mxu0 %v436_v30  ;;  %2044 = vmatprep.mubr.bf16.mxu1 %v436_v30  ;;  %v4287_v30 = vld [vmem:[#allocation7] ss:$16 sps:$4 sm:$0xff]  }
 0x113   :  { %1851 = vmatpush1.bf16.msra.mxu0 %v4197_v15  ;;  %2015 = vmatpush1.bf16.msra.mxu1 %v4200_v37  ;;  %v4290_v15 = vld [vmem:[#allocation7 + $0x8] ss:$16 sps:$4 sm:$0xff]   ;;  %v4295_v37 = vld [vmem:[#allocation7 + $0x24] ss:$16 sps:$4 sm:$0xff]  }
 0x114   :  { %1852 = vmatprep.subr.bf16.mxu0 %v4205_v38  ;;  %2016 = vmatprep.subr.bf16.mxu1 %v4208_v53  ;;  %v4298_v38 = vld [vmem:[#allocation7 + $0x2c] ss:$16 sps:$4 sm:$0xff]   ;;  %v4293_v53 = vld [vmem:[#allocation7 + $0x20] ss:$16 sps:$4 sm:$0xff]  }
 0x117   :  { %1853 = vmatpush1.bf16.msra.mxu0 %v4203_v39  ;;  %2017 = vmatpush1.bf16.msra.mxu1 %v4206_v40  ;;  %v4296_v39 = vld [vmem:[#allocation7 + $0x28] ss:$16 sps:$4 sm:$0xff]   ;;  %v4301_v40 = vld [vmem:[#allocation7 + $0x44] ss:$16 sps:$4 sm:$0xff]  }
 0x118   :  { %1854 = vmatprep.subr.bf16.mxu0 %v4211_v41  ;;  %2018 = vmatprep.subr.bf16.mxu1 %v4214_v36  ;;  %v4304_v41 = vld [vmem:[#allocation7 + $0x4c] ss:$16 sps:$4 sm:$0xff]   ;;  %v4302_v36 = vld [vmem:[#allocation7 + $0x48] ss:$16 sps:$4 sm:$0xff]  }
 0x11b   :  { %1855 = vmatpush1.bf16.msra.mxu0 %v4209_v42  ;;  %2019 = vmatpush1.bf16.msra.mxu1 %v4212_v43  ;;  %v4307_v42 = vld [vmem:[#allocation7 + $0x64] ss:$16 sps:$4 sm:$0xff]   ;;  %v4310_v43 = vld [vmem:[#allocation7 + $0x6c] ss:$16 sps:$4 sm:$0xff]  }
 0x11c   :  { %1856 = vmatprep.subr.bf16.mxu0 %v4217_v44  ;;  %2020 = vmatprep.subr.bf16.mxu1 %v4220_v46  ;;  %v4305_v44 = vld [vmem:[#allocation7 + $0x60] ss:$16 sps:$4 sm:$0xff]   ;;  %v4308_v46 = vld [vmem:[#allocation7 + $0x68] ss:$16 sps:$4 sm:$0xff]  }
 0x11f   :  { %1857 = vmatpush1.bf16.msra.mxu0 %v4215_v47  ;;  %2021 = vmatpush1.bf16.msra.mxu1 %v4218_v48  ;;  %v4313_v47 = vld [vmem:[#allocation7 + $0x84] ss:$16 sps:$4 sm:$0xff]   ;;  %v4316_v48 = vld [vmem:[#allocation7 + $0x8c] ss:$16 sps:$4 sm:$0xff]  }
 0x120   :  { %1858 = vmatprep.subr.bf16.mxu0 %v4223_v49  ;;  %2022 = vmatprep.subr.bf16.mxu1 %v4226_v50  ;;  %v4311_v49 = vld [vmem:[#allocation7 + $0x80] ss:$16 sps:$4 sm:$0xff]   ;;  %v4314_v50 = vld [vmem:[#allocation7 + $0x88] ss:$16 sps:$4 sm:$0xff]  }
 0x123   :  { %1859 = vmatpush1.bf16.msra.mxu0 %v4221_v51  ;;  %2023 = vmatpush1.bf16.msra.mxu1 %v4224_v52  ;;  %v4319_v51 = vld [vmem:[#allocation7 + $0xa4] ss:$16 sps:$4 sm:$0xff]   ;;  %v4322_v52 = vld [vmem:[#allocation7 + $0xac] ss:$16 sps:$4 sm:$0xff]  }
 0x124   :  { %1860 = vmatprep.subr.bf16.mxu0 %v4229_v54  ;;  %2024 = vmatprep.subr.bf16.mxu1 %v4232_v55  ;;  %v4317_v54 = vld [vmem:[#allocation7 + $0xa0] ss:$16 sps:$4 sm:$0xff]   ;;  %v4320_v55 = vld [vmem:[#allocation7 + $0xa8] ss:$16 sps:$4 sm:$0xff]  }
 0x127   :  { %1861 = vmatpush1.bf16.msra.mxu0 %v4227_v56  ;;  %2025 = vmatpush1.bf16.msra.mxu1 %v4230_v57  ;;  %v4325_v56 = vld [vmem:[#allocation7 + $0xc4] ss:$16 sps:$4 sm:$0xff]   ;;  %v4328_v57 = vld [vmem:[#allocation7 + $0xcc] ss:$16 sps:$4 sm:$0xff]  }
 0x128   :  { %1862 = vmatprep.subr.bf16.mxu0 %v4235_v58  ;;  %2026 = vmatprep.subr.bf16.mxu1 %v4238_v59  ;;  %v4323_v58 = vld [vmem:[#allocation7 + $0xc0] ss:$16 sps:$4 sm:$0xff]   ;;  %v4326_v59 = vld [vmem:[#allocation7 + $0xc8] ss:$16 sps:$4 sm:$0xff]  }
 0x12b   :  { %1863 = vmatpush1.bf16.msra.mxu0 %v4233_v60  ;;  %2027 = vmatpush1.bf16.msra.mxu1 %v4236_v61  ;;  %v4331_v60 = vld [vmem:[#allocation7 + $0xe4] ss:$16 sps:$4 sm:$0xff]   ;;  %v4334_v61 = vld [vmem:[#allocation7 + $0xec] ss:$16 sps:$4 sm:$0xff]  }
 0x12c   :  { %1864 = vmatprep.subr.bf16.mxu0 %v4241_v62  ;;  %2028 = vmatprep.subr.bf16.mxu1 %v4244_v63  ;;  %v4329_v62 = vld [vmem:[#allocation7 + $0xe0] ss:$16 sps:$4 sm:$0xff]   ;;  %v4332_v63 = vld [vmem:[#allocation7 + $0xe8] ss:$16 sps:$4 sm:$0xff]  }
 0x12f   :  { %1865 = vmatpush1.bf16.msra.mxu0 %v4239_v0  ;;  %2029 = vmatpush1.bf16.msra.mxu1 %v4242_v1  ;;  %v4337_v0 = vld [vmem:[#allocation7 + $0x104] ss:$16 sps:$4 sm:$0xff]   ;;  %v4340_v1 = vld [vmem:[#allocation7 + $0x10c] ss:$16 sps:$4 sm:$0xff]  }
 0x130   :  { %1866 = vmatprep.subr.bf16.mxu0 %v4247_v2  ;;  %2030 = vmatprep.subr.bf16.mxu1 %v4250_v3  ;;  %v4335_v2 = vld [vmem:[#allocation7 + $0x100] ss:$16 sps:$4 sm:$0xff]   ;;  %v4338_v3 = vld [vmem:[#allocation7 + $0x108] ss:$16 sps:$4 sm:$0xff]  }
 0x133   :  { %1867 = vmatpush1.bf16.msra.mxu0 %v4245_v4  ;;  %2031 = vmatpush1.bf16.msra.mxu1 %v4248_v5  ;;  %v4343_v4 = vld [vmem:[#allocation7 + $0x124] ss:$16 sps:$4 sm:$0xff]   ;;  %v4346_v5 = vld [vmem:[#allocation7 + $0x12c] ss:$16 sps:$4 sm:$0xff]  }
 0x134   :  { %1868 = vmatprep.subr.bf16.mxu0 %v4253_v6  ;;  %2032 = vmatprep.subr.bf16.mxu1 %v4256_v7  ;;  %v4341_v6 = vld [vmem:[#allocation7 + $0x120] ss:$16 sps:$4 sm:$0xff]   ;;  %v4344_v7 = vld [vmem:[#allocation7 + $0x128] ss:$16 sps:$4 sm:$0xff]  }
 0x137   :  { %1869 = vmatpush1.bf16.msra.mxu0 %v4251_v8  ;;  %2033 = vmatpush1.bf16.msra.mxu1 %v4254_v9  ;;  %v4349_v8 = vld [vmem:[#allocation7 + $0x144] ss:$16 sps:$4 sm:$0xff]   ;;  %v4352_v9 = vld [vmem:[#allocation7 + $0x14c] ss:$16 sps:$4 sm:$0xff]  }
 0x138   :  { %1870 = vmatprep.subr.bf16.mxu0 %v4259_v10  ;;  %2034 = vmatprep.subr.bf16.mxu1 %v4262_v11  ;;  %v4347_v10 = vld [vmem:[#allocation7 + $0x140] ss:$16 sps:$4 sm:$0xff]   ;;  %v4350_v11 = vld [vmem:[#allocation7 + $0x148] ss:$16 sps:$4 sm:$0xff]  }
 0x13b   :  { %1871 = vmatpush1.bf16.msra.mxu0 %v4257_v12  ;;  %2035 = vmatpush1.bf16.msra.mxu1 %v4260_v13  ;;  %v4355_v12 = vld [vmem:[#allocation7 + $0x164] ss:$16 sps:$4 sm:$0xff]   ;;  %v4358_v13 = vld [vmem:[#allocation7 + $0x16c] ss:$16 sps:$4 sm:$0xff]  }
 0x13c   :  { %1872 = vmatprep.subr.bf16.mxu0 %v4265_v14  ;;  %2036 = vmatprep.subr.bf16.mxu1 %v4268_v16  ;;  %v4353_v14 = vld [vmem:[#allocation7 + $0x160] ss:$16 sps:$4 sm:$0xff]   ;;  %v4356_v16 = vld [vmem:[#allocation7 + $0x168] ss:$16 sps:$4 sm:$0xff]  }
 0x13f   :  { %1873 = vmatpush1.bf16.msra.mxu0 %v4263_v17  ;;  %2037 = vmatpush1.bf16.msra.mxu1 %v4266_v18  ;;  %v4361_v17 = vld [vmem:[#allocation7 + $0x184] ss:$16 sps:$4 sm:$0xff]   ;;  %v4364_v18 = vld [vmem:[#allocation7 + $0x18c] ss:$16 sps:$4 sm:$0xff]  }
 0x140   :  { %1874 = vmatprep.subr.bf16.mxu0 %v4271_v19  ;;  %2038 = vmatprep.subr.bf16.mxu1 %v4274_v20  ;;  %v4359_v19 = vld [vmem:[#allocation7 + $0x180] ss:$16 sps:$4 sm:$0xff]   ;;  %v4362_v20 = vld [vmem:[#allocation7 + $0x188] ss:$16 sps:$4 sm:$0xff]  }
 0x143   :  { %1875 = vmatpush1.bf16.msra.mxu0 %v4269_v21  ;;  %2039 = vmatpush1.bf16.msra.mxu1 %v4272_v22  ;;  %v4367_v21 = vld [vmem:[#allocation7 + $0x1a4] ss:$16 sps:$4 sm:$0xff]   ;;  %v4370_v22 = vld [vmem:[#allocation7 + $0x1ac] ss:$16 sps:$4 sm:$0xff]  }
 0x144   :  { %1876 = vmatprep.subr.bf16.mxu0 %v4277_v23  ;;  %2040 = vmatprep.subr.bf16.mxu1 %v4280_v24  ;;  %v4365_v23 = vld [vmem:[#allocation7 + $0x1a0] ss:$16 sps:$4 sm:$0xff]   ;;  %v4368_v24 = vld [vmem:[#allocation7 + $0x1a8] ss:$16 sps:$4 sm:$0xff]  }
 0x147   :  { %1877 = vmatpush1.bf16.msra.mxu0 %v4275_v25  ;;  %2041 = vmatpush1.bf16.msra.mxu1 %v4278_v26  ;;  %v4373_v25 = vld [vmem:[#allocation7 + $0x1c4] ss:$16 sps:$4 sm:$0xff]   ;;  %v4376_v26 = vld [vmem:[#allocation7 + $0x1cc] ss:$16 sps:$4 sm:$0xff]  }
 0x148   :  { %1878 = vmatprep.subr.bf16.mxu0 %v4283_v27  ;;  %2042 = vmatprep.subr.bf16.mxu1 %v4286_v28  ;;  %v4371_v27 = vld [vmem:[#allocation7 + $0x1c0] ss:$16 sps:$4 sm:$0xff]   ;;  %v4374_v28 = vld [vmem:[#allocation7 + $0x1c8] ss:$16 sps:$4 sm:$0xff]  }
 0x14b   :  { %1879 = vmatpush1.bf16.msra.mxu0 %v4281_v29  ;;  %2043 = vmatpush1.bf16.msra.mxu1 %v4284_v31  ;;  %v4379_v29 = vld [vmem:[#allocation7 + $0x1e4] ss:$16 sps:$4 sm:$0xff]   ;;  %v4382_v31 = vld [vmem:[#allocation7 + $0x1ec] ss:$16 sps:$4 sm:$0xff]  }
 0x14c   :  { %2851 = vmatprep.subr.bf16.mxu0 %v4289_v32  ;;  %2933 = vmatprep.subr.bf16.mxu1 %v4292_v34  ;;  %v4377_v32 = vld [vmem:[#allocation7 + $0x1e0] ss:$16 sps:$4 sm:$0xff]   ;;  %v4380_v34 = vld [vmem:[#allocation7 + $0x1e8] ss:$16 sps:$4 sm:$0xff]  }
 0x14e   :  { %1881 = vmatmul.mubr.bf16.vlgmr.msra.gmra.mrb[0].mxu0 %v434_v35  ;;  %2045 = vmatmul.mubr.bf16.vlgmr.msra.gmra.mrb[0].mxu1 %v434_v35  ;;  %v4385_v35 = vld [vmem:[#allocation7 + $0x204] ss:$16 sps:$4 sm:$0xff]  }
 0x14f   :  { %2852 = vmatpush1.bf16.msra.mxu0 %v4287_v30  ;;  %2934 = vmatpush1.bf16.msra.mxu1 %v4290_v15  ;;  %v4388_v30 = vld [vmem:[#allocation7 + $0x20c] ss:$16 sps:$4 sm:$0xff]   ;;  %v347_v15 = vsub.s32 0, %v4742_v45 }
 0x150   :  { %2853 = vmatprep.subr.bf16.mxu0 %v4295_v37  ;;  %2935 = vmatprep.subr.bf16.mxu1 %v4298_v38  ;;  %v4785_v37 = vld [vmem:[%s4833_s2] sm:$0xf]  ;;  %v351_v38 = vsub.s32 1, %v4742_v45 }
 0x153   :  { %2854 = vmatpush1.bf16.msra.mxu0 %v4293_v53  ;;  %2936 = vmatpush1.bf16.msra.mxu1 %v4296_v39  ;;  %v359_v53 = vsub.s32 3, %v4742_v45  ;;  %v348_v39 = vrot.slane %v4785_v37, %v347_v15 }
 0x154   :  { %2855 = vmatprep.subr.bf16.mxu0 %v4301_v40  ;;  %2937 = vmatprep.subr.bf16.mxu1 %v4304_v41  ;;  %v352_v40 = vrot.slane %v4785_v37, %v351_v38 }
 0x155   :  { %v360_v41 = vrot.slane %v4785_v37, %v359_v53 }
 0x157   :  { %2856 = vmatpush1.bf16.msra.mxu0 %v4299_v33  ;;  %2938 = vmatpush1.bf16.msra.mxu1 %v4302_v36 }
 0x158   :  { %2857 = vmatprep.subr.bf16.mxu0 %v4307_v42  ;;  %2939 = vmatprep.subr.bf16.mxu1 %v4310_v43 }
 0x15b   :  { %2858 = vmatpush1.bf16.msra.mxu0 %v4305_v44  ;;  %2940 = vmatpush1.bf16.msra.mxu1 %v4308_v46 }
 0x15c   :  { %2859 = vmatprep.subr.bf16.mxu0 %v4313_v47  ;;  %2941 = vmatprep.subr.bf16.mxu1 %v4316_v48 }
 0x15f   :  { %2860 = vmatpush1.bf16.msra.mxu0 %v4311_v49  ;;  %2942 = vmatpush1.bf16.msra.mxu1 %v4314_v50 }
 0x160   :  { %2861 = vmatprep.subr.bf16.mxu0 %v4319_v51  ;;  %2943 = vmatprep.subr.bf16.mxu1 %v4322_v52 }
 0x163   :  { %2862 = vmatpush1.bf16.msra.mxu0 %v4317_v54  ;;  %2944 = vmatpush1.bf16.msra.mxu1 %v4320_v55 }
 0x164   :  { %2863 = vmatprep.subr.bf16.mxu0 %v4325_v56  ;;  %2945 = vmatprep.subr.bf16.mxu1 %v4328_v57  ;;  %v4383_v57 = vld [vmem:[#allocation7 + $0x200] ss:$16 sps:$4 sm:$0xff]  }
 0x167   :  { %2864 = vmatpush1.bf16.msra.mxu0 %v4323_v58  ;;  %2946 = vmatpush1.bf16.msra.mxu1 %v4326_v59  ;;  %v4386_v58 = vld [vmem:[#allocation7 + $0x208] ss:$16 sps:$4 sm:$0xff]  }
 0x168   :  { %2865 = vmatprep.subr.bf16.mxu0 %v4331_v60  ;;  %2947 = vmatprep.subr.bf16.mxu1 %v4334_v61  ;;  %v4391_v60 = vld [vmem:[#allocation7 + $0x224] ss:$16 sps:$4 sm:$0xff]   ;;  %v4394_v61 = vld [vmem:[#allocation7 + $0x22c] ss:$16 sps:$4 sm:$0xff]  }
 0x16b   :  { %2866 = vmatpush1.bf16.msra.mxu0 %v4329_v62  ;;  %2948 = vmatpush1.bf16.msra.mxu1 %v4332_v63  ;;  %v4389_v63 = vld [vmem:[#allocation7 + $0x220] ss:$16 sps:$4 sm:$0xff]  }
 0x16c   :  { %2867 = vmatprep.subr.bf16.mxu0 %v4337_v0  ;;  %2949 = vmatprep.subr.bf16.mxu1 %v4340_v1  ;;  %v4392_v0 = vld [vmem:[#allocation7 + $0x228] ss:$16 sps:$4 sm:$0xff]   ;;  %v4397_v1 = vld [vmem:[#allocation7 + $0x244] ss:$16 sps:$4 sm:$0xff]  }
 0x16f   :  { %2868 = vmatpush1.bf16.msra.mxu0 %v4335_v2  ;;  %2950 = vmatpush1.bf16.msra.mxu1 %v4338_v3  ;;  %v4400_v2 = vld [vmem:[#allocation7 + $0x24c] ss:$16 sps:$4 sm:$0xff]   ;;  %v4395_v3 = vld [vmem:[#allocation7 + $0x240] ss:$16 sps:$4 sm:$0xff]  }
 0x170   :  { %2869 = vmatprep.subr.bf16.mxu0 %v4343_v4  ;;  %2951 = vmatprep.subr.bf16.mxu1 %v4346_v5  ;;  %v4398_v4 = vld [vmem:[#allocation7 + $0x248] ss:$16 sps:$4 sm:$0xff]   ;;  %v4403_v5 = vld [vmem:[#allocation7 + $0x264] ss:$16 sps:$4 sm:$0xff]  }
 0x173   :  { %2870 = vmatpush1.bf16.msra.mxu0 %v4341_v6  ;;  %2952 = vmatpush1.bf16.msra.mxu1 %v4344_v7  ;;  %v4406_v6 = vld [vmem:[#allocation7 + $0x26c] ss:$16 sps:$4 sm:$0xff]   ;;  %v4401_v7 = vld [vmem:[#allocation7 + $0x260] ss:$16 sps:$4 sm:$0xff]  }
 0x174   :  { %2871 = vmatprep.subr.bf16.mxu0 %v4349_v8  ;;  %2953 = vmatprep.subr.bf16.mxu1 %v4352_v9  ;;  %v4404_v8 = vld [vmem:[#allocation7 + $0x268] ss:$16 sps:$4 sm:$0xff]   ;;  %v4409_v9 = vld [vmem:[#allocation7 + $0x284] ss:$16 sps:$4 sm:$0xff]  }
 0x177   :  { %2872 = vmatpush1.bf16.msra.mxu0 %v4347_v10  ;;  %2954 = vmatpush1.bf16.msra.mxu1 %v4350_v11  ;;  %v4412_v10 = vld [vmem:[#allocation7 + $0x28c] ss:$16 sps:$4 sm:$0xff]   ;;  %v4407_v11 = vld [vmem:[#allocation7 + $0x280] ss:$16 sps:$4 sm:$0xff]  }
 0x178   :  { %2873 = vmatprep.subr.bf16.mxu0 %v4355_v12  ;;  %2955 = vmatprep.subr.bf16.mxu1 %v4358_v13  ;;  %v4410_v12 = vld [vmem:[#allocation7 + $0x288] ss:$16 sps:$4 sm:$0xff]   ;;  %v4415_v13 = vld [vmem:[#allocation7 + $0x2a4] ss:$16 sps:$4 sm:$0xff]  }
 0x17b   :  { %2874 = vmatpush1.bf16.msra.mxu0 %v4353_v14  ;;  %2956 = vmatpush1.bf16.msra.mxu1 %v4356_v16  ;;  %v4418_v14 = vld [vmem:[#allocation7 + $0x2ac] ss:$16 sps:$4 sm:$0xff]   ;;  %v4413_v16 = vld [vmem:[#allocation7 + $0x2a0] ss:$16 sps:$4 sm:$0xff]  }
 0x17c   :  { %2875 = vmatprep.subr.bf16.mxu0 %v4361_v17  ;;  %2957 = vmatprep.subr.bf16.mxu1 %v4364_v18  ;;  %v4416_v17 = vld [vmem:[#allocation7 + $0x2a8] ss:$16 sps:$4 sm:$0xff]   ;;  %v4421_v18 = vld [vmem:[#allocation7 + $0x2c4] ss:$16 sps:$4 sm:$0xff]  }
 0x17f   :  { %2876 = vmatpush1.bf16.msra.mxu0 %v4359_v19  ;;  %2958 = vmatpush1.bf16.msra.mxu1 %v4362_v20  ;;  %v4424_v19 = vld [vmem:[#allocation7 + $0x2cc] ss:$16 sps:$4 sm:$0xff]   ;;  %v4419_v20 = vld [vmem:[#allocation7 + $0x2c0] ss:$16 sps:$4 sm:$0xff]  }
 0x180   :  { %2877 = vmatprep.subr.bf16.mxu0 %v4367_v21  ;;  %2959 = vmatprep.subr.bf16.mxu1 %v4370_v22  ;;  %v4422_v21 = vld [vmem:[#allocation7 + $0x2c8] ss:$16 sps:$4 sm:$0xff]   ;;  %v4427_v22 = vld [vmem:[#allocation7 + $0x2e4] ss:$16 sps:$4 sm:$0xff]  }
 0x183   :  { %2878 = vmatpush1.bf16.msra.mxu0 %v4365_v23  ;;  %2960 = vmatpush1.bf16.msra.mxu1 %v4368_v24  ;;  %v4430_v23 = vld [vmem:[#allocation7 + $0x2ec] ss:$16 sps:$4 sm:$0xff]   ;;  %v4425_v24 = vld [vmem:[#allocation7 + $0x2e0] ss:$16 sps:$4 sm:$0xff]  }
 0x184   :  { %2879 = vmatprep.subr.bf16.mxu0 %v4373_v25  ;;  %2961 = vmatprep.subr.bf16.mxu1 %v4376_v26  ;;  %v4428_v25 = vld [vmem:[#allocation7 + $0x2e8] ss:$16 sps:$4 sm:$0xff]   ;;  %v4433_v26 = vld [vmem:[#allocation7 + $0x304] ss:$16 sps:$4 sm:$0xff]  }
 0x187   :  { %2880 = vmatpush1.bf16.msra.mxu0 %v4371_v27  ;;  %2962 = vmatpush1.bf16.msra.mxu1 %v4374_v28  ;;  %v4436_v27 = vld [vmem:[#allocation7 + $0x30c] ss:$16 sps:$4 sm:$0xff]   ;;  %v4431_v28 = vld [vmem:[#allocation7 + $0x300] ss:$16 sps:$4 sm:$0xff]  }
 0x188   :  { %2881 = vmatprep.subr.bf16.mxu0 %v4379_v29  ;;  %2963 = vmatprep.subr.bf16.mxu1 %v4382_v31  ;;  %v4434_v29 = vld [vmem:[#allocation7 + $0x308] ss:$16 sps:$4 sm:$0xff]   ;;  %v4439_v31 = vld [vmem:[#allocation7 + $0x324] ss:$16 sps:$4 sm:$0xff]  }
 0x18b   :  { %2882 = vmatpush1.bf16.msra.mxu0 %v4377_v32  ;;  %2964 = vmatpush1.bf16.msra.mxu1 %v4380_v34  ;;  %v4442_v32 = vld [vmem:[#allocation7 + $0x32c] ss:$16 sps:$4 sm:$0xff]   ;;  %v4437_v34 = vld [vmem:[#allocation7 + $0x320] ss:$16 sps:$4 sm:$0xff]  }
 0x18c   :  { %2892 = vmatprep.subr.bf16.mxu0 %v4385_v35  ;;  %2974 = vmatprep.subr.bf16.mxu1 %v4388_v30  ;;  %v4440_v35 = vld [vmem:[#allocation7 + $0x328] ss:$16 sps:$4 sm:$0xff]   ;;  %v4445_v30 = vld [vmem:[#allocation7 + $0x344] ss:$16 sps:$4 sm:$0xff]  }
 0x221   :  { %v1882_v33 = vpop.f32.mrb[0].mxu0  ;;  %v4798_v36 = vpop.f32.mrb[0].mxu1 }
 0x222   :  { %v3845_v42 = vadd.f32 %v1882_v33, %v348_v39  ;;  %v1884_v43 = vpop.f32.mrb[1].mxu0  ;;  %v2048_v44 = vpop.f32.mrb[1].mxu1  ;;  %v4448_v39 = vld [vmem:[#allocation7 + $0x34c] ss:$16 sps:$4 sm:$0xff]   ;;  %v4451_v33 = vld [vmem:[#allocation7 + $0x364] ss:$16 sps:$4 sm:$0xff]  }
 0x223   :  { %v3846_v46 = vadd.f32 %v1884_v43, %v352_v40  ;;  %v3848_v47 = vadd.f32 %v2048_v44, %v360_v41  ;;  %v1886_v48 = vpop.f32.mrb[2].mxu0  ;;  %v2050_v49 = vpop.f32.mrb[2].mxu1  ;;  %v4443_v40 = vld [vmem:[#allocation7 + $0x340] ss:$16 sps:$4 sm:$0xff]   ;;  %v4446_v41 = vld [vmem:[#allocation7 + $0x348] ss:$16 sps:$4 sm:$0xff]  }
 0x224   :  { %v2053_v50 = vmax.f32 %v3845_v42, 0.0  ;;  %v1887_v51 = vpop.f32.mrb[3].mxu0  ;;  %v2051_v52 = vpop.f32.mrb[3].mxu1  ;;  %v4454_v42 = vld [vmem:[#allocation7 + $0x36c] ss:$16 sps:$4 sm:$0xff]  }
 0x225   :  { %v2054_v54 = vmax.f32 %v3846_v46, 0.0  ;;  %v2056_v55 = vmax.f32 %v3848_v47, 0.0  ;;  %v4449_v43 = vld [vmem:[#allocation7 + $0x360] ss:$16 sps:$4 sm:$0xff]   ;;  %v4452_v44 = vld [vmem:[#allocation7 + $0x368] ss:$16 sps:$4 sm:$0xff]  }
 0x226   :  { %v2057_v59 = vpack.c.bf16 %v2053_v50, %v2053_v50  ;;  %v4457_v46 = vld [vmem:[#allocation7 + $0x384] ss:$16 sps:$4 sm:$0xff]   ;;  %v4460_v47 = vld [vmem:[#allocation7 + $0x38c] ss:$16 sps:$4 sm:$0xff]   ;;  %v4455_v48 = vld [vmem:[#allocation7 + $0x380] ss:$16 sps:$4 sm:$0xff]  }
 0x227   :  { %v2058_v56 = vpack.c.bf16 %v2054_v54, %v2054_v54  ;;  %v2060_v62 = vpack.c.bf16 %v2056_v55, %v2056_v55  ;;  %v4458_v49 = vld [vmem:[#allocation7 + $0x388] ss:$16 sps:$4 sm:$0xff]   ;;  %v355_v50 = vsub.s32 2, %v4742_v45  ;;  %v4463_v51 = vld [vmem:[#allocation7 + $0x3a4] ss:$16 sps:$4 sm:$0xff]  }
 0x228   :  { %v4466_v52 = vld [vmem:[#allocation7 + $0x3ac] ss:$16 sps:$4 sm:$0xff]   ;;  %v4461_v54 = vld [vmem:[#allocation7 + $0x3a0] ss:$16 sps:$4 sm:$0xff]   ;;  %v4464_v55 = vld [vmem:[#allocation7 + $0x3a8] ss:$16 sps:$4 sm:$0xff]  }
 0x229   :  { %2883 = vmatprep.mubr.bf16.mxu0 %v2058_v56  ;;  %2965 = vmatprep.mubr.bf16.mxu1 %v2058_v56  ;;  %v356_v56 = vrot.slane %v4785_v37, %v355_v50  ;;  %v4479_v37 = vld [vmem:[#allocation8 + $0x40] sm:$0xff]  }
 0x22a   :  { %2884 = vmatmul.mubr.bf16.vlgmr.msra.gmra.mrb[4].mxu0 %v2057_v59  ;;  %2966 = vmatmul.mubr.bf16.vlgmr.msra.gmra.mrb[4].mxu1 %v2057_v59  ;;  %v4467_v59 = vld [vmem:[#allocation7 + $0x3c0] ss:$16 sps:$4 sm:$0xff]  }
 0x22b   :  { %2893 = vmatpush1.bf16.msra.mxu0 %v4383_v57  ;;  %2975 = vmatpush1.bf16.msra.mxu1 %v4386_v58  ;;  %v4469_v57 = vld [vmem:[#allocation7 + $0x3c4] ss:$16 sps:$4 sm:$0xff]   ;;  %v4472_v58 = vld [vmem:[#allocation7 + $0x3cc] ss:$16 sps:$4 sm:$0xff]  }
 0x22c   :  { %2924 = vmatprep.mubr.bf16.mxu0 %v2060_v62  ;;  %3006 = vmatprep.mubr.bf16.mxu1 %v2060_v62  ;;  %v4475_v62 = vld [vmem:[#allocation7 + $0x3e4] ss:$16 sps:$4 sm:$0xff]  }
 0x22d   :  { %2894 = vmatprep.subr.bf16.mxu0 %v4391_v60  ;;  %2976 = vmatprep.subr.bf16.mxu1 %v4394_v61  ;;  %v4470_v60 = vld [vmem:[#allocation7 + $0x3c8] ss:$16 sps:$4 sm:$0xff]   ;;  %v3847_v61 = vadd.f32 %v4798_v36, %v356_v56 }
 0x22e   :  { %v4483_v36 = vld [vmem:[#allocation8 + $0x48] sm:$0xff]  }
 0x22f   :  { %2895 = vmatpush1.bf16.msra.mxu0 %v4389_v63  ;;  %2977 = vmatpush1.bf16.msra.mxu1 %v4392_v0  ;;  %v4478_v63 = vld [vmem:[#allocation7 + $0x3ec] ss:$16 sps:$4 sm:$0xff]   ;;  %v4473_v0 = vld [vmem:[#allocation7 + $0x3e0] ss:$16 sps:$4 sm:$0xff]  }
 0x230   :  { %2896 = vmatprep.subr.bf16.mxu0 %v4397_v1  ;;  %2978 = vmatprep.subr.bf16.mxu1 %v4400_v2  ;;  %v4476_v1 = vld [vmem:[#allocation7 + $0x3e8] ss:$16 sps:$4 sm:$0xff]   ;;  %v2055_v2 = vmax.f32 %v3847_v61, 0.0 }
 0x233   :  { %2897 = vmatpush1.bf16.msra.mxu0 %v4395_v3  ;;  %2979 = vmatpush1.bf16.msra.mxu1 %v4398_v4  ;;  %v4480_v3 = vld [vmem:[#allocation8 + $0xc0] sm:$0xff]  }
 0x234   :  { %2898 = vmatprep.subr.bf16.mxu0 %v4403_v5  ;;  %2980 = vmatprep.subr.bf16.mxu1 %v4406_v6  ;;  %v4481_v4 = vld [vmem:[#allocation8] sm:$0xff]   ;;  %v2059_v6 = vpack.c.bf16 %v2055_v2, %v2055_v2 }
 0x235   :  { %v4482_v5 = vld [vmem:[#allocation8 + $0x80] sm:$0xff]  }
 0x237   :  { %2899 = vmatpush1.bf16.msra.mxu0 %v4401_v7  ;;  %2981 = vmatpush1.bf16.msra.mxu1 %v4404_v8  ;;  %v4484_v7 = vld [vmem:[#allocation8 + $0xc8] sm:$0xff]  }
 0x238   :  { %2900 = vmatprep.subr.bf16.mxu0 %v4409_v9  ;;  %2982 = vmatprep.subr.bf16.mxu1 %v4412_v10  ;;  %v4485_v8 = vld [vmem:[#allocation8 + $0x8] sm:$0xff]   ;;  %v4487_v10 = vld [vmem:[#allocation8 + $0x50] sm:$0xff]  }
 0x239   :  { %v4486_v9 = vld [vmem:[#allocation8 + $0x88] sm:$0xff]  }
 0x23b   :  { %2901 = vmatpush1.bf16.msra.mxu0 %v4407_v11  ;;  %2983 = vmatpush1.bf16.msra.mxu1 %v4410_v12  ;;  %v4488_v11 = vld [vmem:[#allocation8 + $0xd0] sm:$0xff]  }
 0x23c   :  { %2902 = vmatprep.subr.bf16.mxu0 %v4415_v13  ;;  %2984 = vmatprep.subr.bf16.mxu1 %v4418_v14  ;;  %v4489_v12 = vld [vmem:[#allocation8 + $0x10] sm:$0xff]   ;;  %v4491_v14 = vld [vmem:[#allocation8 + $0x58] sm:$0xff]  }
 0x23d   :  { %v4490_v13 = vld [vmem:[#allocation8 + $0x90] sm:$0xff]  }
 0x23f   :  { %2903 = vmatpush1.bf16.msra.mxu0 %v4413_v16  ;;  %2985 = vmatpush1.bf16.msra.mxu1 %v4416_v17  ;;  %v4492_v16 = vld [vmem:[#allocation8 + $0xd8] sm:$0xff]  }
 0x240   :  { %2904 = vmatprep.subr.bf16.mxu0 %v4421_v18  ;;  %2986 = vmatprep.subr.bf16.mxu1 %v4424_v19  ;;  %v4493_v17 = vld [vmem:[#allocation8 + $0x18] sm:$0xff]   ;;  %v4495_v19 = vld [vmem:[#allocation8 + $0x60] sm:$0xff]  }
 0x241   :  { %v4494_v18 = vld [vmem:[#allocation8 + $0x98] sm:$0xff]  }
 0x243   :  { %2905 = vmatpush1.bf16.msra.mxu0 %v4419_v20  ;;  %2987 = vmatpush1.bf16.msra.mxu1 %v4422_v21  ;;  %v4496_v20 = vld [vmem:[#allocation8 + $0xe0] sm:$0xff]  }
 0x244   :  { %2906 = vmatprep.subr.bf16.mxu0 %v4427_v22  ;;  %2988 = vmatprep.subr.bf16.mxu1 %v4430_v23  ;;  %v4497_v21 = vld [vmem:[#allocation8 + $0x20] sm:$0xff]   ;;  %v4499_v23 = vld [vmem:[#allocation8 + $0x68] sm:$0xff]  }
 0x245   :  { %v4498_v22 = vld [vmem:[#allocation8 + $0xa0] sm:$0xff]  }
 0x247   :  { %2907 = vmatpush1.bf16.msra.mxu0 %v4425_v24  ;;  %2989 = vmatpush1.bf16.msra.mxu1 %v4428_v25  ;;  %v4500_v24 = vld [vmem:[#allocation8 + $0xe8] sm:$0xff]  }
 0x248   :  { %2908 = vmatprep.subr.bf16.mxu0 %v4433_v26  ;;  %2990 = vmatprep.subr.bf16.mxu1 %v4436_v27  ;;  %v4501_v25 = vld [vmem:[#allocation8 + $0x28] sm:$0xff]   ;;  %v4503_v27 = vld [vmem:[#allocation8 + $0x70] sm:$0xff]  }
 0x249   :  { %v4502_v26 = vld [vmem:[#allocation8 + $0xa8] sm:$0xff]  }
 0x24b   :  { %2909 = vmatpush1.bf16.msra.mxu0 %v4431_v28  ;;  %2991 = vmatpush1.bf16.msra.mxu1 %v4434_v29  ;;  %v4504_v28 = vld [vmem:[#allocation8 + $0xf0] sm:$0xff]  }
 0x24c   :  { %2910 = vmatprep.subr.bf16.mxu0 %v4439_v31  ;;  %2992 = vmatprep.subr.bf16.mxu1 %v4442_v32  ;;  %v4505_v29 = vld [vmem:[#allocation8 + $0x30] sm:$0xff]   ;;  %v4507_v32 = vld [vmem:[#allocation8 + $0x78] sm:$0xff]  }
 0x24d   :  { %v4506_v31 = vld [vmem:[#allocation8 + $0xb0] sm:$0xff]  }
 0x24f   :  { %2911 = vmatpush1.bf16.msra.mxu0 %v4437_v34  ;;  %2993 = vmatpush1.bf16.msra.mxu1 %v4440_v35  ;;  %v4508_v34 = vld [vmem:[#allocation8 + $0xf8] sm:$0xff]  }
 0x250   :  { %2912 = vmatprep.subr.bf16.mxu0 %v4445_v30  ;;  %2994 = vmatprep.subr.bf16.mxu1 %v4448_v39  ;;  %v4509_v35 = vld [vmem:[#allocation8 + $0x38] sm:$0xff]   ;;  %v2189_v39 = vld [vmem:[%s4835_s4] sm:$0xf] }
 0x251   :  { %v4510_v30 = vld [vmem:[#allocation8 + $0xb8] sm:$0xff]  }
 0x253   :  { %2913 = vmatpush1.bf16.msra.mxu0 %v4443_v40  ;;  %2995 = vmatpush1.bf16.msra.mxu1 %v4446_v41  ;;  %v2194_v40 = vrot.slane %v2189_v39, %v347_v15  ;;  %v2202_v41 = vrot.slane %v2189_v39, %v355_v50 }
 0x254   :  { %2914 = vmatprep.subr.bf16.mxu0 %v4451_v33  ;;  %2996 = vmatprep.subr.bf16.mxu1 %v4454_v42  ;;  %v2198_v33 = vrot.slane %v2189_v39, %v351_v38  ;;  %v2206_v42 = vrot.slane %v2189_v39, %v359_v53 }
 0x257   :  { %2915 = vmatpush1.bf16.msra.mxu0 %v4449_v43  ;;  %2997 = vmatpush1.bf16.msra.mxu1 %v4452_v44 }
 0x258   :  { %2916 = vmatprep.subr.bf16.mxu0 %v4457_v46  ;;  %2998 = vmatprep.subr.bf16.mxu1 %v4460_v47 }
 0x25b   :  { %2917 = vmatpush1.bf16.msra.mxu0 %v4455_v48  ;;  %2999 = vmatpush1.bf16.msra.mxu1 %v4458_v49 }
 0x25c   :  { %2918 = vmatprep.subr.bf16.mxu0 %v4463_v51  ;;  %3000 = vmatprep.subr.bf16.mxu1 %v4466_v52 }
 0x25f   :  { %2919 = vmatpush1.bf16.msra.mxu0 %v4461_v54  ;;  %3001 = vmatpush1.bf16.msra.mxu1 %v4464_v55 }
 0x260   :  { %2920 = vmatprep.subr.bf16.mxu0 %v4469_v57  ;;  %3002 = vmatprep.subr.bf16.mxu1 %v4472_v58 }
 0x263   :  { %2921 = vmatpush1.bf16.msra.mxu0 %v4467_v59  ;;  %3003 = vmatpush1.bf16.msra.mxu1 %v4470_v60 }
 0x264   :  { %2922 = vmatprep.subr.bf16.mxu0 %v4475_v62  ;;  %3004 = vmatprep.subr.bf16.mxu1 %v4478_v63  ;;  %v3768_v63 = vld [vmem:[%s4837_s6] ss:$0 sm:$0xff] }
 0x267   :  { %2923 = vmatpush1.bf16.msra.mxu0 %v4473_v0  ;;  %3005 = vmatpush1.bf16.msra.mxu1 %v4476_v1 }
 0x268   :  { %3801 = vmatprep.subr.bf16.mxu0 %v4479_v37  ;;  %3823 = vmatprep.subr.bf16.mxu1 %v4480_v3 }
 0x26a   :  { %2925 = vmatmul.mubr.bf16.vlgmr.msra.gmra.mrb[4].mxu0 %v2059_v6  ;;  %3007 = vmatmul.mubr.bf16.vlgmr.msra.gmra.mrb[4].mxu1 %v2059_v6 }
 0x26b   :  { %3802 = vmatpush3.bf16.msra.mxu0 %v4481_v4  ;;  %3824 = vmatpush3.bf16.msra.mxu1 %v4482_v5 }
 0x26c   :  { %3803 = vmatprep.subr.bf16.mxu0 %v4483_v36  ;;  %3825 = vmatprep.subr.bf16.mxu1 %v4484_v7 }
 0x26f   :  { %3804 = vmatpush3.bf16.msra.mxu0 %v4485_v8  ;;  %3826 = vmatpush3.bf16.msra.mxu1 %v4486_v9 }
 0x270   :  { %3805 = vmatprep.subr.bf16.mxu0 %v4487_v10  ;;  %3827 = vmatprep.subr.bf16.mxu1 %v4488_v11 }
 0x273   :  { %3806 = vmatpush3.bf16.msra.mxu0 %v4489_v12  ;;  %3828 = vmatpush3.bf16.msra.mxu1 %v4490_v13 }
 0x274   :  { %3807 = vmatprep.subr.bf16.mxu0 %v4491_v14  ;;  %3829 = vmatprep.subr.bf16.mxu1 %v4492_v16 }
 0x277   :  { %3808 = vmatpush3.bf16.msra.mxu0 %v4493_v17  ;;  %3830 = vmatpush3.bf16.msra.mxu1 %v4494_v18 }
 0x278   :  { %3809 = vmatprep.subr.bf16.mxu0 %v4495_v19  ;;  %3831 = vmatprep.subr.bf16.mxu1 %v4496_v20 }
 0x27b   :  { %3810 = vmatpush3.bf16.msra.mxu0 %v4497_v21  ;;  %3832 = vmatpush3.bf16.msra.mxu1 %v4498_v22 }
 0x27c   :  { %3811 = vmatprep.subr.bf16.mxu0 %v4499_v23  ;;  %3833 = vmatprep.subr.bf16.mxu1 %v4500_v24 }
 0x27f   :  { %3812 = vmatpush3.bf16.msra.mxu0 %v4501_v25  ;;  %3834 = vmatpush3.bf16.msra.mxu1 %v4502_v26 }
 0x280   :  { %3813 = vmatprep.subr.bf16.mxu0 %v4503_v27  ;;  %3835 = vmatprep.subr.bf16.mxu1 %v4504_v28 }
 0x283   :  { %3814 = vmatpush3.bf16.msra.mxu0 %v4505_v29  ;;  %3836 = vmatpush3.bf16.msra.mxu1 %v4506_v31 }
 0x284   :  { %3815 = vmatprep.subr.bf16.mxu0 %v4507_v32  ;;  %3837 = vmatprep.subr.bf16.mxu1 %v4508_v34 }
 0x287   :  { %3816 = vmatpush3.bf16.msra.mxu0 %v4509_v35  ;;  %3838 = vmatpush3.bf16.msra.mxu1 %v4510_v30 }
 0x33d   :  { %v2926_v43 = vpop.f32.mrb[4].mxu0  ;;  %v3008_v44 = vpop.f32.mrb[4].mxu1 }
 0x33e   :  { %v3849_v46 = vadd.f32 %v2926_v43, %v2194_v40  ;;  %v3851_v47 = vadd.f32 %v3008_v44, %v2202_v41  ;;  %v2928_v48 = vpop.f32.mrb[5].mxu0  ;;  %v3010_v49 = vpop.f32.mrb[5].mxu1 }
 0x33f   :  { %v3850_v51 = vadd.f32 %v2928_v48, %v2198_v33  ;;  %v3852_v52 = vadd.f32 %v3010_v49, %v2206_v42  ;;  %v2930_v54 = vpop.f32.mrb[6].mxu0  ;;  %v3012_v55 = vpop.f32.mrb[6].mxu1 }
 0x340   :  { %v3015_v15 = vmax.f32 %v3849_v46, 0.0  ;;  %v3017_v56 = vmax.f32 %v3851_v47, 0.0  ;;  %v2931_v57 = vpop.f32.mrb[7].mxu0  ;;  %v3013_v50 = vpop.f32.mrb[7].mxu1 }
 0x341   :  { %v3016_v58 = vmax.f32 %v3850_v51, 0.0  ;;  %v3018_v59 = vmax.f32 %v3852_v52, 0.0 }
 0x342   :  { %v3019_v45 = vpack.c.bf16 %v3015_v15, %v3015_v15  ;;  %v3021_v53 = vpack.c.bf16 %v3017_v56, %v3017_v56 }
 0x343   :  { %v3020_v38 = vpack.c.bf16 %v3016_v58, %v3016_v58  ;;  %v3022_v60 = vpack.c.bf16 %v3018_v59, %v3018_v59 }
 0x345   :  { %3318 = vmatprep.mubr.bf16.mxu0 %v3020_v38  ;;  %3358 = vmatprep.mubr.bf16.mxu1 %v3022_v60 }
 0x346   :  { %3319 = vmatmul.mubr.bf16.vlgmr.msra.gmra.mrb[8].mxu0 %v3019_v45  ;;  %3359 = vmatmul.mubr.bf16.vlgmr.msra.gmra.mrb[8].mxu1 %v3021_v53 }
 0x419   :  { %v3817_v61 = vpop.f32.mrb[8].mxu0  ;;  %v3839_v62 = vpop.f32.mrb[8].mxu1 }
 0x41a   :  { %v3818_v0 = vpop.f32.mrb[9].mxu0  ;;  %v3840_v1 = vpop.f32.mrb[9].mxu1 }
 0x41b   :  { %v3819_v2 = vadd.f32 %v3818_v0, %v3817_v61  ;;  %v3841_v37 = vadd.f32 %v3840_v1, %v3839_v62  ;;  %v3820_v3 = vpop.f32.mrb[10].mxu0  ;;  %v3842_v4 = vpop.f32.mrb[10].mxu1 }
 0x41c   :  { %v3821_v5 = vpop.f32.mrb[11].mxu0  ;;  %v3843_v6 = vpop.f32.mrb[11].mxu1 }
 0x41d   :  { %v3321_v36 = vadd.f32 %v3819_v2, %v3768_v63 }
 0x41f   :  { %v3361_v7 = vadd.f32 %v3841_v37, %v3321_v36 }
 0x421   :  { %3366 = vst [vmem:[#allocation10] sm:$0xff] %v3361_v7 }
 0x422   :  { %4610 = shalt.err (!%p4607_p8)
}
 0x423   :  { %s4611_s15 = scalar_lea.hbm %s4838_s7, 128 }
 0x424   :  { %p4612_p9 = scmp.ne.s32.totalorder %s4838_s7, %s4611_s15  ;;  %p4615_p10 = scmp.lt.u32.totalorder %s4611_s15, %s4838_s7 }
 0x426   :  { %p4617_p11 = pnand %p4615_p10, %p4612_p9 }
 0x428   :  { %4620 = shalt.err (!%p4617_p11)
}
 0x429   :  { %3376 = dma.vmem_to_hbm [thread:$0]  %s3374_s10, 128, %s4838_s7, [#allocation4]  }
 0x42a   :  { %4627 = dma.done.wait [#allocation4], 128  }
 0x42b   :  { %4628 = vsyncadd [#allocation4], 4294967168 }
 0x42c   :  { %3380 = vsyncpa [#allocation3], 1 }
 0x42d   :  { %3381 = vsyncpa [#allocation6], 1 }
 0x42e   :  { %3382 = vsyncpa [#allocation9], 1 }
 0x42f   :  { %3383 = vsyncpa [#allocation4], 1 }

// kernel: tpu_custom_call.1
= control target key start
LH: loop header
LB: loop body
LE: loop exit
PB: predicated region body
PF: predicated region fallthrough
CT: control target
= control target key end

     0   :  { %12 = vsyncpa [#allocation3], 0  ;;  %s4831_s0 = inlined_call_operand.hbm [shape: bf16[2,1024], index: 0, kind: input, shape index: {}]   ;;  %s4832_s1 = inlined_call_operand.hbm [shape: bf16[1024,512], index: 1, kind: input, shape index: {}]   ;;  %s4833_s2 = inlined_call_operand.vmem [shape: f32[1,512], index: 2, kind: input, shape index: {}]   ;;  %s4834_s3 = inlined_call_operand.hbm [shape: bf16[512,512], index: 3, kind: input, shape index: {}]   ;;  %s4835_s4 = inlined_call_operand.vmem [shape: f32[1,512], index: 4, kind: input, shape index: {}]   ;;  %s4836_s5 = inlined_call_operand.hbm [shape: bf16[512,128], index: 5, kind: input, shape index: {}]   ;;  %s4837_s6 = inlined_call_operand.vmem [shape: f32[1,128], index: 6, kind: input, shape index: {}]   ;;  %s4838_s7 = inlined_call_operand.hbm [shape: f32[8,128], index: 7, kind: output, shape index: {}]  }
   0x1   :  { %13 = vsyncpa [#allocation6], 0 }
   0x2   :  { %14 = vsyncpa [#allocation9], 0 }
   0x3   :  { %15 = vsyncpa [#allocation4], 0 }
   0x4   :  { %20 = vsyncadd [#allocation3], 384  ;;  %s4629_s24 = smov [#allocation5]   ;;  %s4511_s28 = scalar_lea.hbm %s4832_s1, 32768 }
   0x5   :  { %s33_s25 = sshll.u32 %s4629_s24, 4  ;;  %p4512_p0 = scmp.ne.s32.totalorder %s4832_s1, %s4511_s28  ;;  %s34_s25 = int_to_ptr.vmem [resolvable:$true] %s33_s25 }
   0x6   :  { %p4515_p1 = scmp.lt.u32.totalorder %s4511_s28, %s4832_s1 }
   0x8   :  { %p4517_p2 = pnand %p4515_p1, %p4512_p0 }
   0xa   :  { %4520 = shalt.err (!%p4517_p2)
}
   0xb   :  { %s4521_s10 = scalar_lea.vmem %s34_s25, 32768  ;;  %p4526_p4 = scmp.lt.s32.totalorder %s34_s25, %s34_s25 }
   0xc   :  { %p4522_p3 = scmp.ne.s32.totalorder %s34_s25, %s4521_s10  ;;  %p4527_p5 = scmp.lt.s32.totalorder %s4521_s10, %s4521_s10 }
   0xe   :  { %p4528_p6 = por %p4527_p5, %p4526_p4 }
  0x10   :  { %p4529_p7 = pnand %p4528_p6, %p4522_p3 }
  0x12   :  { %4532 = shalt.err (!%p4529_p7)
}
  0x13   :  { %s4630_s11 = smov 256   ;;  %s4631_s12 = smov 16  }
  0x14   :  { %39 = dma.hbm_to_vmem [thread:$0]  %s4832_s1, 32768, %s34_s25, [#allocation6], %s4630_s11, %s4630_s11, %s4631_s12  }
  0x15   :  { %s4632_s15 = smov [#allocation2]   ;;  %s4533_s19 = scalar_lea.hbm %s4831_s0, 128 }
  0x16   :  { %s21_s16 = sshll.u32 %s4632_s15, 4  ;;  %p4534_p8 = scmp.ne.s32.totalorder %s4831_s0, %s4533_s19  ;;  %s22_s16 = int_to_ptr.vmem [resolvable:$true] %s21_s16 }
  0x17   :  { %p4537_p9 = scmp.lt.u32.totalorder %s4533_s19, %s4831_s0 }
  0x19   :  { %p4539_p10 = pnand %p4537_p9, %p4534_p8 }
  0x1b   :  { %4542 = shalt.err (!%p4539_p10)
}
  0x1c   :  { %s4543_s24 = scalar_lea.vmem %s22_s16, 128  ;;  %s4547_s1 = scalar_lea.vmem %s22_s16, 512 }
  0x1d   :  { %p4544_p11 = scmp.ne.s32.totalorder %s22_s16, %s4543_s24  ;;  %p4548_p12 = scmp.lt.s32.totalorder %s22_s16, %s22_s16 }
  0x1e   :  { %p4549_p13 = scmp.lt.s32.totalorder %s4547_s1, %s4543_s24 }
  0x20   :  { %p4550_p0 = por %p4549_p13, %p4548_p12 }
  0x22   :  { %p4551_p1 = pnand %p4550_p0, %p4544_p11 }
  0x24   :  { %4554 = shalt.err (!%p4551_p1)
}
  0x25   :  { %s4633_s25 = smov 128   ;;  %s4634_s26 = smov 8  }
  0x26   :  { %27 = dma.hbm_to_vmem [thread:$0]  %s4831_s0, 128, %s22_s16, [#allocation3], %s4633_s25, %s4633_s25, %s4634_s26  }
  0x27   :  { %s4635_s29 = smov [#allocation7]   ;;  %s4636_s8 = smov [#allocation8]  }
  0x28   :  { %s47_s30 = sshll.u32 %s4635_s29, 4  ;;  %s61_s9 = sshll.u32 %s4636_s8, 4  ;;  %s48_s30 = int_to_ptr.vmem [resolvable:$true] %s47_s30  ;;  %s4708_s9 = int_to_ptr.vmem [resolvable:$true] %s61_s9 }
  0x29   :  { %s4555_s14 = scalar_lea.hbm %s4834_s3, 16384 }
  0x2a   :  { %p4556_p2 = scmp.ne.s32.totalorder %s4834_s3, %s4555_s14  ;;  %p4559_p3 = scmp.lt.u32.totalorder %s4555_s14, %s4834_s3 }
  0x2c   :  { %p4561_p4 = pnand %p4559_p3, %p4556_p2 }
  0x2e   :  { %4564 = shalt.err (!%p4561_p4)
}
  0x2f   :  { %s4565_s0 = scalar_lea.vmem %s48_s30, 16384  ;;  %p4570_p6 = scmp.lt.s32.totalorder %s48_s30, %s48_s30 }
  0x30   :  { %p4566_p5 = scmp.ne.s32.totalorder %s48_s30, %s4565_s0  ;;  %p4571_p7 = scmp.lt.s32.totalorder %s4565_s0, %s4565_s0 }
  0x32   :  { %p4572_p8 = por %p4571_p7, %p4570_p6 }
  0x34   :  { %p4573_p9 = pnand %p4572_p8, %p4566_p5 }
  0x36   :  { %4576 = shalt.err (!%p4573_p9)
}
  0x37   :  { %53 = dma.hbm_to_vmem [thread:$0]  %s4834_s3, 16384, %s48_s30, [#allocation6], %s4630_s11, %s4630_s11, %s4631_s12  }
  0x38   :  { %s4577_s23 = scalar_lea.hbm %s4836_s5, 4096 }
  0x39   :  { %p4578_p10 = scmp.ne.s32.totalorder %s4836_s5, %s4577_s23  ;;  %p4581_p11 = scmp.lt.u32.totalorder %s4577_s23, %s4836_s5 }
  0x3b   :  { %p4583_p12 = pnand %p4581_p11, %p4578_p10 }
  0x3d   :  { %4586 = shalt.err (!%p4583_p12)
}
  0x3e   :  { %s4587_s27 = scalar_lea.vmem %s4708_s9, 4096  ;;  %p4592_p0 = scmp.lt.s32.totalorder %s4708_s9, %s4708_s9 }
  0x3f   :  { %p4588_p13 = scmp.ne.s32.totalorder %s4708_s9, %s4587_s27  ;;  %p4593_p1 = scmp.lt.s32.totalorder %s4587_s27, %s4587_s27 }
  0x41   :  { %p4594_p2 = por %p4593_p1, %p4592_p0 }
  0x43   :  { %p4595_p3 = pnand %p4594_p2, %p4588_p13 }
  0x45   :  { %4598 = shalt.err (!%p4595_p3)
}
  0x46   :  { %s4637_s3 = smov 64   ;;  %s4638_s11 = smov 4  }
  0x47   :  { %67 = dma.hbm_to_vmem [thread:$0]  %s4836_s5, 4096, %s4708_s9, [#allocation9], %s4637_s3, %s4637_s3, %s4638_s11  }
  0x48   :  { %4621 = dma.done.wait [#allocation3], 512  }
  0x49   :  { %4622 = vsyncadd [#allocation3], 4294966784 }
  0x4a   :  { %4623 = dma.done.wait [#allocation6], 49152  }
  0x4b   :  { %4624 = vsyncadd [#allocation6], 4294918144 }
  0x4c   :  { %4625 = dma.done.wait [#allocation9], 4096  }
  0x4d   :  { %4626 = vsyncadd [#allocation9], 4294963200  ;;  %v3897_v0 = vld [vmem:[#allocation5 + $0x4] ss:$16 sps:$4 sm:$0xff]   ;;  %v3899_v1 = vld [vmem:[#allocation5 + $0xc] ss:$16 sps:$4 sm:$0xff]   ;;  %v345_v38 = vlaneseq }
  0x4e   :  { %1725 = vmatprep.subr.bf16.mxu0 %v3897_v0  ;;  %v3901_v2 = vld [vmem:[#allocation5] ss:$16 sps:$4 sm:$0xff]   ;;  %v3902_v3 = vld [vmem:[#allocation5 + $0x8] ss:$16 sps:$4 sm:$0xff]   ;;  %1889 = vmatprep.subr.bf16.mxu1 %v3899_v1  ;;  %v3903_v4 = vld [vmem:[#allocation5 + $0x24] ss:$16 sps:$4 sm:$0xff]  }
  0x4f   :  { %1726 = vmatpush1.bf16.msra.mxu0 %v3901_v2  ;;  %1890 = vmatpush1.bf16.msra.mxu1 %v3902_v3  ;;  %v3905_v5 = vld [vmem:[#allocation5 + $0x2c] ss:$16 sps:$4 sm:$0xff]   ;;  %v3907_v6 = vld [vmem:[#allocation5 + $0x20] ss:$16 sps:$4 sm:$0xff]   ;;  %v3908_v7 = vld [vmem:[#allocation5 + $0x28] ss:$16 sps:$4 sm:$0xff]  }
  0x50   :  { %1727 = vmatprep.subr.bf16.mxu0 %v3903_v4  ;;  %1891 = vmatprep.subr.bf16.mxu1 %v3905_v5  ;;  %v3909_v8 = vld [vmem:[#allocation5 + $0x44] ss:$16 sps:$4 sm:$0xff]   ;;  %v3911_v9 = vld [vmem:[#allocation5 + $0x4c] ss:$16 sps:$4 sm:$0xff]   ;;  %v3913_v10 = vld [vmem:[#allocation5 + $0x40] ss:$16 sps:$4 sm:$0xff]  }
  0x51   :  { %v3914_v11 = vld [vmem:[#allocation5 + $0x48] ss:$16 sps:$4 sm:$0xff]   ;;  %v3915_v12 = vld [vmem:[#allocation5 + $0x64] ss:$16 sps:$4 sm:$0xff]   ;;  %v3917_v13 = vld [vmem:[#allocation5 + $0x6c] ss:$16 sps:$4 sm:$0xff]  }
  0x52   :  { %v3919_v14 = vld [vmem:[#allocation5 + $0x60] ss:$16 sps:$4 sm:$0xff]   ;;  %v3920_v15 = vld [vmem:[#allocation5 + $0x68] ss:$16 sps:$4 sm:$0xff]   ;;  %v3921_v16 = vld [vmem:[#allocation5 + $0x84] ss:$16 sps:$4 sm:$0xff]  }
  0x53   :  { %1728 = vmatpush1.bf16.msra.mxu0 %v3907_v6  ;;  %1892 = vmatpush1.bf16.msra.mxu1 %v3908_v7  ;;  %v3923_v17 = vld [vmem:[#allocation5 + $0x8c] ss:$16 sps:$4 sm:$0xff]   ;;  %v3925_v18 = vld [vmem:[#allocation5 + $0x80] ss:$16 sps:$4 sm:$0xff]   ;;  %v3926_v19 = vld [vmem:[#allocation5 + $0x88] ss:$16 sps:$4 sm:$0xff]  }
  0x54   :  { %1729 = vmatprep.subr.bf16.mxu0 %v3909_v8  ;;  %1893 = vmatprep.subr.bf16.mxu1 %v3911_v9  ;;  %v3927_v20 = vld [vmem:[#allocation5 + $0xa4] ss:$16 sps:$4 sm:$0xff]   ;;  %v3929_v21 = vld [vmem:[#allocation5 + $0xac] ss:$16 sps:$4 sm:$0xff]   ;;  %v3931_v22 = vld [vmem:[#allocation5 + $0xa0] ss:$16 sps:$4 sm:$0xff]  }
  0x55   :  { %v3932_v23 = vld [vmem:[#allocation5 + $0xa8] ss:$16 sps:$4 sm:$0xff]   ;;  %v3933_v24 = vld [vmem:[#allocation5 + $0xc4] ss:$16 sps:$4 sm:$0xff]   ;;  %v3935_v25 = vld [vmem:[#allocation5 + $0xcc] ss:$16 sps:$4 sm:$0xff]  }
  0x56   :  { %v3937_v26 = vld [vmem:[#allocation5 + $0xc0] ss:$16 sps:$4 sm:$0xff]   ;;  %v3938_v27 = vld [vmem:[#allocation5 + $0xc8] ss:$16 sps:$4 sm:$0xff]   ;;  %v3939_v28 = vld [vmem:[#allocation5 + $0xe4] ss:$16 sps:$4 sm:$0xff]  }
  0x57   :  { %1730 = vmatpush1.bf16.msra.mxu0 %v3913_v10  ;;  %1894 = vmatpush1.bf16.msra.mxu1 %v3914_v11  ;;  %v3941_v29 = vld [vmem:[#allocation5 + $0xec] ss:$16 sps:$4 sm:$0xff]   ;;  %v3943_v30 = vld [vmem:[#allocation5 + $0xe0] ss:$16 sps:$4 sm:$0xff]   ;;  %v3944_v31 = vld [vmem:[#allocation5 + $0xe8] ss:$16 sps:$4 sm:$0xff]  }
  0x58   :  { %1731 = vmatprep.subr.bf16.mxu0 %v3915_v12  ;;  %1895 = vmatprep.subr.bf16.mxu1 %v3917_v13  ;;  %v3945_v32 = vld [vmem:[#allocation5 + $0x104] ss:$16 sps:$4 sm:$0xff]   ;;  %v3947_v33 = vld [vmem:[#allocation5 + $0x10c] ss:$16 sps:$4 sm:$0xff]   ;;  %v3949_v34 = vld [vmem:[#allocation5 + $0x100] ss:$16 sps:$4 sm:$0xff]  }
  0x59   :  { %v3950_v35 = vld [vmem:[#allocation5 + $0x108] ss:$16 sps:$4 sm:$0xff]   ;;  %v3951_v36 = vld [vmem:[#allocation5 + $0x124] ss:$16 sps:$4 sm:$0xff]   ;;  %v3953_v37 = vld [vmem:[#allocation5 + $0x12c] ss:$16 sps:$4 sm:$0xff]  }
  0x5a   :  { %v4639_v39 = vmov 1966171168   ;;  %v3955_v41 = vld [vmem:[#allocation5 + $0x120] ss:$16 sps:$4 sm:$0xff]   ;;  %v3956_v42 = vld [vmem:[#allocation5 + $0x128] ss:$16 sps:$4 sm:$0xff]  }
  0x5b   :  { %1732 = vmatpush1.bf16.msra.mxu0 %v3919_v14  ;;  %1896 = vmatpush1.bf16.msra.mxu1 %v3920_v15  ;;  %v374_v40 = vunpack.c.l.s4 %v4639_v39  ;;  %v3957_v43 = vld [vmem:[#allocation5 + $0x144] ss:$16 sps:$4 sm:$0xff]   ;;  %v3959_v44 = vld [vmem:[#allocation5 + $0x14c] ss:$16 sps:$4 sm:$0xff]   ;;  %v4742_v45 = vshrl.u32 %v345_v38, 7  ;;  %s4640_s9 = smov [#allocation10]  }
  0x5c   :  { %1733 = vmatprep.subr.bf16.mxu0 %v3921_v16  ;;  %1897 = vmatprep.subr.bf16.mxu1 %v3923_v17  ;;  %v3961_v47 = vld [vmem:[#allocation5 + $0x140] ss:$16 sps:$4 sm:$0xff]   ;;  %v3962_v48 = vld [vmem:[#allocation5 + $0x148] ss:$16 sps:$4 sm:$0xff]   ;;  %v3963_v49 = vld [vmem:[#allocation5 + $0x164] ss:$16 sps:$4 sm:$0xff]  }
  0x5d   :  { %v375_v46 = vunpack.c.0.s8 %v374_v40  ;;  %v3965_v50 = vld [vmem:[#allocation5 + $0x16c] ss:$16 sps:$4 sm:$0xff]   ;;  %v3967_v51 = vld [vmem:[#allocation5 + $0x160] ss:$16 sps:$4 sm:$0xff]   ;;  %v3968_v52 = vld [vmem:[#allocation5 + $0x168] ss:$16 sps:$4 sm:$0xff]  }
  0x5e   :  { %v3993_v54 = vld [vmem:[#allocation2] ss:$8 sps:$4 sm:$0xff]   ;;  %v3995_v55 = vld [vmem:[#allocation2 + $0x10] ss:$8 sps:$4 sm:$0xff]   ;;  %v3969_v56 = vld [vmem:[#allocation5 + $0x184] ss:$16 sps:$4 sm:$0xff]  }
  0x5f   :  { %1734 = vmatpush1.bf16.msra.mxu0 %v3925_v18  ;;  %1898 = vmatpush1.bf16.msra.mxu1 %v3926_v19  ;;  %v4745_v53 = vsub.s32 %v375_v46, %v4742_v45  ;;  %v3971_v57 = vld [vmem:[#allocation5 + $0x18c] ss:$16 sps:$4 sm:$0xff]   ;;  %v3973_v60 = vld [vmem:[#allocation5 + $0x180] ss:$16 sps:$4 sm:$0xff]   ;;  %v3974_v61 = vld [vmem:[#allocation5 + $0x188] ss:$16 sps:$4 sm:$0xff]  }
  0x60   :  { %1735 = vmatprep.subr.bf16.mxu0 %v3927_v20  ;;  %1899 = vmatprep.subr.bf16.mxu1 %v3929_v21  ;;  %v3975_v63 = vld [vmem:[#allocation5 + $0x1a4] ss:$16 sps:$4 sm:$0xff]   ;;  %v3977_v0 = vld [vmem:[#allocation5 + $0x1ac] ss:$16 sps:$4 sm:$0xff]   ;;  %v3979_v2 = vld [vmem:[#allocation5 + $0x1a0] ss:$16 sps:$4 sm:$0xff]  }
  0x61   :  { %v379_v58 = vrot.slane %v3993_v54, %v4745_v53  ;;  %v393_v59 = vrot.slane %v3995_v55, %v4745_v53  ;;  %v3980_v3 = vld [vmem:[#allocation5 + $0x1a8] ss:$16 sps:$4 sm:$0xff]   ;;  %v3981_v4 = vld [vmem:[#allocation5 + $0x1c4] ss:$16 sps:$4 sm:$0xff]   ;;  %v3983_v5 = vld [vmem:[#allocation5 + $0x1cc] ss:$16 sps:$4 sm:$0xff]  }
  0x62   :  { %v3985_v6 = vld [vmem:[#allocation5 + $0x1c0] ss:$16 sps:$4 sm:$0xff]   ;;  %v3986_v7 = vld [vmem:[#allocation5 + $0x1c8] ss:$16 sps:$4 sm:$0xff]   ;;  %v3987_v8 = vld [vmem:[#allocation5 + $0x1e4] ss:$16 sps:$4 sm:$0xff]  }
  0x63   :  { %1736 = vmatpush1.bf16.msra.mxu0 %v3931_v22  ;;  %1900 = vmatpush1.bf16.msra.mxu1 %v3932_v23  ;;  %v402_v62 = vcombine.high %v379_v58, %v393_v59  ;;  %v3989_v9 = vld [vmem:[#allocation5 + $0x1ec] ss:$16 sps:$4 sm:$0xff]   ;;  %v401_v10 = vcombine.low %v379_v58, %v393_v59  ;;  %v3991_v11 = vld [vmem:[#allocation5 + $0x1e0] ss:$16 sps:$4 sm:$0xff]   ;;  %v3992_v12 = vld [vmem:[#allocation5 + $0x1e8] ss:$16 sps:$4 sm:$0xff]  }
  0x64   :  { %1737 = vmatprep.subr.bf16.mxu0 %v3933_v24  ;;  %1901 = vmatprep.subr.bf16.mxu1 %v3935_v25  ;;  %v3999_v13 = vld [vmem:[#allocation5 + $0x204] ss:$16 sps:$4 sm:$0xff]   ;;  %v4002_v14 = vld [vmem:[#allocation5 + $0x20c] ss:$16 sps:$4 sm:$0xff]   ;;  %v3997_v16 = vld [vmem:[#allocation5 + $0x200] ss:$16 sps:$4 sm:$0xff]  }
  0x65   :  { %v425_v1 = vrot.slane %v402_v62, %v4745_v53  ;;  %v4751_v15 = vrot.slane %v401_v10, %v4745_v53  ;;  %v4000_v17 = vld [vmem:[#allocation5 + $0x208] ss:$16 sps:$4 sm:$0xff]   ;;  %v4005_v18 = vld [vmem:[#allocation5 + $0x224] ss:$16 sps:$4 sm:$0xff]   ;;  %v4008_v19 = vld [vmem:[#allocation5 + $0x22c] ss:$16 sps:$4 sm:$0xff]  }
  0x66   :  { %v4003_v21 = vld [vmem:[#allocation5 + $0x220] ss:$16 sps:$4 sm:$0xff]   ;;  %v4006_v22 = vld [vmem:[#allocation5 + $0x228] ss:$16 sps:$4 sm:$0xff]   ;;  %v4011_v23 = vld [vmem:[#allocation5 + $0x244] ss:$16 sps:$4 sm:$0xff]  }
  0x67   :  { %1738 = vmatpush1.bf16.msra.mxu0 %v3937_v26  ;;  %1902 = vmatpush1.bf16.msra.mxu1 %v3938_v27  ;;  %v435_v20 = vcombine.high %v425_v1, %v425_v1  ;;  %v4014_v24 = vld [vmem:[#allocation5 + $0x24c] ss:$16 sps:$4 sm:$0xff]   ;;  %v4009_v25 = vld [vmem:[#allocation5 + $0x240] ss:$16 sps:$4 sm:$0xff]   ;;  %v4012_v26 = vld [vmem:[#allocation5 + $0x248] ss:$16 sps:$4 sm:$0xff]  }
  0x68   :  { %1739 = vmatprep.subr.bf16.mxu0 %v3939_v28  ;;  %1903 = vmatprep.subr.bf16.mxu1 %v3941_v29  ;;  %v4017_v27 = vld [vmem:[#allocation5 + $0x264] ss:$16 sps:$4 sm:$0xff]   ;;  %v4020_v28 = vld [vmem:[#allocation5 + $0x26c] ss:$16 sps:$4 sm:$0xff]   ;;  %v4015_v29 = vld [vmem:[#allocation5 + $0x260] ss:$16 sps:$4 sm:$0xff]  }
  0x69   :  { %1757 = vmatprep.mubr.bf16.mxu0 %v425_v1  ;;  %1921 = vmatprep.mubr.bf16.mxu1 %v425_v1  ;;  %v4030_v38 = vld [vmem:[#allocation5 + $0x2a8] ss:$16 sps:$4 sm:$0xff]   ;;  %v4035_v39 = vld [vmem:[#allocation5 + $0x2c4] ss:$16 sps:$4 sm:$0xff]   ;;  %v4038_v40 = vld [vmem:[#allocation5 + $0x2cc] ss:$16 sps:$4 sm:$0xff]  }
  0x6a   :  { %v4039_v46 = vld [vmem:[#allocation5 + $0x2e0] ss:$16 sps:$4 sm:$0xff]   ;;  %v4056_v54 = vld [vmem:[#allocation5 + $0x32c] ss:$16 sps:$4 sm:$0xff]   ;;  %v4071_v1 = vld [vmem:[#allocation5 + $0x384] ss:$16 sps:$4 sm:$0xff]  }
  0x6b   :  { %1740 = vmatpush1.bf16.msra.mxu0 %v3943_v30  ;;  %1904 = vmatpush1.bf16.msra.mxu1 %v3944_v31  ;;  %v4018_v30 = vld [vmem:[#allocation5 + $0x268] ss:$16 sps:$4 sm:$0xff]   ;;  %v4023_v31 = vld [vmem:[#allocation5 + $0x284] ss:$16 sps:$4 sm:$0xff]   ;;  %v4051_v55 = vld [vmem:[#allocation5 + $0x320] ss:$16 sps:$4 sm:$0xff]  }
  0x6c   :  { %1741 = vmatprep.subr.bf16.mxu0 %v3945_v32  ;;  %1905 = vmatprep.subr.bf16.mxu1 %v3947_v33  ;;  %v4026_v32 = vld [vmem:[#allocation5 + $0x28c] ss:$16 sps:$4 sm:$0xff]   ;;  %v4021_v33 = vld [vmem:[#allocation5 + $0x280] ss:$16 sps:$4 sm:$0xff]   ;;  %s3373_s10 = sshll.u32 %s4640_s9, 4  ;;  %s3374_s10 = int_to_ptr.vmem [resolvable:$true] %s3373_s10 }
  0x6d   :  { %v4062_v58 = vld [vmem:[#allocation5 + $0x34c] ss:$16 sps:$4 sm:$0xff]   ;;  %v4057_v59 = vld [vmem:[#allocation5 + $0x340] ss:$16 sps:$4 sm:$0xff]   ;;  %s4599_s13 = scalar_lea.vmem %s3374_s10, 128  ;;  %p4604_p5 = scmp.lt.s32.totalorder %s3374_s10, %s3374_s10 }
  0x6e   :  { %v4068_v62 = vld [vmem:[#allocation5 + $0x36c] ss:$16 sps:$4 sm:$0xff]   ;;  %p4600_p4 = scmp.ne.s32.totalorder %s3374_s10, %s4599_s13  ;;  %p4605_p6 = scmp.lt.s32.totalorder %s4599_s13, %s4599_s13 }
  0x6f   :  { %1742 = vmatpush1.bf16.msra.mxu0 %v3949_v34  ;;  %1906 = vmatpush1.bf16.msra.mxu1 %v3950_v35  ;;  %v4024_v34 = vld [vmem:[#allocation5 + $0x288] ss:$16 sps:$4 sm:$0xff]   ;;  %v4029_v35 = vld [vmem:[#allocation5 + $0x2a4] ss:$16 sps:$4 sm:$0xff]   ;;  %v4086_v10 = vld [vmem:[#allocation5 + $0x3cc] ss:$16 sps:$4 sm:$0xff]  }
  0x70   :  { %1743 = vmatprep.subr.bf16.mxu0 %v3951_v36  ;;  %1907 = vmatprep.subr.bf16.mxu1 %v3953_v37  ;;  %v4032_v36 = vld [vmem:[#allocation5 + $0x2ac] ss:$16 sps:$4 sm:$0xff]   ;;  %v4027_v37 = vld [vmem:[#allocation5 + $0x2a0] ss:$16 sps:$4 sm:$0xff]   ;;  %p4606_p7 = por %p4605_p6, %p4604_p5 }
  0x72   :  { %p4607_p8 = pnand %p4606_p7, %p4600_p4 }
  0x73   :  { %1744 = vmatpush1.bf16.msra.mxu0 %v3955_v41  ;;  %1908 = vmatpush1.bf16.msra.mxu1 %v3956_v42  ;;  %v4033_v41 = vld [vmem:[#allocation5 + $0x2c0] ss:$16 sps:$4 sm:$0xff]   ;;  %v4036_v42 = vld [vmem:[#allocation5 + $0x2c8] ss:$16 sps:$4 sm:$0xff]  }
  0x74   :  { %1745 = vmatprep.subr.bf16.mxu0 %v3957_v43  ;;  %1909 = vmatprep.subr.bf16.mxu1 %v3959_v44  ;;  %v4041_v43 = vld [vmem:[#allocation5 + $0x2e4] ss:$16 sps:$4 sm:$0xff]   ;;  %v4044_v44 = vld [vmem:[#allocation5 + $0x2ec] ss:$16 sps:$4 sm:$0xff]  }
  0x77   :  { %1746 = vmatpush1.bf16.msra.mxu0 %v3961_v47  ;;  %1910 = vmatpush1.bf16.msra.mxu1 %v3962_v48  ;;  %v4042_v47 = vld [vmem:[#allocation5 + $0x2e8] ss:$16 sps:$4 sm:$0xff]   ;;  %v4047_v48 = vld [vmem:[#allocation5 + $0x304] ss:$16 sps:$4 sm:$0xff]  }
  0x78   :  { %1747 = vmatprep.subr.bf16.mxu0 %v3963_v49  ;;  %1911 = vmatprep.subr.bf16.mxu1 %v3965_v50  ;;  %v4050_v49 = vld [vmem:[#allocation5 + $0x30c] ss:$16 sps:$4 sm:$0xff]   ;;  %v4045_v50 = vld [vmem:[#allocation5 + $0x300] ss:$16 sps:$4 sm:$0xff]  }
  0x7b   :  { %1748 = vmatpush1.bf16.msra.mxu0 %v3967_v51  ;;  %1912 = vmatpush1.bf16.msra.mxu1 %v3968_v52  ;;  %v4048_v51 = vld [vmem:[#allocation5 + $0x308] ss:$16 sps:$4 sm:$0xff]   ;;  %v4053_v52 = vld [vmem:[#allocation5 + $0x324] ss:$16 sps:$4 sm:$0xff]  }
  0x7c   :  { %1749 = vmatprep.subr.bf16.mxu0 %v3969_v56  ;;  %1913 = vmatprep.subr.bf16.mxu1 %v3971_v57  ;;  %v4054_v56 = vld [vmem:[#allocation5 + $0x328] ss:$16 sps:$4 sm:$0xff]   ;;  %v4059_v57 = vld [vmem:[#allocation5 + $0x344] ss:$16 sps:$4 sm:$0xff]  }
  0x7f   :  { %1750 = vmatpush1.bf16.msra.mxu0 %v3973_v60  ;;  %1914 = vmatpush1.bf16.msra.mxu1 %v3974_v61  ;;  %v4060_v60 = vld [vmem:[#allocation5 + $0x348] ss:$16 sps:$4 sm:$0xff]   ;;  %v4065_v61 = vld [vmem:[#allocation5 + $0x364] ss:$16 sps:$4 sm:$0xff]  }
  0x80   :  { %1751 = vmatprep.subr.bf16.mxu0 %v3975_v63  ;;  %1915 = vmatprep.subr.bf16.mxu1 %v3977_v0  ;;  %v4063_v63 = vld [vmem:[#allocation5 + $0x360] ss:$16 sps:$4 sm:$0xff]   ;;  %v4066_v0 = vld [vmem:[#allocation5 + $0x368] ss:$16 sps:$4 sm:$0xff]  }
  0x83   :  { %1752 = vmatpush1.bf16.msra.mxu0 %v3979_v2  ;;  %1916 = vmatpush1.bf16.msra.mxu1 %v3980_v3  ;;  %v4074_v2 = vld [vmem:[#allocation5 + $0x38c] ss:$16 sps:$4 sm:$0xff]   ;;  %v4069_v3 = vld [vmem:[#allocation5 + $0x380] ss:$16 sps:$4 sm:$0xff]  }
  0x84   :  { %1753 = vmatprep.subr.bf16.mxu0 %v3981_v4  ;;  %1917 = vmatprep.subr.bf16.mxu1 %v3983_v5  ;;  %v4072_v4 = vld [vmem:[#allocation5 + $0x388] ss:$16 sps:$4 sm:$0xff]   ;;  %v4077_v5 = vld [vmem:[#allocation5 + $0x3a4] ss:$16 sps:$4 sm:$0xff]  }
  0x87   :  { %1754 = vmatpush1.bf16.msra.mxu0 %v3985_v6  ;;  %1918 = vmatpush1.bf16.msra.mxu1 %v3986_v7  ;;  %v4080_v6 = vld [vmem:[#allocation5 + $0x3ac] ss:$16 sps:$4 sm:$0xff]   ;;  %v4075_v7 = vld [vmem:[#allocation5 + $0x3a0] ss:$16 sps:$4 sm:$0xff]  }
  0x88   :  { %1755 = vmatprep.subr.bf16.mxu0 %v3987_v8  ;;  %1919 = vmatprep.subr.bf16.mxu1 %v3989_v9  ;;  %v4078_v8 = vld [vmem:[#allocation5 + $0x3a8] ss:$16 sps:$4 sm:$0xff]   ;;  %v4083_v9 = vld [vmem:[#allocation5 + $0x3c4] ss:$16 sps:$4 sm:$0xff]  }
  0x8b   :  { %1756 = vmatpush1.bf16.msra.mxu0 %v3991_v11  ;;  %1920 = vmatpush1.bf16.msra.mxu1 %v3992_v12  ;;  %v4081_v11 = vld [vmem:[#allocation5 + $0x3c0] ss:$16 sps:$4 sm:$0xff]   ;;  %v4084_v12 = vld [vmem:[#allocation5 + $0x3c8] ss:$16 sps:$4 sm:$0xff]  }
  0x8c   :  { %1766 = vmatprep.subr.bf16.mxu0 %v3999_v13  ;;  %1930 = vmatprep.subr.bf16.mxu1 %v4002_v14  ;;  %v4089_v13 = vld [vmem:[#allocation5 + $0x3e4] ss:$16 sps:$4 sm:$0xff]   ;;  %v4092_v14 = vld [vmem:[#allocation5 + $0x3ec] ss:$16 sps:$4 sm:$0xff]  }
  0x8e   :  { %1758 = vmatmul.mubr.bf16.vlgmr.msra.gmra.mrb[0].mxu0 %v4751_v15  ;;  %1922 = vmatmul.mubr.bf16.vlgmr.msra.gmra.mrb[0].mxu1 %v4751_v15 }
  0x8f   :  { %1767 = vmatpush1.bf16.msra.mxu0 %v3997_v16  ;;  %1931 = vmatpush1.bf16.msra.mxu1 %v4000_v17  ;;  %v4087_v16 = vld [vmem:[#allocation5 + $0x3e0] ss:$16 sps:$4 sm:$0xff]   ;;  %v4090_v17 = vld [vmem:[#allocation5 + $0x3e8] ss:$16 sps:$4 sm:$0xff]  }
  0x90   :  { %1768 = vmatprep.subr.bf16.mxu0 %v4005_v18  ;;  %1932 = vmatprep.subr.bf16.mxu1 %v4008_v19  ;;  %v4095_v18 = vld [vmem:[#allocation5 + $0x404] ss:$16 sps:$4 sm:$0xff]   ;;  %v4098_v19 = vld [vmem:[#allocation5 + $0x40c] ss:$16 sps:$4 sm:$0xff]  }
  0x91   :  { %1798 = vmatprep.mubr.bf16.mxu0 %v435_v20  ;;  %1962 = vmatprep.mubr.bf16.mxu1 %v435_v20  ;;  %v433_v20 = vcombine.high %v4751_v15, %v4751_v15 }
  0x93   :  { %1769 = vmatpush1.bf16.msra.mxu0 %v4003_v21  ;;  %1933 = vmatpush1.bf16.msra.mxu1 %v4006_v22  ;;  %v4093_v21 = vld [vmem:[#allocation5 + $0x400] ss:$16 sps:$4 sm:$0xff]   ;;  %v4096_v22 = vld [vmem:[#allocation5 + $0x408] ss:$16 sps:$4 sm:$0xff]  }
  0x94   :  { %1770 = vmatprep.subr.bf16.mxu0 %v4011_v23  ;;  %1934 = vmatprep.subr.bf16.mxu1 %v4014_v24  ;;  %v4101_v23 = vld [vmem:[#allocation5 + $0x424] ss:$16 sps:$4 sm:$0xff]   ;;  %v4104_v24 = vld [vmem:[#allocation5 + $0x42c] ss:$16 sps:$4 sm:$0xff]  }
  0x97   :  { %1771 = vmatpush1.bf16.msra.mxu0 %v4009_v25  ;;  %1935 = vmatpush1.bf16.msra.mxu1 %v4012_v26  ;;  %v4189_v25 = vld [vmem:[#allocation2 + $0x4] ss:$8 sps:$4 sm:$0xff]   ;;  %v4190_v26 = vld [vmem:[#allocation2 + $0x14] ss:$8 sps:$4 sm:$0xff]  }
  0x98   :  { %1772 = vmatprep.subr.bf16.mxu0 %v4017_v27  ;;  %1936 = vmatprep.subr.bf16.mxu1 %v4020_v28  ;;  %v4099_v27 = vld [vmem:[#allocation5 + $0x420] ss:$16 sps:$4 sm:$0xff]   ;;  %v4102_v28 = vld [vmem:[#allocation5 + $0x428] ss:$16 sps:$4 sm:$0xff]   ;;  %v4761_v15 = vrot.slane %v4190_v26, %v4745_v53 }
  0x99   :  { %v4186_v26 = vld [vmem:[#allocation5 + $0x5e8] ss:$16 sps:$4 sm:$0xff]  }
  0x9b   :  { %1773 = vmatpush1.bf16.msra.mxu0 %v4015_v29  ;;  %1937 = vmatpush1.bf16.msra.mxu1 %v4018_v30  ;;  %v4107_v29 = vld [vmem:[#allocation5 + $0x444] ss:$16 sps:$4 sm:$0xff]   ;;  %v4758_v30 = vrot.slane %v4189_v25, %v4745_v53  ;;  %v4183_v25 = vld [vmem:[#allocation5 + $0x5e0] ss:$16 sps:$4 sm:$0xff]  }
  0x9c   :  { %1774 = vmatprep.subr.bf16.mxu0 %v4023_v31  ;;  %1938 = vmatprep.subr.bf16.mxu1 %v4026_v32  ;;  %v4110_v31 = vld [vmem:[#allocation5 + $0x44c] ss:$16 sps:$4 sm:$0xff]  }
  0x9d   :  { %v404_v32 = vcombine.high %v4758_v30, %v4761_v15 }
  0x9f   :  { %1775 = vmatpush1.bf16.msra.mxu0 %v4021_v33  ;;  %1939 = vmatpush1.bf16.msra.mxu1 %v4024_v34  ;;  %v4105_v33 = vld [vmem:[#allocation5 + $0x440] ss:$16 sps:$4 sm:$0xff]   ;;  %v4108_v34 = vld [vmem:[#allocation5 + $0x448] ss:$16 sps:$4 sm:$0xff]  }
  0xa0   :  { %1776 = vmatprep.subr.bf16.mxu0 %v4029_v35  ;;  %1940 = vmatprep.subr.bf16.mxu1 %v4032_v36  ;;  %v4113_v35 = vld [vmem:[#allocation5 + $0x464] ss:$16 sps:$4 sm:$0xff]   ;;  %v4766_v36 = vrot.slane %v404_v32, %v4745_v53  ;;  %v4194_v32 = vld [vmem:[#allocation5 + $0x608] ss:$16 sps:$4 sm:$0xff]  }
  0xa3   :  { %1777 = vmatpush1.bf16.msra.mxu0 %v4027_v37  ;;  %1941 = vmatpush1.bf16.msra.mxu1 %v4030_v38  ;;  %v4116_v37 = vld [vmem:[#allocation5 + $0x46c] ss:$16 sps:$4 sm:$0xff]   ;;  %v4111_v38 = vld [vmem:[#allocation5 + $0x460] ss:$16 sps:$4 sm:$0xff]  }
  0xa4   :  { %1778 = vmatprep.subr.bf16.mxu0 %v4035_v39  ;;  %1942 = vmatprep.subr.bf16.mxu1 %v4038_v40  ;;  %v4114_v39 = vld [vmem:[#allocation5 + $0x468] ss:$16 sps:$4 sm:$0xff]   ;;  %v4119_v40 = vld [vmem:[#allocation5 + $0x484] ss:$16 sps:$4 sm:$0xff]  }
  0xa7   :  { %1779 = vmatpush1.bf16.msra.mxu0 %v4033_v41  ;;  %1943 = vmatpush1.bf16.msra.mxu1 %v4036_v42  ;;  %v4122_v41 = vld [vmem:[#allocation5 + $0x48c] ss:$16 sps:$4 sm:$0xff]   ;;  %v4117_v42 = vld [vmem:[#allocation5 + $0x480] ss:$16 sps:$4 sm:$0xff]  }
  0xa8   :  { %1780 = vmatprep.subr.bf16.mxu0 %v4041_v43  ;;  %1944 = vmatprep.subr.bf16.mxu1 %v4044_v44  ;;  %v4120_v43 = vld [vmem:[#allocation5 + $0x488] ss:$16 sps:$4 sm:$0xff]   ;;  %v4125_v44 = vld [vmem:[#allocation5 + $0x4a4] ss:$16 sps:$4 sm:$0xff]  }
  0xab   :  { %1781 = vmatpush1.bf16.msra.mxu0 %v4039_v46  ;;  %1945 = vmatpush1.bf16.msra.mxu1 %v4042_v47  ;;  %v4128_v46 = vld [vmem:[#allocation5 + $0x4ac] ss:$16 sps:$4 sm:$0xff]   ;;  %v4123_v47 = vld [vmem:[#allocation5 + $0x4a0] ss:$16 sps:$4 sm:$0xff]  }
  0xac   :  { %1782 = vmatprep.subr.bf16.mxu0 %v4047_v48  ;;  %1946 = vmatprep.subr.bf16.mxu1 %v4050_v49  ;;  %v4126_v48 = vld [vmem:[#allocation5 + $0x4a8] ss:$16 sps:$4 sm:$0xff]   ;;  %v4131_v49 = vld [vmem:[#allocation5 + $0x4c4] ss:$16 sps:$4 sm:$0xff]  }
  0xaf   :  { %1783 = vmatpush1.bf16.msra.mxu0 %v4045_v50  ;;  %1947 = vmatpush1.bf16.msra.mxu1 %v4048_v51  ;;  %v4134_v50 = vld [vmem:[#allocation5 + $0x4cc] ss:$16 sps:$4 sm:$0xff]   ;;  %v4129_v51 = vld [vmem:[#allocation5 + $0x4c0] ss:$16 sps:$4 sm:$0xff]  }
  0xb0   :  { %1784 = vmatprep.subr.bf16.mxu0 %v4053_v52  ;;  %1948 = vmatprep.subr.bf16.mxu1 %v4056_v54  ;;  %v4132_v52 = vld [vmem:[#allocation5 + $0x4c8] ss:$16 sps:$4 sm:$0xff]   ;;  %v4137_v54 = vld [vmem:[#allocation5 + $0x4e4] ss:$16 sps:$4 sm:$0xff]  }
  0xb3   :  { %1785 = vmatpush1.bf16.msra.mxu0 %v4051_v55  ;;  %1949 = vmatpush1.bf16.msra.mxu1 %v4054_v56  ;;  %v4140_v55 = vld [vmem:[#allocation5 + $0x4ec] ss:$16 sps:$4 sm:$0xff]   ;;  %v4135_v56 = vld [vmem:[#allocation5 + $0x4e0] ss:$16 sps:$4 sm:$0xff]  }
  0xb4   :  { %1786 = vmatprep.subr.bf16.mxu0 %v4059_v57  ;;  %1950 = vmatprep.subr.bf16.mxu1 %v4062_v58  ;;  %v4138_v57 = vld [vmem:[#allocation5 + $0x4e8] ss:$16 sps:$4 sm:$0xff]   ;;  %v4143_v58 = vld [vmem:[#allocation5 + $0x504] ss:$16 sps:$4 sm:$0xff]  }
  0xb7   :  { %1787 = vmatpush1.bf16.msra.mxu0 %v4057_v59  ;;  %1951 = vmatpush1.bf16.msra.mxu1 %v4060_v60  ;;  %v4146_v59 = vld [vmem:[#allocation5 + $0x50c] ss:$16 sps:$4 sm:$0xff]   ;;  %v4141_v60 = vld [vmem:[#allocation5 + $0x500] ss:$16 sps:$4 sm:$0xff]  }
  0xb8   :  { %1788 = vmatprep.subr.bf16.mxu0 %v4065_v61  ;;  %1952 = vmatprep.subr.bf16.mxu1 %v4068_v62  ;;  %v4144_v61 = vld [vmem:[#allocation5 + $0x508] ss:$16 sps:$4 sm:$0xff]   ;;  %v4149_v62 = vld [vmem:[#allocation5 + $0x524] ss:$16 sps:$4 sm:$0xff]  }
  0xbb   :  { %1789 = vmatpush1.bf16.msra.mxu0 %v4063_v63  ;;  %1953 = vmatpush1.bf16.msra.mxu1 %v4066_v0  ;;  %v4152_v63 = vld [vmem:[#allocation5 + $0x52c] ss:$16 sps:$4 sm:$0xff]   ;;  %v4147_v0 = vld [vmem:[#allocation5 + $0x520] ss:$16 sps:$4 sm:$0xff]  }
  0xbc   :  { %1790 = vmatprep.subr.bf16.mxu0 %v4071_v1  ;;  %1954 = vmatprep.subr.bf16.mxu1 %v4074_v2  ;;  %v4150_v1 = vld [vmem:[#allocation5 + $0x528] ss:$16 sps:$4 sm:$0xff]   ;;  %v4155_v2 = vld [vmem:[#allocation5 + $0x544] ss:$16 sps:$4 sm:$0xff]  }
  0xbf   :  { %1791 = vmatpush1.bf16.msra.mxu0 %v4069_v3  ;;  %1955 = vmatpush1.bf16.msra.mxu1 %v4072_v4  ;;  %v4158_v3 = vld [vmem:[#allocation5 + $0x54c] ss:$16 sps:$4 sm:$0xff]   ;;  %v4153_v4 = vld [vmem:[#allocation5 + $0x540] ss:$16 sps:$4 sm:$0xff]  }
  0xc0   :  { %1792 = vmatprep.subr.bf16.mxu0 %v4077_v5  ;;  %1956 = vmatprep.subr.bf16.mxu1 %v4080_v6  ;;  %v4156_v5 = vld [vmem:[#allocation5 + $0x548] ss:$16 sps:$4 sm:$0xff]   ;;  %v4161_v6 = vld [vmem:[#allocation5 + $0x564] ss:$16 sps:$4 sm:$0xff]  }
  0xc3   :  { %1793 = vmatpush1.bf16.msra.mxu0 %v4075_v7  ;;  %1957 = vmatpush1.bf16.msra.mxu1 %v4078_v8  ;;  %v4164_v7 = vld [vmem:[#allocation5 + $0x56c] ss:$16 sps:$4 sm:$0xff]   ;;  %v4159_v8 = vld [vmem:[#allocation5 + $0x560] ss:$16 sps:$4 sm:$0xff]  }
  0xc4   :  { %1794 = vmatprep.subr.bf16.mxu0 %v4083_v9  ;;  %1958 = vmatprep.subr.bf16.mxu1 %v4086_v10  ;;  %v4162_v9 = vld [vmem:[#allocation5 + $0x568] ss:$16 sps:$4 sm:$0xff]   ;;  %v4167_v10 = vld [vmem:[#allocation5 + $0x584] ss:$16 sps:$4 sm:$0xff]  }
  0xc7   :  { %1795 = vmatpush1.bf16.msra.mxu0 %v4081_v11  ;;  %1959 = vmatpush1.bf16.msra.mxu1 %v4084_v12  ;;  %v4170_v11 = vld [vmem:[#allocation5 + $0x58c] ss:$16 sps:$4 sm:$0xff]   ;;  %v4165_v12 = vld [vmem:[#allocation5 + $0x580] ss:$16 sps:$4 sm:$0xff]  }
  0xc8   :  { %1796 = vmatprep.subr.bf16.mxu0 %v4089_v13  ;;  %1960 = vmatprep.subr.bf16.mxu1 %v4092_v14  ;;  %v4168_v13 = vld [vmem:[#allocation5 + $0x588] ss:$16 sps:$4 sm:$0xff]   ;;  %v4173_v14 = vld [vmem:[#allocation5 + $0x5a4] ss:$16 sps:$4 sm:$0xff]  }
  0xcb   :  { %1797 = vmatpush1.bf16.msra.mxu0 %v4087_v16  ;;  %1961 = vmatpush1.bf16.msra.mxu1 %v4090_v17  ;;  %v4176_v16 = vld [vmem:[#allocation5 + $0x5ac] ss:$16 sps:$4 sm:$0xff]   ;;  %v4171_v17 = vld [vmem:[#allocation5 + $0x5a0] ss:$16 sps:$4 sm:$0xff]  }
  0xcc   :  { %1807 = vmatprep.subr.bf16.mxu0 %v4095_v18  ;;  %1971 = vmatprep.subr.bf16.mxu1 %v4098_v19  ;;  %v4174_v18 = vld [vmem:[#allocation5 + $0x5a8] ss:$16 sps:$4 sm:$0xff]   ;;  %v4179_v19 = vld [vmem:[#allocation5 + $0x5c4] ss:$16 sps:$4 sm:$0xff]  }
  0xce   :  { %1799 = vmatmul.mubr.bf16.vlgmr.msra.gmra.mrb[0].mxu0 %v433_v20  ;;  %1963 = vmatmul.mubr.bf16.vlgmr.msra.gmra.mrb[0].mxu1 %v433_v20  ;;  %v4182_v20 = vld [vmem:[#allocation5 + $0x5cc] ss:$16 sps:$4 sm:$0xff]  }
  0xcf   :  { %1808 = vmatpush1.bf16.msra.mxu0 %v4093_v21  ;;  %1972 = vmatpush1.bf16.msra.mxu1 %v4096_v22  ;;  %v4177_v21 = vld [vmem:[#allocation5 + $0x5c0] ss:$16 sps:$4 sm:$0xff]   ;;  %v4180_v22 = vld [vmem:[#allocation5 + $0x5c8] ss:$16 sps:$4 sm:$0xff]  }
  0xd0   :  { %1809 = vmatprep.subr.bf16.mxu0 %v4101_v23  ;;  %1973 = vmatprep.subr.bf16.mxu1 %v4104_v24  ;;  %v4185_v23 = vld [vmem:[#allocation5 + $0x5e4] ss:$16 sps:$4 sm:$0xff]   ;;  %v4188_v24 = vld [vmem:[#allocation5 + $0x5ec] ss:$16 sps:$4 sm:$0xff]  }
  0xd1   :  { %1839 = vmatprep.mubr.bf16.mxu0 %v4766_v36  ;;  %2003 = vmatprep.mubr.bf16.mxu1 %v4766_v36 }
  0xd3   :  { %1810 = vmatpush1.bf16.msra.mxu0 %v4099_v27  ;;  %1974 = vmatpush1.bf16.msra.mxu1 %v4102_v28  ;;  %v403_v27 = vcombine.low %v4758_v30, %v4761_v15  ;;  %v4193_v28 = vld [vmem:[#allocation5 + $0x604] ss:$16 sps:$4 sm:$0xff]   ;;  %v436_v30 = vcombine.high %v4766_v36, %v4766_v36  ;;  %v4197_v15 = vld [vmem:[#allocation5 + $0x620] ss:$16 sps:$4 sm:$0xff]   ;;  %v4214_v36 = vld [vmem:[#allocation5 + $0x66c] ss:$16 sps:$4 sm:$0xff]  }
  0xd4   :  { %1811 = vmatprep.subr.bf16.mxu0 %v4107_v29  ;;  %1975 = vmatprep.subr.bf16.mxu1 %v4110_v31  ;;  %v4196_v29 = vld [vmem:[#allocation5 + $0x60c] ss:$16 sps:$4 sm:$0xff]   ;;  %v4191_v31 = vld [vmem:[#allocation5 + $0x600] ss:$16 sps:$4 sm:$0xff]  }
  0xd7   :  { %1812 = vmatpush1.bf16.msra.mxu0 %v4105_v33  ;;  %1976 = vmatpush1.bf16.msra.mxu1 %v4108_v34  ;;  %v4773_v33 = vrot.slane %v403_v27, %v4745_v53  ;;  %v4199_v34 = vld [vmem:[#allocation5 + $0x624] ss:$16 sps:$4 sm:$0xff]   ;;  %v4208_v53 = vld [vmem:[#allocation5 + $0x64c] ss:$16 sps:$4 sm:$0xff]  }
  0xd8   :  { %1813 = vmatprep.subr.bf16.mxu0 %v4113_v35  ;;  %1977 = vmatprep.subr.bf16.mxu1 %v4116_v37  ;;  %v4202_v35 = vld [vmem:[#allocation5 + $0x62c] ss:$16 sps:$4 sm:$0xff]   ;;  %v4200_v37 = vld [vmem:[#allocation5 + $0x628] ss:$16 sps:$4 sm:$0xff]   ;;  %v4283_v27 = vld [vmem:[#allocation5 + $0x7e4] ss:$16 sps:$4 sm:$0xff]  }
  0xdb   :  { %1814 = vmatpush1.bf16.msra.mxu0 %v4111_v38  ;;  %1978 = vmatpush1.bf16.msra.mxu1 %v4114_v39  ;;  %v4205_v38 = vld [vmem:[#allocation5 + $0x644] ss:$16 sps:$4 sm:$0xff]   ;;  %v4203_v39 = vld [vmem:[#allocation5 + $0x640] ss:$16 sps:$4 sm:$0xff]  }
  0xdc   :  { %1815 = vmatprep.subr.bf16.mxu0 %v4119_v40  ;;  %1979 = vmatprep.subr.bf16.mxu1 %v4122_v41  ;;  %v4206_v40 = vld [vmem:[#allocation5 + $0x648] ss:$16 sps:$4 sm:$0xff]   ;;  %v4211_v41 = vld [vmem:[#allocation5 + $0x664] ss:$16 sps:$4 sm:$0xff]  }
  0xdf   :  { %1816 = vmatpush1.bf16.msra.mxu0 %v4117_v42  ;;  %1980 = vmatpush1.bf16.msra.mxu1 %v4120_v43  ;;  %v4209_v42 = vld [vmem:[#allocation5 + $0x660] ss:$16 sps:$4 sm:$0xff]   ;;  %v4212_v43 = vld [vmem:[#allocation5 + $0x668] ss:$16 sps:$4 sm:$0xff]  }
  0xe0   :  { %1817 = vmatprep.subr.bf16.mxu0 %v4125_v44  ;;  %1981 = vmatprep.subr.bf16.mxu1 %v4128_v46  ;;  %v4217_v44 = vld [vmem:[#allocation5 + $0x684] ss:$16 sps:$4 sm:$0xff]   ;;  %v4220_v46 = vld [vmem:[#allocation5 + $0x68c] ss:$16 sps:$4 sm:$0xff]  }
  0xe3   :  { %1818 = vmatpush1.bf16.msra.mxu0 %v4123_v47  ;;  %1982 = vmatpush1.bf16.msra.mxu1 %v4126_v48  ;;  %v4215_v47 = vld [vmem:[#allocation5 + $0x680] ss:$16 sps:$4 sm:$0xff]   ;;  %v4218_v48 = vld [vmem:[#allocation5 + $0x688] ss:$16 sps:$4 sm:$0xff]  }
  0xe4   :  { %1819 = vmatprep.subr.bf16.mxu0 %v4131_v49  ;;  %1983 = vmatprep.subr.bf16.mxu1 %v4134_v50  ;;  %v4223_v49 = vld [vmem:[#allocation5 + $0x6a4] ss:$16 sps:$4 sm:$0xff]   ;;  %v4226_v50 = vld [vmem:[#allocation5 + $0x6ac] ss:$16 sps:$4 sm:$0xff]  }
  0xe7   :  { %1820 = vmatpush1.bf16.msra.mxu0 %v4129_v51  ;;  %1984 = vmatpush1.bf16.msra.mxu1 %v4132_v52  ;;  %v4221_v51 = vld [vmem:[#allocation5 + $0x6a0] ss:$16 sps:$4 sm:$0xff]   ;;  %v4224_v52 = vld [vmem:[#allocation5 + $0x6a8] ss:$16 sps:$4 sm:$0xff]  }
  0xe8   :  { %1821 = vmatprep.subr.bf16.mxu0 %v4137_v54  ;;  %1985 = vmatprep.subr.bf16.mxu1 %v4140_v55  ;;  %v4229_v54 = vld [vmem:[#allocation5 + $0x6c4] ss:$16 sps:$4 sm:$0xff]   ;;  %v4232_v55 = vld [vmem:[#allocation5 + $0x6cc] ss:$16 sps:$4 sm:$0xff]  }
  0xeb   :  { %1822 = vmatpush1.bf16.msra.mxu0 %v4135_v56  ;;  %1986 = vmatpush1.bf16.msra.mxu1 %v4138_v57  ;;  %v4227_v56 = vld [vmem:[#allocation5 + $0x6c0] ss:$16 sps:$4 sm:$0xff]   ;;  %v4230_v57 = vld [vmem:[#allocation5 + $0x6c8] ss:$16 sps:$4 sm:$0xff]  }
  0xec   :  { %1823 = vmatprep.subr.bf16.mxu0 %v4143_v58  ;;  %1987 = vmatprep.subr.bf16.mxu1 %v4146_v59  ;;  %v4235_v58 = vld [vmem:[#allocation5 + $0x6e4] ss:$16 sps:$4 sm:$0xff]   ;;  %v4238_v59 = vld [vmem:[#allocation5 + $0x6ec] ss:$16 sps:$4 sm:$0xff]  }
  0xef   :  { %1824 = vmatpush1.bf16.msra.mxu0 %v4141_v60  ;;  %1988 = vmatpush1.bf16.msra.mxu1 %v4144_v61  ;;  %v4233_v60 = vld [vmem:[#allocation5 + $0x6e0] ss:$16 sps:$4 sm:$0xff]   ;;  %v4236_v61 = vld [vmem:[#allocation5 + $0x6e8] ss:$16 sps:$4 sm:$0xff]  }
  0xf0   :  { %1825 = vmatprep.subr.bf16.mxu0 %v4149_v62  ;;  %1989 = vmatprep.subr.bf16.mxu1 %v4152_v63  ;;  %v4241_v62 = vld [vmem:[#allocation5 + $0x704] ss:$16 sps:$4 sm:$0xff]   ;;  %v4244_v63 = vld [vmem:[#allocation5 + $0x70c] ss:$16 sps:$4 sm:$0xff]  }
  0xf3   :  { %1826 = vmatpush1.bf16.msra.mxu0 %v4147_v0  ;;  %1990 = vmatpush1.bf16.msra.mxu1 %v4150_v1  ;;  %v4239_v0 = vld [vmem:[#allocation5 + $0x700] ss:$16 sps:$4 sm:$0xff]   ;;  %v4242_v1 = vld [vmem:[#allocation5 + $0x708] ss:$16 sps:$4 sm:$0xff]  }
  0xf4   :  { %1827 = vmatprep.subr.bf16.mxu0 %v4155_v2  ;;  %1991 = vmatprep.subr.bf16.mxu1 %v4158_v3  ;;  %v4247_v2 = vld [vmem:[#allocation5 + $0x724] ss:$16 sps:$4 sm:$0xff]   ;;  %v4250_v3 = vld [vmem:[#allocation5 + $0x72c] ss:$16 sps:$4 sm:$0xff]  }
  0xf7   :  { %1828 = vmatpush1.bf16.msra.mxu0 %v4153_v4  ;;  %1992 = vmatpush1.bf16.msra.mxu1 %v4156_v5  ;;  %v4245_v4 = vld [vmem:[#allocation5 + $0x720] ss:$16 sps:$4 sm:$0xff]   ;;  %v4248_v5 = vld [vmem:[#allocation5 + $0x728] ss:$16 sps:$4 sm:$0xff]  }
  0xf8   :  { %1829 = vmatprep.subr.bf16.mxu0 %v4161_v6  ;;  %1993 = vmatprep.subr.bf16.mxu1 %v4164_v7  ;;  %v4253_v6 = vld [vmem:[#allocation5 + $0x744] ss:$16 sps:$4 sm:$0xff]   ;;  %v4256_v7 = vld [vmem:[#allocation5 + $0x74c] ss:$16 sps:$4 sm:$0xff]  }
  0xfb   :  { %1830 = vmatpush1.bf16.msra.mxu0 %v4159_v8  ;;  %1994 = vmatpush1.bf16.msra.mxu1 %v4162_v9  ;;  %v4251_v8 = vld [vmem:[#allocation5 + $0x740] ss:$16 sps:$4 sm:$0xff]   ;;  %v4254_v9 = vld [vmem:[#allocation5 + $0x748] ss:$16 sps:$4 sm:$0xff]  }
  0xfc   :  { %1831 = vmatprep.subr.bf16.mxu0 %v4167_v10  ;;  %1995 = vmatprep.subr.bf16.mxu1 %v4170_v11  ;;  %v4259_v10 = vld [vmem:[#allocation5 + $0x764] ss:$16 sps:$4 sm:$0xff]   ;;  %v4262_v11 = vld [vmem:[#allocation5 + $0x76c] ss:$16 sps:$4 sm:$0xff]  }
  0xff   :  { %1832 = vmatpush1.bf16.msra.mxu0 %v4165_v12  ;;  %1996 = vmatpush1.bf16.msra.mxu1 %v4168_v13  ;;  %v4257_v12 = vld [vmem:[#allocation5 + $0x760] ss:$16 sps:$4 sm:$0xff]   ;;  %v4260_v13 = vld [vmem:[#allocation5 + $0x768] ss:$16 sps:$4 sm:$0xff]  }
 0x100   :  { %1833 = vmatprep.subr.bf16.mxu0 %v4173_v14  ;;  %1997 = vmatprep.subr.bf16.mxu1 %v4176_v16  ;;  %v4265_v14 = vld [vmem:[#allocation5 + $0x784] ss:$16 sps:$4 sm:$0xff]   ;;  %v4268_v16 = vld [vmem:[#allocation5 + $0x78c] ss:$16 sps:$4 sm:$0xff]  }
 0x103   :  { %1834 = vmatpush1.bf16.msra.mxu0 %v4171_v17  ;;  %1998 = vmatpush1.bf16.msra.mxu1 %v4174_v18  ;;  %v4263_v17 = vld [vmem:[#allocation5 + $0x780] ss:$16 sps:$4 sm:$0xff]   ;;  %v4266_v18 = vld [vmem:[#allocation5 + $0x788] ss:$16 sps:$4 sm:$0xff]  }
 0x104   :  { %1835 = vmatprep.subr.bf16.mxu0 %v4179_v19  ;;  %1999 = vmatprep.subr.bf16.mxu1 %v4182_v20  ;;  %v4271_v19 = vld [vmem:[#allocation5 + $0x7a4] ss:$16 sps:$4 sm:$0xff]   ;;  %v4274_v20 = vld [vmem:[#allocation5 + $0x7ac] ss:$16 sps:$4 sm:$0xff]  }
 0x107   :  { %1836 = vmatpush1.bf16.msra.mxu0 %v4177_v21  ;;  %2000 = vmatpush1.bf16.msra.mxu1 %v4180_v22  ;;  %v4269_v21 = vld [vmem:[#allocation5 + $0x7a0] ss:$16 sps:$4 sm:$0xff]   ;;  %v4272_v22 = vld [vmem:[#allocation5 + $0x7a8] ss:$16 sps:$4 sm:$0xff]  }
 0x108   :  { %1837 = vmatprep.subr.bf16.mxu0 %v4185_v23  ;;  %2001 = vmatprep.subr.bf16.mxu1 %v4188_v24  ;;  %v4277_v23 = vld [vmem:[#allocation5 + $0x7c4] ss:$16 sps:$4 sm:$0xff]   ;;  %v4280_v24 = vld [vmem:[#allocation5 + $0x7cc] ss:$16 sps:$4 sm:$0xff]  }
 0x10b   :  { %1838 = vmatpush1.bf16.msra.mxu0 %v4183_v25  ;;  %2002 = vmatpush1.bf16.msra.mxu1 %v4186_v26  ;;  %v4275_v25 = vld [vmem:[#allocation5 + $0x7c0] ss:$16 sps:$4 sm:$0xff]   ;;  %v4278_v26 = vld [vmem:[#allocation5 + $0x7c8] ss:$16 sps:$4 sm:$0xff]  }
 0x10c   :  { %1848 = vmatprep.subr.bf16.mxu0 %v4193_v28  ;;  %2012 = vmatprep.subr.bf16.mxu1 %v4196_v29  ;;  %v4286_v28 = vld [vmem:[#allocation5 + $0x7ec] ss:$16 sps:$4 sm:$0xff]   ;;  %v4281_v29 = vld [vmem:[#allocation5 + $0x7e0] ss:$16 sps:$4 sm:$0xff]  }
 0x10e   :  { %1840 = vmatmul.mubr.bf16.vlgmr.msra.gmra.mrb[0].mxu0 %v4773_v33  ;;  %2004 = vmatmul.mubr.bf16.vlgmr.msra.gmra.mrb[0].mxu1 %v4773_v33 }
 0x10f   :  { %1849 = vmatpush1.bf16.msra.mxu0 %v4191_v31  ;;  %2013 = vmatpush1.bf16.msra.mxu1 %v4194_v32  ;;  %v4284_v31 = vld [vmem:[#allocation5 + $0x7e8] ss:$16 sps:$4 sm:$0xff]   ;;  %v4289_v32 = vld [vmem:[#allocation7 + $0x4] ss:$16 sps:$4 sm:$0xff]  }
 0x110   :  { %1850 = vmatprep.subr.bf16.mxu0 %v4199_v34  ;;  %2014 = vmatprep.subr.bf16.mxu1 %v4202_v35  ;;  %v4292_v34 = vld [vmem:[#allocation7 + $0xc] ss:$16 sps:$4 sm:$0xff]   ;;  %v434_v35 = vcombine.high %v4773_v33, %v4773_v33  ;;  %v4299_v33 = vld [vmem:[#allocation7 + $0x40] ss:$16 sps:$4 sm:$0xff]  }
 0x111   :  { %1880 = vmatprep.mubr.bf16.mxu0 %v436_v30  ;;  %2044 = vmatprep.mubr.bf16.mxu1 %v436_v30  ;;  %v4287_v30 = vld [vmem:[#allocation7] ss:$16 sps:$4 sm:$0xff]  }
 0x113   :  { %1851 = vmatpush1.bf16.msra.mxu0 %v4197_v15  ;;  %2015 = vmatpush1.bf16.msra.mxu1 %v4200_v37  ;;  %v4290_v15 = vld [vmem:[#allocation7 + $0x8] ss:$16 sps:$4 sm:$0xff]   ;;  %v4295_v37 = vld [vmem:[#allocation7 + $0x24] ss:$16 sps:$4 sm:$0xff]  }
 0x114   :  { %1852 = vmatprep.subr.bf16.mxu0 %v4205_v38  ;;  %2016 = vmatprep.subr.bf16.mxu1 %v4208_v53  ;;  %v4298_v38 = vld [vmem:[#allocation7 + $0x2c] ss:$16 sps:$4 sm:$0xff]   ;;  %v4293_v53 = vld [vmem:[#allocation7 + $0x20] ss:$16 sps:$4 sm:$0xff]  }
 0x117   :  { %1853 = vmatpush1.bf16.msra.mxu0 %v4203_v39  ;;  %2017 = vmatpush1.bf16.msra.mxu1 %v4206_v40  ;;  %v4296_v39 = vld [vmem:[#allocation7 + $0x28] ss:$16 sps:$4 sm:$0xff]   ;;  %v4301_v40 = vld [vmem:[#allocation7 + $0x44] ss:$16 sps:$4 sm:$0xff]  }
 0x118   :  { %1854 = vmatprep.subr.bf16.mxu0 %v4211_v41  ;;  %2018 = vmatprep.subr.bf16.mxu1 %v4214_v36  ;;  %v4304_v41 = vld [vmem:[#allocation7 + $0x4c] ss:$16 sps:$4 sm:$0xff]   ;;  %v4302_v36 = vld [vmem:[#allocation7 + $0x48] ss:$16 sps:$4 sm:$0xff]  }
 0x11b   :  { %1855 = vmatpush1.bf16.msra.mxu0 %v4209_v42  ;;  %2019 = vmatpush1.bf16.msra.mxu1 %v4212_v43  ;;  %v4307_v42 = vld [vmem:[#allocation7 + $0x64] ss:$16 sps:$4 sm:$0xff]   ;;  %v4310_v43 = vld [vmem:[#allocation7 + $0x6c] ss:$16 sps:$4 sm:$0xff]  }
 0x11c   :  { %1856 = vmatprep.subr.bf16.mxu0 %v4217_v44  ;;  %2020 = vmatprep.subr.bf16.mxu1 %v4220_v46  ;;  %v4305_v44 = vld [vmem:[#allocation7 + $0x60] ss:$16 sps:$4 sm:$0xff]   ;;  %v4308_v46 = vld [vmem:[#allocation7 + $0x68] ss:$16 sps:$4 sm:$0xff]  }
 0x11f   :  { %1857 = vmatpush1.bf16.msra.mxu0 %v4215_v47  ;;  %2021 = vmatpush1.bf16.msra.mxu1 %v4218_v48  ;;  %v4313_v47 = vld [vmem:[#allocation7 + $0x84] ss:$16 sps:$4 sm:$0xff]   ;;  %v4316_v48 = vld [vmem:[#allocation7 + $0x8c] ss:$16 sps:$4 sm:$0xff]  }
 0x120   :  { %1858 = vmatprep.subr.bf16.mxu0 %v4223_v49  ;;  %2022 = vmatprep.subr.bf16.mxu1 %v4226_v50  ;;  %v4311_v49 = vld [vmem:[#allocation7 + $0x80] ss:$16 sps:$4 sm:$0xff]   ;;  %v4314_v50 = vld [vmem:[#allocation7 + $0x88] ss:$16 sps:$4 sm:$0xff]  }
 0x123   :  { %1859 = vmatpush1.bf16.msra.mxu0 %v4221_v51  ;;  %2023 = vmatpush1.bf16.msra.mxu1 %v4224_v52  ;;  %v4319_v51 = vld [vmem:[#allocation7 + $0xa4] ss:$16 sps:$4 sm:$0xff]   ;;  %v4322_v52 = vld [vmem:[#allocation7 + $0xac] ss:$16 sps:$4 sm:$0xff]  }
 0x124   :  { %1860 = vmatprep.subr.bf16.mxu0 %v4229_v54  ;;  %2024 = vmatprep.subr.bf16.mxu1 %v4232_v55  ;;  %v4317_v54 = vld [vmem:[#allocation7 + $0xa0] ss:$16 sps:$4 sm:$0xff]   ;;  %v4320_v55 = vld [vmem:[#allocation7 + $0xa8] ss:$16 sps:$4 sm:$0xff]  }
 0x127   :  { %1861 = vmatpush1.bf16.msra.mxu0 %v4227_v56  ;;  %2025 = vmatpush1.bf16.msra.mxu1 %v4230_v57  ;;  %v4325_v56 = vld [vmem:[#allocation7 + $0xc4] ss:$16 sps:$4 sm:$0xff]   ;;  %v4328_v57 = vld [vmem:[#allocation7 + $0xcc] ss:$16 sps:$4 sm:$0xff]  }
 0x128   :  { %1862 = vmatprep.subr.bf16.mxu0 %v4235_v58  ;;  %2026 = vmatprep.subr.bf16.mxu1 %v4238_v59  ;;  %v4323_v58 = vld [vmem:[#allocation7 + $0xc0] ss:$16 sps:$4 sm:$0xff]   ;;  %v4326_v59 = vld [vmem:[#allocation7 + $0xc8] ss:$16 sps:$4 sm:$0xff]  }
 0x12b   :  { %1863 = vmatpush1.bf16.msra.mxu0 %v4233_v60  ;;  %2027 = vmatpush1.bf16.msra.mxu1 %v4236_v61  ;;  %v4331_v60 = vld [vmem:[#allocation7 + $0xe4] ss:$16 sps:$4 sm:$0xff]   ;;  %v4334_v61 = vld [vmem:[#allocation7 + $0xec] ss:$16 sps:$4 sm:$0xff]  }
 0x12c   :  { %1864 = vmatprep.subr.bf16.mxu0 %v4241_v62  ;;  %2028 = vmatprep.subr.bf16.mxu1 %v4244_v63  ;;  %v4329_v62 = vld [vmem:[#allocation7 + $0xe0] ss:$16 sps:$4 sm:$0xff]   ;;  %v4332_v63 = vld [vmem:[#allocation7 + $0xe8] ss:$16 sps:$4 sm:$0xff]  }
 0x12f   :  { %1865 = vmatpush1.bf16.msra.mxu0 %v4239_v0  ;;  %2029 = vmatpush1.bf16.msra.mxu1 %v4242_v1  ;;  %v4337_v0 = vld [vmem:[#allocation7 + $0x104] ss:$16 sps:$4 sm:$0xff]   ;;  %v4340_v1 = vld [vmem:[#allocation7 + $0x10c] ss:$16 sps:$4 sm:$0xff]  }
 0x130   :  { %1866 = vmatprep.subr.bf16.mxu0 %v4247_v2  ;;  %2030 = vmatprep.subr.bf16.mxu1 %v4250_v3  ;;  %v4335_v2 = vld [vmem:[#allocation7 + $0x100] ss:$16 sps:$4 sm:$0xff]   ;;  %v4338_v3 = vld [vmem:[#allocation7 + $0x108] ss:$16 sps:$4 sm:$0xff]  }
 0x133   :  { %1867 = vmatpush1.bf16.msra.mxu0 %v4245_v4  ;;  %2031 = vmatpush1.bf16.msra.mxu1 %v4248_v5  ;;  %v4343_v4 = vld [vmem:[#allocation7 + $0x124] ss:$16 sps:$4 sm:$0xff]   ;;  %v4346_v5 = vld [vmem:[#allocation7 + $0x12c] ss:$16 sps:$4 sm:$0xff]  }
 0x134   :  { %1868 = vmatprep.subr.bf16.mxu0 %v4253_v6  ;;  %2032 = vmatprep.subr.bf16.mxu1 %v4256_v7  ;;  %v4341_v6 = vld [vmem:[#allocation7 + $0x120] ss:$16 sps:$4 sm:$0xff]   ;;  %v4344_v7 = vld [vmem:[#allocation7 + $0x128] ss:$16 sps:$4 sm:$0xff]  }
 0x137   :  { %1869 = vmatpush1.bf16.msra.mxu0 %v4251_v8  ;;  %2033 = vmatpush1.bf16.msra.mxu1 %v4254_v9  ;;  %v4349_v8 = vld [vmem:[#allocation7 + $0x144] ss:$16 sps:$4 sm:$0xff]   ;;  %v4352_v9 = vld [vmem:[#allocation7 + $0x14c] ss:$16 sps:$4 sm:$0xff]  }
 0x138   :  { %1870 = vmatprep.subr.bf16.mxu0 %v4259_v10  ;;  %2034 = vmatprep.subr.bf16.mxu1 %v4262_v11  ;;  %v4347_v10 = vld [vmem:[#allocation7 + $0x140] ss:$16 sps:$4 sm:$0xff]   ;;  %v4350_v11 = vld [vmem:[#allocation7 + $0x148] ss:$16 sps:$4 sm:$0xff]  }
 0x13b   :  { %1871 = vmatpush1.bf16.msra.mxu0 %v4257_v12  ;;  %2035 = vmatpush1.bf16.msra.mxu1 %v4260_v13  ;;  %v4355_v12 = vld [vmem:[#allocation7 + $0x164] ss:$16 sps:$4 sm:$0xff]   ;;  %v4358_v13 = vld [vmem:[#allocation7 + $0x16c] ss:$16 sps:$4 sm:$0xff]  }
 0x13c   :  { %1872 = vmatprep.subr.bf16.mxu0 %v4265_v14  ;;  %2036 = vmatprep.subr.bf16.mxu1 %v4268_v16  ;;  %v4353_v14 = vld [vmem:[#allocation7 + $0x160] ss:$16 sps:$4 sm:$0xff]   ;;  %v4356_v16 = vld [vmem:[#allocation7 + $0x168] ss:$16 sps:$4 sm:$0xff]  }
 0x13f   :  { %1873 = vmatpush1.bf16.msra.mxu0 %v4263_v17  ;;  %2037 = vmatpush1.bf16.msra.mxu1 %v4266_v18  ;;  %v4361_v17 = vld [vmem:[#allocation7 + $0x184] ss:$16 sps:$4 sm:$0xff]   ;;  %v4364_v18 = vld [vmem:[#allocation7 + $0x18c] ss:$16 sps:$4 sm:$0xff]  }
 0x140   :  { %1874 = vmatprep.subr.bf16.mxu0 %v4271_v19  ;;  %2038 = vmatprep.subr.bf16.mxu1 %v4274_v20  ;;  %v4359_v19 = vld [vmem:[#allocation7 + $0x180] ss:$16 sps:$4 sm:$0xff]   ;;  %v4362_v20 = vld [vmem:[#allocation7 + $0x188] ss:$16 sps:$4 sm:$0xff]  }
 0x143   :  { %1875 = vmatpush1.bf16.msra.mxu0 %v4269_v21  ;;  %2039 = vmatpush1.bf16.msra.mxu1 %v4272_v22  ;;  %v4367_v21 = vld [vmem:[#allocation7 + $0x1a4] ss:$16 sps:$4 sm:$0xff]   ;;  %v4370_v22 = vld [vmem:[#allocation7 + $0x1ac] ss:$16 sps:$4 sm:$0xff]  }
 0x144   :  { %1876 = vmatprep.subr.bf16.mxu0 %v4277_v23  ;;  %2040 = vmatprep.subr.bf16.mxu1 %v4280_v24  ;;  %v4365_v23 = vld [vmem:[#allocation7 + $0x1a0] ss:$16 sps:$4 sm:$0xff]   ;;  %v4368_v24 = vld [vmem:[#allocation7 + $0x1a8] ss:$16 sps:$4 sm:$0xff]  }
 0x147   :  { %1877 = vmatpush1.bf16.msra.mxu0 %v4275_v25  ;;  %2041 = vmatpush1.bf16.msra.mxu1 %v4278_v26  ;;  %v4373_v25 = vld [vmem:[#allocation7 + $0x1c4] ss:$16 sps:$4 sm:$0xff]   ;;  %v4376_v26 = vld [vmem:[#allocation7 + $0x1cc] ss:$16 sps:$4 sm:$0xff]  }
 0x148   :  { %1878 = vmatprep.subr.bf16.mxu0 %v4283_v27  ;;  %2042 = vmatprep.subr.bf16.mxu1 %v4286_v28  ;;  %v4371_v27 = vld [vmem:[#allocation7 + $0x1c0] ss:$16 sps:$4 sm:$0xff]   ;;  %v4374_v28 = vld [vmem:[#allocation7 + $0x1c8] ss:$16 sps:$4 sm:$0xff]  }
 0x14b   :  { %1879 = vmatpush1.bf16.msra.mxu0 %v4281_v29  ;;  %2043 = vmatpush1.bf16.msra.mxu1 %v4284_v31  ;;  %v4379_v29 = vld [vmem:[#allocation7 + $0x1e4] ss:$16 sps:$4 sm:$0xff]   ;;  %v4382_v31 = vld [vmem:[#allocation7 + $0x1ec] ss:$16 sps:$4 sm:$0xff]  }
 0x14c   :  { %2851 = vmatprep.subr.bf16.mxu0 %v4289_v32  ;;  %2933 = vmatprep.subr.bf16.mxu1 %v4292_v34  ;;  %v4377_v32 = vld [vmem:[#allocation7 + $0x1e0] ss:$16 sps:$4 sm:$0xff]   ;;  %v4380_v34 = vld [vmem:[#allocation7 + $0x1e8] ss:$16 sps:$4 sm:$0xff]  }
 0x14e   :  { %1881 = vmatmul.mubr.bf16.vlgmr.msra.gmra.mrb[0].mxu0 %v434_v35  ;;  %2045 = vmatmul.mubr.bf16.vlgmr.msra.gmra.mrb[0].mxu1 %v434_v35  ;;  %v4385_v35 = vld [vmem:[#allocation7 + $0x204] ss:$16 sps:$4 sm:$0xff]  }
 0x14f   :  { %2852 = vmatpush1.bf16.msra.mxu0 %v4287_v30  ;;  %2934 = vmatpush1.bf16.msra.mxu1 %v4290_v15  ;;  %v4388_v30 = vld [vmem:[#allocation7 + $0x20c] ss:$16 sps:$4 sm:$0xff]   ;;  %v347_v15 = vsub.s32 0, %v4742_v45 }
 0x150   :  { %2853 = vmatprep.subr.bf16.mxu0 %v4295_v37  ;;  %2935 = vmatprep.subr.bf16.mxu1 %v4298_v38  ;;  %v4785_v37 = vld [vmem:[%s4833_s2] sm:$0xf]  ;;  %v351_v38 = vsub.s32 1, %v4742_v45 }
 0x153   :  { %2854 = vmatpush1.bf16.msra.mxu0 %v4293_v53  ;;  %2936 = vmatpush1.bf16.msra.mxu1 %v4296_v39  ;;  %v359_v53 = vsub.s32 3, %v4742_v45  ;;  %v348_v39 = vrot.slane %v4785_v37, %v347_v15 }
 0x154   :  { %2855 = vmatprep.subr.bf16.mxu0 %v4301_v40  ;;  %2937 = vmatprep.subr.bf16.mxu1 %v4304_v41  ;;  %v352_v40 = vrot.slane %v4785_v37, %v351_v38 }
 0x155   :  { %v360_v41 = vrot.slane %v4785_v37, %v359_v53 }
 0x157   :  { %2856 = vmatpush1.bf16.msra.mxu0 %v4299_v33  ;;  %2938 = vmatpush1.bf16.msra.mxu1 %v4302_v36 }
 0x158   :  { %2857 = vmatprep.subr.bf16.mxu0 %v4307_v42  ;;  %2939 = vmatprep.subr.bf16.mxu1 %v4310_v43 }
 0x15b   :  { %2858 = vmatpush1.bf16.msra.mxu0 %v4305_v44  ;;  %2940 = vmatpush1.bf16.msra.mxu1 %v4308_v46 }
 0x15c   :  { %2859 = vmatprep.subr.bf16.mxu0 %v4313_v47  ;;  %2941 = vmatprep.subr.bf16.mxu1 %v4316_v48 }
 0x15f   :  { %2860 = vmatpush1.bf16.msra.mxu0 %v4311_v49  ;;  %2942 = vmatpush1.bf16.msra.mxu1 %v4314_v50 }
 0x160   :  { %2861 = vmatprep.subr.bf16.mxu0 %v4319_v51  ;;  %2943 = vmatprep.subr.bf16.mxu1 %v4322_v52 }
 0x163   :  { %2862 = vmatpush1.bf16.msra.mxu0 %v4317_v54  ;;  %2944 = vmatpush1.bf16.msra.mxu1 %v4320_v55 }
 0x164   :  { %2863 = vmatprep.subr.bf16.mxu0 %v4325_v56  ;;  %2945 = vmatprep.subr.bf16.mxu1 %v4328_v57  ;;  %v4383_v57 = vld [vmem:[#allocation7 + $0x200] ss:$16 sps:$4 sm:$0xff]  }
 0x167   :  { %2864 = vmatpush1.bf16.msra.mxu0 %v4323_v58  ;;  %2946 = vmatpush1.bf16.msra.mxu1 %v4326_v59  ;;  %v4386_v58 = vld [vmem:[#allocation7 + $0x208] ss:$16 sps:$4 sm:$0xff]  }
 0x168   :  { %2865 = vmatprep.subr.bf16.mxu0 %v4331_v60  ;;  %2947 = vmatprep.subr.bf16.mxu1 %v4334_v61  ;;  %v4391_v60 = vld [vmem:[#allocation7 + $0x224] ss:$16 sps:$4 sm:$0xff]   ;;  %v4394_v61 = vld [vmem:[#allocation7 + $0x22c] ss:$16 sps:$4 sm:$0xff]  }
 0x16b   :  { %2866 = vmatpush1.bf16.msra.mxu0 %v4329_v62  ;;  %2948 = vmatpush1.bf16.msra.mxu1 %v4332_v63  ;;  %v4389_v63 = vld [vmem:[#allocation7 + $0x220] ss:$16 sps:$4 sm:$0xff]  }
 0x16c   :  { %2867 = vmatprep.subr.bf16.mxu0 %v4337_v0  ;;  %2949 = vmatprep.subr.bf16.mxu1 %v4340_v1  ;;  %v4392_v0 = vld [vmem:[#allocation7 + $0x228] ss:$16 sps:$4 sm:$0xff]   ;;  %v4397_v1 = vld [vmem:[#allocation7 + $0x244] ss:$16 sps:$4 sm:$0xff]  }
 0x16f   :  { %2868 = vmatpush1.bf16.msra.mxu0 %v4335_v2  ;;  %2950 = vmatpush1.bf16.msra.mxu1 %v4338_v3  ;;  %v4400_v2 = vld [vmem:[#allocation7 + $0x24c] ss:$16 sps:$4 sm:$0xff]   ;;  %v4395_v3 = vld [vmem:[#allocation7 + $0x240] ss:$16 sps:$4 sm:$0xff]  }
 0x170   :  { %2869 = vmatprep.subr.bf16.mxu0 %v4343_v4  ;;  %2951 = vmatprep.subr.bf16.mxu1 %v4346_v5  ;;  %v4398_v4 = vld [vmem:[#allocation7 + $0x248] ss:$16 sps:$4 sm:$0xff]   ;;  %v4403_v5 = vld [vmem:[#allocation7 + $0x264] ss:$16 sps:$4 sm:$0xff]  }
 0x173   :  { %2870 = vmatpush1.bf16.msra.mxu0 %v4341_v6  ;;  %2952 = vmatpush1.bf16.msra.mxu1 %v4344_v7  ;;  %v4406_v6 = vld [vmem:[#allocation7 + $0x26c] ss:$16 sps:$4 sm:$0xff]   ;;  %v4401_v7 = vld [vmem:[#allocation7 + $0x260] ss:$16 sps:$4 sm:$0xff]  }
 0x174   :  { %2871 = vmatprep.subr.bf16.mxu0 %v4349_v8  ;;  %2953 = vmatprep.subr.bf16.mxu1 %v4352_v9  ;;  %v4404_v8 = vld [vmem:[#allocation7 + $0x268] ss:$16 sps:$4 sm:$0xff]   ;;  %v4409_v9 = vld [vmem:[#allocation7 + $0x284] ss:$16 sps:$4 sm:$0xff]  }
 0x177   :  { %2872 = vmatpush1.bf16.msra.mxu0 %v4347_v10  ;;  %2954 = vmatpush1.bf16.msra.mxu1 %v4350_v11  ;;  %v4412_v10 = vld [vmem:[#allocation7 + $0x28c] ss:$16 sps:$4 sm:$0xff]   ;;  %v4407_v11 = vld [vmem:[#allocation7 + $0x280] ss:$16 sps:$4 sm:$0xff]  }
 0x178   :  { %2873 = vmatprep.subr.bf16.mxu0 %v4355_v12  ;;  %2955 = vmatprep.subr.bf16.mxu1 %v4358_v13  ;;  %v4410_v12 = vld [vmem:[#allocation7 + $0x288] ss:$16 sps:$4 sm:$0xff]   ;;  %v4415_v13 = vld [vmem:[#allocation7 + $0x2a4] ss:$16 sps:$4 sm:$0xff]  }
 0x17b   :  { %2874 = vmatpush1.bf16.msra.mxu0 %v4353_v14  ;;  %2956 = vmatpush1.bf16.msra.mxu1 %v4356_v16  ;;  %v4418_v14 = vld [vmem:[#allocation7 + $0x2ac] ss:$16 sps:$4 sm:$0xff]   ;;  %v4413_v16 = vld [vmem:[#allocation7 + $0x2a0] ss:$16 sps:$4 sm:$0xff]  }
 0x17c   :  { %2875 = vmatprep.subr.bf16.mxu0 %v4361_v17  ;;  %2957 = vmatprep.subr.bf16.mxu1 %v4364_v18  ;;  %v4416_v17 = vld [vmem:[#allocation7 + $0x2a8] ss:$16 sps:$4 sm:$0xff]   ;;  %v4421_v18 = vld [vmem:[#allocation7 + $0x2c4] ss:$16 sps:$4 sm:$0xff]  }
 0x17f   :  { %2876 = vmatpush1.bf16.msra.mxu0 %v4359_v19  ;;  %2958 = vmatpush1.bf16.msra.mxu1 %v4362_v20  ;;  %v4424_v19 = vld [vmem:[#allocation7 + $0x2cc] ss:$16 sps:$4 sm:$0xff]   ;;  %v4419_v20 = vld [vmem:[#allocation7 + $0x2c0] ss:$16 sps:$4 sm:$0xff]  }
 0x180   :  { %2877 = vmatprep.subr.bf16.mxu0 %v4367_v21  ;;  %2959 = vmatprep.subr.bf16.mxu1 %v4370_v22  ;;  %v4422_v21 = vld [vmem:[#allocation7 + $0x2c8] ss:$16 sps:$4 sm:$0xff]   ;;  %v4427_v22 = vld [vmem:[#allocation7 + $0x2e4] ss:$16 sps:$4 sm:$0xff]  }
 0x183   :  { %2878 = vmatpush1.bf16.msra.mxu0 %v4365_v23  ;;  %2960 = vmatpush1.bf16.msra.mxu1 %v4368_v24  ;;  %v4430_v23 = vld [vmem:[#allocation7 + $0x2ec] ss:$16 sps:$4 sm:$0xff]   ;;  %v4425_v24 = vld [vmem:[#allocation7 + $0x2e0] ss:$16 sps:$4 sm:$0xff]  }
 0x184   :  { %2879 = vmatprep.subr.bf16.mxu0 %v4373_v25  ;;  %2961 = vmatprep.subr.bf16.mxu1 %v4376_v26  ;;  %v4428_v25 = vld [vmem:[#allocation7 + $0x2e8] ss:$16 sps:$4 sm:$0xff]   ;;  %v4433_v26 = vld [vmem:[#allocation7 + $0x304] ss:$16 sps:$4 sm:$0xff]  }
 0x187   :  { %2880 = vmatpush1.bf16.msra.mxu0 %v4371_v27  ;;  %2962 = vmatpush1.bf16.msra.mxu1 %v4374_v28  ;;  %v4436_v27 = vld [vmem:[#allocation7 + $0x30c] ss:$16 sps:$4 sm:$0xff]   ;;  %v4431_v28 = vld [vmem:[#allocation7 + $0x300] ss:$16 sps:$4 sm:$0xff]  }
 0x188   :  { %2881 = vmatprep.subr.bf16.mxu0 %v4379_v29  ;;  %2963 = vmatprep.subr.bf16.mxu1 %v4382_v31  ;;  %v4434_v29 = vld [vmem:[#allocation7 + $0x308] ss:$16 sps:$4 sm:$0xff]   ;;  %v4439_v31 = vld [vmem:[#allocation7 + $0x324] ss:$16 sps:$4 sm:$0xff]  }
 0x18b   :  { %2882 = vmatpush1.bf16.msra.mxu0 %v4377_v32  ;;  %2964 = vmatpush1.bf16.msra.mxu1 %v4380_v34  ;;  %v4442_v32 = vld [vmem:[#allocation7 + $0x32c] ss:$16 sps:$4 sm:$0xff]   ;;  %v4437_v34 = vld [vmem:[#allocation7 + $0x320] ss:$16 sps:$4 sm:$0xff]  }
 0x18c   :  { %2892 = vmatprep.subr.bf16.mxu0 %v4385_v35  ;;  %2974 = vmatprep.subr.bf16.mxu1 %v4388_v30  ;;  %v4440_v35 = vld [vmem:[#allocation7 + $0x328] ss:$16 sps:$4 sm:$0xff]   ;;  %v4445_v30 = vld [vmem:[#allocation7 + $0x344] ss:$16 sps:$4 sm:$0xff]  }
 0x221   :  { %v1882_v33 = vpop.f32.mrb[0].mxu0  ;;  %v4798_v36 = vpop.f32.mrb[0].mxu1 }
 0x222   :  { %v3845_v42 = vadd.f32 %v1882_v33, %v348_v39  ;;  %v1884_v43 = vpop.f32.mrb[1].mxu0  ;;  %v2048_v44 = vpop.f32.mrb[1].mxu1  ;;  %v4448_v39 = vld [vmem:[#allocation7 + $0x34c] ss:$16 sps:$4 sm:$0xff]   ;;  %v4451_v33 = vld [vmem:[#allocation7 + $0x364] ss:$16 sps:$4 sm:$0xff]  }
 0x223   :  { %v3846_v46 = vadd.f32 %v1884_v43, %v352_v40  ;;  %v3848_v47 = vadd.f32 %v2048_v44, %v360_v41  ;;  %v1886_v48 = vpop.f32.mrb[2].mxu0  ;;  %v2050_v49 = vpop.f32.mrb[2].mxu1  ;;  %v4443_v40 = vld [vmem:[#allocation7 + $0x340] ss:$16 sps:$4 sm:$0xff]   ;;  %v4446_v41 = vld [vmem:[#allocation7 + $0x348] ss:$16 sps:$4 sm:$0xff]  }
 0x224   :  { %v2053_v50 = vmax.f32 %v3845_v42, 0.0  ;;  %v1887_v51 = vpop.f32.mrb[3].mxu0  ;;  %v2051_v52 = vpop.f32.mrb[3].mxu1  ;;  %v4454_v42 = vld [vmem:[#allocation7 + $0x36c] ss:$16 sps:$4 sm:$0xff]  }
 0x225   :  { %v2054_v54 = vmax.f32 %v3846_v46, 0.0  ;;  %v2056_v55 = vmax.f32 %v3848_v47, 0.0  ;;  %v4449_v43 = vld [vmem:[#allocation7 + $0x360] ss:$16 sps:$4 sm:$0xff]   ;;  %v4452_v44 = vld [vmem:[#allocation7 + $0x368] ss:$16 sps:$4 sm:$0xff]  }
 0x226   :  { %v2057_v59 = vpack.c.bf16 %v2053_v50, %v2053_v50  ;;  %v4457_v46 = vld [vmem:[#allocation7 + $0x384] ss:$16 sps:$4 sm:$0xff]   ;;  %v4460_v47 = vld [vmem:[#allocation7 + $0x38c] ss:$16 sps:$4 sm:$0xff]   ;;  %v4455_v48 = vld [vmem:[#allocation7 + $0x380] ss:$16 sps:$4 sm:$0xff]  }
 0x227   :  { %v2058_v56 = vpack.c.bf16 %v2054_v54, %v2054_v54  ;;  %v2060_v62 = vpack.c.bf16 %v2056_v55, %v2056_v55  ;;  %v4458_v49 = vld [vmem:[#allocation7 + $0x388] ss:$16 sps:$4 sm:$0xff]   ;;  %v355_v50 = vsub.s32 2, %v4742_v45  ;;  %v4463_v51 = vld [vmem:[#allocation7 + $0x3a4] ss:$16 sps:$4 sm:$0xff]  }
 0x228   :  { %v4466_v52 = vld [vmem:[#allocation7 + $0x3ac] ss:$16 sps:$4 sm:$0xff]   ;;  %v4461_v54 = vld [vmem:[#allocation7 + $0x3a0] ss:$16 sps:$4 sm:$0xff]   ;;  %v4464_v55 = vld [vmem:[#allocation7 + $0x3a8] ss:$16 sps:$4 sm:$0xff]  }
 0x229   :  { %2883 = vmatprep.mubr.bf16.mxu0 %v2058_v56  ;;  %2965 = vmatprep.mubr.bf16.mxu1 %v2058_v56  ;;  %v356_v56 = vrot.slane %v4785_v37, %v355_v50  ;;  %v4479_v37 = vld [vmem:[#allocation8 + $0x40] sm:$0xff]  }
 0x22a   :  { %2884 = vmatmul.mubr.bf16.vlgmr.msra.gmra.mrb[4].mxu0 %v2057_v59  ;;  %2966 = vmatmul.mubr.bf16.vlgmr.msra.gmra.mrb[4].mxu1 %v2057_v59  ;;  %v4467_v59 = vld [vmem:[#allocation7 + $0x3c0] ss:$16 sps:$4 sm:$0xff]  }
 0x22b   :  { %2893 = vmatpush1.bf16.msra.mxu0 %v4383_v57  ;;  %2975 = vmatpush1.bf16.msra.mxu1 %v4386_v58  ;;  %v4469_v57 = vld [vmem:[#allocation7 + $0x3c4] ss:$16 sps:$4 sm:$0xff]   ;;  %v4472_v58 = vld [vmem:[#allocation7 + $0x3cc] ss:$16 sps:$4 sm:$0xff]  }
 0x22c   :  { %2924 = vmatprep.mubr.bf16.mxu0 %v2060_v62  ;;  %3006 = vmatprep.mubr.bf16.mxu1 %v2060_v62  ;;  %v4475_v62 = vld [vmem:[#allocation7 + $0x3e4] ss:$16 sps:$4 sm:$0xff]  }
 0x22d   :  { %2894 = vmatprep.subr.bf16.mxu0 %v4391_v60  ;;  %2976 = vmatprep.subr.bf16.mxu1 %v4394_v61  ;;  %v4470_v60 = vld [vmem:[#allocation7 + $0x3c8] ss:$16 sps:$4 sm:$0xff]   ;;  %v3847_v61 = vadd.f32 %v4798_v36, %v356_v56 }
 0x22e   :  { %v4483_v36 = vld [vmem:[#allocation8 + $0x48] sm:$0xff]  }
 0x22f   :  { %2895 = vmatpush1.bf16.msra.mxu0 %v4389_v63  ;;  %2977 = vmatpush1.bf16.msra.mxu1 %v4392_v0  ;;  %v4478_v63 = vld [vmem:[#allocation7 + $0x3ec] ss:$16 sps:$4 sm:$0xff]   ;;  %v4473_v0 = vld [vmem:[#allocation7 + $0x3e0] ss:$16 sps:$4 sm:$0xff]  }
 0x230   :  { %2896 = vmatprep.subr.bf16.mxu0 %v4397_v1  ;;  %2978 = vmatprep.subr.bf16.mxu1 %v4400_v2  ;;  %v4476_v1 = vld [vmem:[#allocation7 + $0x3e8] ss:$16 sps:$4 sm:$0xff]   ;;  %v2055_v2 = vmax.f32 %v3847_v61, 0.0 }
 0x233   :  { %2897 = vmatpush1.bf16.msra.mxu0 %v4395_v3  ;;  %2979 = vmatpush1.bf16.msra.mxu1 %v4398_v4  ;;  %v4480_v3 = vld [vmem:[#allocation8 + $0xc0] sm:$0xff]  }
 0x234   :  { %2898 = vmatprep.subr.bf16.mxu0 %v4403_v5  ;;  %2980 = vmatprep.subr.bf16.mxu1 %v4406_v6  ;;  %v4481_v4 = vld [vmem:[#allocation8] sm:$0xff]   ;;  %v2059_v6 = vpack.c.bf16 %v2055_v2, %v2055_v2 }
 0x235   :  { %v4482_v5 = vld [vmem:[#allocation8 + $0x80] sm:$0xff]  }
 0x237   :  { %2899 = vmatpush1.bf16.msra.mxu0 %v4401_v7  ;;  %2981 = vmatpush1.bf16.msra.mxu1 %v4404_v8  ;;  %v4484_v7 = vld [vmem:[#allocation8 + $0xc8] sm:$0xff]  }
 0x238   :  { %2900 = vmatprep.subr.bf16.mxu0 %v4409_v9  ;;  %2982 = vmatprep.subr.bf16.mxu1 %v4412_v10  ;;  %v4485_v8 = vld [vmem:[#allocation8 + $0x8] sm:$0xff]   ;;  %v4487_v10 = vld [vmem:[#allocation8 + $0x50] sm:$0xff]  }
 0x239   :  { %v4486_v9 = vld [vmem:[#allocation8 + $0x88] sm:$0xff]  }
 0x23b   :  { %2901 = vmatpush1.bf16.msra.mxu0 %v4407_v11  ;;  %2983 = vmatpush1.bf16.msra.mxu1 %v4410_v12  ;;  %v4488_v11 = vld [vmem:[#allocation8 + $0xd0] sm:$0xff]  }
 0x23c   :  { %2902 = vmatprep.subr.bf16.mxu0 %v4415_v13  ;;  %2984 = vmatprep.subr.bf16.mxu1 %v4418_v14  ;;  %v4489_v12 = vld [vmem:[#allocation8 + $0x10] sm:$0xff]   ;;  %v4491_v14 = vld [vmem:[#allocation8 + $0x58] sm:$0xff]  }
 0x23d   :  { %v4490_v13 = vld [vmem:[#allocation8 + $0x90] sm:$0xff]  }
 0x23f   :  { %2903 = vmatpush1.bf16.msra.mxu0 %v4413_v16  ;;  %2985 = vmatpush1.bf16.msra.mxu1 %v4416_v17  ;;  %v4492_v16 = vld [vmem:[#allocation8 + $0xd8] sm:$0xff]  }
 0x240   :  { %2904 = vmatprep.subr.bf16.mxu0 %v4421_v18  ;;  %2986 = vmatprep.subr.bf16.mxu1 %v4424_v19  ;;  %v4493_v17 = vld [vmem:[#allocation8 + $0x18] sm:$0xff]   ;;  %v4495_v19 = vld [vmem:[#allocation8 + $0x60] sm:$0xff]  }
 0x241   :  { %v4494_v18 = vld [vmem:[#allocation8 + $0x98] sm:$0xff]  }
 0x243   :  { %2905 = vmatpush1.bf16.msra.mxu0 %v4419_v20  ;;  %2987 = vmatpush1.bf16.msra.mxu1 %v4422_v21  ;;  %v4496_v20 = vld [vmem:[#allocation8 + $0xe0] sm:$0xff]  }
 0x244   :  { %2906 = vmatprep.subr.bf16.mxu0 %v4427_v22  ;;  %2988 = vmatprep.subr.bf16.mxu1 %v4430_v23  ;;  %v4497_v21 = vld [vmem:[#allocation8 + $0x20] sm:$0xff]   ;;  %v4499_v23 = vld [vmem:[#allocation8 + $0x68] sm:$0xff]  }
 0x245   :  { %v4498_v22 = vld [vmem:[#allocation8 + $0xa0] sm:$0xff]  }
 0x247   :  { %2907 = vmatpush1.bf16.msra.mxu0 %v4425_v24  ;;  %2989 = vmatpush1.bf16.msra.mxu1 %v4428_v25  ;;  %v4500_v24 = vld [vmem:[#allocation8 + $0xe8] sm:$0xff]  }
 0x248   :  { %2908 = vmatprep.subr.bf16.mxu0 %v4433_v26  ;;  %2990 = vmatprep.subr.bf16.mxu1 %v4436_v27  ;;  %v4501_v25 = vld [vmem:[#allocation8 + $0x28] sm:$0xff]   ;;  %v4503_v27 = vld [vmem:[#allocation8 + $0x70] sm:$0xff]  }
 0x249   :  { %v4502_v26 = vld [vmem:[#allocation8 + $0xa8] sm:$0xff]  }
 0x24b   :  { %2909 = vmatpush1.bf16.msra.mxu0 %v4431_v28  ;;  %2991 = vmatpush1.bf16.msra.mxu1 %v4434_v29  ;;  %v4504_v28 = vld [vmem:[#allocation8 + $0xf0] sm:$0xff]  }
 0x24c   :  { %2910 = vmatprep.subr.bf16.mxu0 %v4439_v31  ;;  %2992 = vmatprep.subr.bf16.mxu1 %v4442_v32  ;;  %v4505_v29 = vld [vmem:[#allocation8 + $0x30] sm:$0xff]   ;;  %v4507_v32 = vld [vmem:[#allocation8 + $0x78] sm:$0xff]  }
 0x24d   :  { %v4506_v31 = vld [vmem:[#allocation8 + $0xb0] sm:$0xff]  }
 0x24f   :  { %2911 = vmatpush1.bf16.msra.mxu0 %v4437_v34  ;;  %2993 = vmatpush1.bf16.msra.mxu1 %v4440_v35  ;;  %v4508_v34 = vld [vmem:[#allocation8 + $0xf8] sm:$0xff]  }
 0x250   :  { %2912 = vmatprep.subr.bf16.mxu0 %v4445_v30  ;;  %2994 = vmatprep.subr.bf16.mxu1 %v4448_v39  ;;  %v4509_v35 = vld [vmem:[#allocation8 + $0x38] sm:$0xff]   ;;  %v2189_v39 = vld [vmem:[%s4835_s4] sm:$0xf] }
 0x251   :  { %v4510_v30 = vld [vmem:[#allocation8 + $0xb8] sm:$0xff]  }
 0x253   :  { %2913 = vmatpush1.bf16.msra.mxu0 %v4443_v40  ;;  %2995 = vmatpush1.bf16.msra.mxu1 %v4446_v41  ;;  %v2194_v40 = vrot.slane %v2189_v39, %v347_v15  ;;  %v2202_v41 = vrot.slane %v2189_v39, %v355_v50 }
 0x254   :  { %2914 = vmatprep.subr.bf16.mxu0 %v4451_v33  ;;  %2996 = vmatprep.subr.bf16.mxu1 %v4454_v42  ;;  %v2198_v33 = vrot.slane %v2189_v39, %v351_v38  ;;  %v2206_v42 = vrot.slane %v2189_v39, %v359_v53 }
 0x257   :  { %2915 = vmatpush1.bf16.msra.mxu0 %v4449_v43  ;;  %2997 = vmatpush1.bf16.msra.mxu1 %v4452_v44 }
 0x258   :  { %2916 = vmatprep.subr.bf16.mxu0 %v4457_v46  ;;  %2998 = vmatprep.subr.bf16.mxu1 %v4460_v47 }
 0x25b   :  { %2917 = vmatpush1.bf16.msra.mxu0 %v4455_v48  ;;  %2999 = vmatpush1.bf16.msra.mxu1 %v4458_v49 }
 0x25c   :  { %2918 = vmatprep.subr.bf16.mxu0 %v4463_v51  ;;  %3000 = vmatprep.subr.bf16.mxu1 %v4466_v52 }
 0x25f   :  { %2919 = vmatpush1.bf16.msra.mxu0 %v4461_v54  ;;  %3001 = vmatpush1.bf16.msra.mxu1 %v4464_v55 }
 0x260   :  { %2920 = vmatprep.subr.bf16.mxu0 %v4469_v57  ;;  %3002 = vmatprep.subr.bf16.mxu1 %v4472_v58 }
 0x263   :  { %2921 = vmatpush1.bf16.msra.mxu0 %v4467_v59  ;;  %3003 = vmatpush1.bf16.msra.mxu1 %v4470_v60 }
 0x264   :  { %2922 = vmatprep.subr.bf16.mxu0 %v4475_v62  ;;  %3004 = vmatprep.subr.bf16.mxu1 %v4478_v63  ;;  %v3768_v63 = vld [vmem:[%s4837_s6] ss:$0 sm:$0xff] }
 0x267   :  { %2923 = vmatpush1.bf16.msra.mxu0 %v4473_v0  ;;  %3005 = vmatpush1.bf16.msra.mxu1 %v4476_v1 }
 0x268   :  { %3801 = vmatprep.subr.bf16.mxu0 %v4479_v37  ;;  %3823 = vmatprep.subr.bf16.mxu1 %v4480_v3 }
 0x26a   :  { %2925 = vmatmul.mubr.bf16.vlgmr.msra.gmra.mrb[4].mxu0 %v2059_v6  ;;  %3007 = vmatmul.mubr.bf16.vlgmr.msra.gmra.mrb[4].mxu1 %v2059_v6 }
 0x26b   :  { %3802 = vmatpush3.bf16.msra.mxu0 %v4481_v4  ;;  %3824 = vmatpush3.bf16.msra.mxu1 %v4482_v5 }
 0x26c   :  { %3803 = vmatprep.subr.bf16.mxu0 %v4483_v36  ;;  %3825 = vmatprep.subr.bf16.mxu1 %v4484_v7 }
 0x26f   :  { %3804 = vmatpush3.bf16.msra.mxu0 %v4485_v8  ;;  %3826 = vmatpush3.bf16.msra.mxu1 %v4486_v9 }
 0x270   :  { %3805 = vmatprep.subr.bf16.mxu0 %v4487_v10  ;;  %3827 = vmatprep.subr.bf16.mxu1 %v4488_v11 }
 0x273   :  { %3806 = vmatpush3.bf16.msra.mxu0 %v4489_v12  ;;  %3828 = vmatpush3.bf16.msra.mxu1 %v4490_v13 }
 0x274   :  { %3807 = vmatprep.subr.bf16.mxu0 %v4491_v14  ;;  %3829 = vmatprep.subr.bf16.mxu1 %v4492_v16 }
 0x277   :  { %3808 = vmatpush3.bf16.msra.mxu0 %v4493_v17  ;;  %3830 = vmatpush3.bf16.msra.mxu1 %v4494_v18 }
 0x278   :  { %3809 = vmatprep.subr.bf16.mxu0 %v4495_v19  ;;  %3831 = vmatprep.subr.bf16.mxu1 %v4496_v20 }
 0x27b   :  { %3810 = vmatpush3.bf16.msra.mxu0 %v4497_v21  ;;  %3832 = vmatpush3.bf16.msra.mxu1 %v4498_v22 }
 0x27c   :  { %3811 = vmatprep.subr.bf16.mxu0 %v4499_v23  ;;  %3833 = vmatprep.subr.bf16.mxu1 %v4500_v24 }
 0x27f   :  { %3812 = vmatpush3.bf16.msra.mxu0 %v4501_v25  ;;  %3834 = vmatpush3.bf16.msra.mxu1 %v4502_v26 }
 0x280   :  { %3813 = vmatprep.subr.bf16.mxu0 %v4503_v27  ;;  %3835 = vmatprep.subr.bf16.mxu1 %v4504_v28 }
 0x283   :  { %3814 = vmatpush3.bf16.msra.mxu0 %v4505_v29  ;;  %3836 = vmatpush3.bf16.msra.mxu1 %v4506_v31 }
 0x284   :  { %3815 = vmatprep.subr.bf16.mxu0 %v4507_v32  ;;  %3837 = vmatprep.subr.bf16.mxu1 %v4508_v34 }
 0x287   :  { %3816 = vmatpush3.bf16.msra.mxu0 %v4509_v35  ;;  %3838 = vmatpush3.bf16.msra.mxu1 %v4510_v30 }
 0x33d   :  { %v2926_v43 = vpop.f32.mrb[4].mxu0  ;;  %v3008_v44 = vpop.f32.mrb[4].mxu1 }
 0x33e   :  { %v3849_v46 = vadd.f32 %v2926_v43, %v2194_v40  ;;  %v3851_v47 = vadd.f32 %v3008_v44, %v2202_v41  ;;  %v2928_v48 = vpop.f32.mrb[5].mxu0  ;;  %v3010_v49 = vpop.f32.mrb[5].mxu1 }
 0x33f   :  { %v3850_v51 = vadd.f32 %v2928_v48, %v2198_v33  ;;  %v3852_v52 = vadd.f32 %v3010_v49, %v2206_v42  ;;  %v2930_v54 = vpop.f32.mrb[6].mxu0  ;;  %v3012_v55 = vpop.f32.mrb[6].mxu1 }
 0x340   :  { %v3015_v15 = vmax.f32 %v3849_v46, 0.0  ;;  %v3017_v56 = vmax.f32 %v3851_v47, 0.0  ;;  %v2931_v57 = vpop.f32.mrb[7].mxu0  ;;  %v3013_v50 = vpop.f32.mrb[7].mxu1 }
 0x341   :  { %v3016_v58 = vmax.f32 %v3850_v51, 0.0  ;;  %v3018_v59 = vmax.f32 %v3852_v52, 0.0 }
 0x342   :  { %v3019_v45 = vpack.c.bf16 %v3015_v15, %v3015_v15  ;;  %v3021_v53 = vpack.c.bf16 %v3017_v56, %v3017_v56 }
 0x343   :  { %v3020_v38 = vpack.c.bf16 %v3016_v58, %v3016_v58  ;;  %v3022_v60 = vpack.c.bf16 %v3018_v59, %v3018_v59 }
 0x345   :  { %3318 = vmatprep.mubr.bf16.mxu0 %v3020_v38  ;;  %3358 = vmatprep.mubr.bf16.mxu1 %v3022_v60 }
 0x346   :  { %3319 = vmatmul.mubr.bf16.vlgmr.msra.gmra.mrb[8].mxu0 %v3019_v45  ;;  %3359 = vmatmul.mubr.bf16.vlgmr.msra.gmra.mrb[8].mxu1 %v3021_v53 }
 0x419   :  { %v3817_v61 = vpop.f32.mrb[8].mxu0  ;;  %v3839_v62 = vpop.f32.mrb[8].mxu1 }
 0x41a   :  { %v3818_v0 = vpop.f32.mrb[9].mxu0  ;;  %v3840_v1 = vpop.f32.mrb[9].mxu1 }
 0x41b   :  { %v3819_v2 = vadd.f32 %v3818_v0, %v3817_v61  ;;  %v3841_v37 = vadd.f32 %v3840_v1, %v3839_v62  ;;  %v3820_v3 = vpop.f32.mrb[10].mxu0  ;;  %v3842_v4 = vpop.f32.mrb[10].mxu1 }
 0x41c   :  { %v3821_v5 = vpop.f32.mrb[11].mxu0  ;;  %v3843_v6 = vpop.f32.mrb[11].mxu1 }
 0x41d   :  { %v3321_v36 = vadd.f32 %v3819_v2, %v3768_v63 }
 0x41f   :  { %v3361_v7 = vadd.f32 %v3841_v37, %v3321_v36 }
 0x421   :  { %3366 = vst [vmem:[#allocation10] sm:$0xff] %v3361_v7 }
 0x422   :  { %4610 = shalt.err (!%p4607_p8)
}
 0x423   :  { %s4611_s15 = scalar_lea.hbm %s4838_s7, 128 }
 0x424   :  { %p4612_p9 = scmp.ne.s32.totalorder %s4838_s7, %s4611_s15  ;;  %p4615_p10 = scmp.lt.u32.totalorder %s4611_s15, %s4838_s7 }
 0x426   :  { %p4617_p11 = pnand %p4615_p10, %p4612_p9 }
 0x428   :  { %4620 = shalt.err (!%p4617_p11)
}
 0x429   :  { %3376 = dma.vmem_to_hbm [thread:$0]  %s3374_s10, 128, %s4838_s7, [#allocation4]  }
 0x42a   :  { %4627 = dma.done.wait [#allocation4], 128  }
 0x42b   :  { %4628 = vsyncadd [#allocation4], 4294967168 }
 0x42c   :  { %3380 = vsyncpa [#allocation3], 1 }
 0x42d   :  { %3381 = vsyncpa [#allocation6], 1 }
 0x42e   :  { %3382 = vsyncpa [#allocation9], 1 }
 0x42f   :  { %3383 = vsyncpa [#allocation4], 1 }

</bundles_post_ra>
